<compile_context>
chip_gen: v5e
topology: v5e:2x2
jax: 0.10.0
libtpu: 0.0.40
codegen_flags: <defaults>
</compile_context>

<pallas_src>
from functools import partial

import jax
import jax.numpy as jnp
from jax import lax
from jax.experimental import pallas as pl
from jax.experimental.pallas import tpu as pltpu

HBASE = 8  # sublane-aligned flat offset of h inside its VMEM scratch


# ----------------------------------------------------------------------------
# Fused kernel: DMA window -> conv1+bn1+relu -> (VMEM h) -> conv2+bn2+add+relu
# ----------------------------------------------------------------------------
def _basic_block_kernel(x_hbm, w1_ref, b1_ref, w2_ref, b2_ref, o_ref,
                        x_buf, x_sem, acc_ref, h_ref, *, th, W, T):
    # x_hbm  : (N, (H+5)*Wp, Cp) HBM ref (flattened padded NHWC), compute dtype
    # w1/w2  : (9, Cp, Cp) conv weights (tap-major, BN scale folded), compute dt
    # b1/b2  : (1, Cp) f32 folded BN biases
    # o_ref  : (th*Wp, Cp) output row-tile (padded-width flat layout)
    # x_buf  : (2, (th+5)*Wp, Cp) VMEM double buffer for the input window
    # acc_ref: ((th+2)*Wp, Cp) f32 accumulator (shared by conv1 and conv2)
    # h_ref  : ((th+2)*Wp + 2*HBASE, Cp) VMEM scratch for the intermediate act.
    Wp = W + 2
    Cp = o_ref.shape[-1]
    Lx = (th + 5) * Wp          # input window rows (flat), incl. 1 slack row
    Lh = (th + 2) * Wp          # conv1 output rows (1-row halo each side)
    Lo = th * Wp                # conv2 / block output rows

    n = pl.program_id(0)
    t = pl.program_id(1)
    slot = t % 2

    # ---- manual double-buffered fetch of this tile's input row window -------
    def fetch(tt, sl):
        pltpu.make_async_copy(
            x_hbm.at[n, pl.ds(tt * (th * Wp), Lx), :],
            x_buf.at[sl], x_sem.at[sl]).start()

    @pl.when(t == 0)
    def _():                    # prime (T axis is "arbitrary" -> sequential)
        fetch(0, 0)

    pltpu.make_async_copy(
        x_hbm.at[n, pl.ds(0, Lx), :], x_buf.at[slot], x_sem.at[slot]).wait()

    @pl.when(t + 1 < T)
    def _():                    # prefetch next tile into the other slot
        fetch(t + 1, 1 - slot)

    xb = x_buf.at[slot]         # ((th+5)*Wp, Cp) VMEM view, compute dtype

    # ---- conv1 (bn1 scale folded into w1): f32 VMEM accumulator -------------
    for k in range(9):
        kh, kw = divmod(k, 3)
        p = jnp.dot(xb[pl.ds(kh * Wp + kw, Lh), :], w1_ref[k],
                    preferred_element_type=jnp.float32)
        if k == 0:
            acc_ref[...] = p
        else:
            acc_ref[...] += p

    # bias + relu; zero the 2 junk columns per row (they act as conv2's column
    # padding); store at a sublane-aligned base in the compute dtype.
    col = lax.broadcasted_iota(jnp.int32, (Lh, 1), 0) % Wp
    hv = jnp.maximum(acc_ref[...] + b1_ref[...], 0.0)
    hv = jnp.where(col < W, hv, 0.0)
    h_ref[pl.ds(HBASE, Lh), :] = hv.astype(h_ref.dtype)

    # top-left conv2 padding element (read by output (0,0), tap (0,0)).
    h_ref[pl.ds(HBASE - 1, 1), :] = jnp.zeros((1, Cp), h_ref.dtype)

    # halo rows outside the image are conv2 *padding* (zero, not relu(bias)).
    @pl.when(t == 0)
    def _():
        h_ref[pl.ds(HBASE, Wp), :] = jnp.zeros((Wp, Cp), h_ref.dtype)

    @pl.when(t == T - 1)
    def _():
        h_ref[pl.ds(HBASE + (th + 1) * Wp, Wp), :] = jnp.zeros((Wp, Cp),
                                                               h_ref.dtype)

    # ---- conv2 (bn2 scale folded into w2): reuse the same f32 accumulator ---
    for k in range(9):
        kh, kw = divmod(k, 3)
        p = jnp.dot(h_ref[pl.ds(HBASE - 1 + kh * Wp + kw, Lo), :], w2_ref[k],
                    preferred_element_type=jnp.float32)
        if k == 0:
            acc_ref[pl.ds(0, Lo), :] = p
        else:
            acc_ref[pl.ds(0, Lo), :] += p

    # ---- bias + residual + relu epilogue (f32 math, compute-dtype store) ----
    res = xb[pl.ds(2 * Wp + 1, Lo), :].astype(jnp.float32)
    out = jnp.maximum(acc_ref[pl.ds(0, Lo), :] + b2_ref[...] + res, 0.0)
    o_ref[...] = out.astype(o_ref.dtype)


# ----------------------------------------------------------------------------
# Wrapper
# ----------------------------------------------------------------------------
def fold_bn(gamma, beta, running_mean, running_var, eps=1e-5):
    scale = gamma / jnp.sqrt(running_var + eps)
    bias = beta - running_mean * scale
    return scale, bias


def basic_block_forward(x_nchw, params, *, compute_dtype=jnp.float32, th=None):
    """BasicBlock forward (stride=1, no downsample, eval-mode BN)."""
    N, C, H, W = x_nchw.shape
    Wp = W + 2
    Cp = ((C + 127) // 128) * 128            # lane-dense channel padding
    if th is None:
        th = 16 if H % 16 == 0 else (8 if H % 8 == 0 else H)
    assert H % th == 0, "row tile must divide H"      # TODO(synk): remainder
    T = H // th
    assert (th * Wp) % 8 == 0 or T == 1

    s1, b1 = fold_bn(params["bn1_gamma"], params["bn1_beta"],
                     params["bn1_mean"], params["bn1_var"])
    s2, b2 = fold_bn(params["bn2_gamma"], params["bn2_beta"],
                     params["bn2_mean"], params["bn2_var"])

    def prep_w(w_oihw, scale):
        # OIHW -> (kh,kw,Cin,Cout), fold BN scale into Cout, pad to Cp.
        w = jnp.transpose(w_oihw, (2, 3, 1, 0)) * scale[None, None, None, :]
        w = jnp.pad(w, ((0, 0), (0, 0), (0, Cp - C), (0, Cp - C)))
        return w.reshape(9, Cp, Cp).astype(compute_dtype)

    w1 = prep_w(params["conv1_w"], s1)
    w2 = prep_w(params["conv2_w"], s2)
    b1p = jnp.pad(b1, (0, Cp - C)).reshape(1, Cp).astype(jnp.float32)
    b2p = jnp.pad(b2, (0, Cp - C)).reshape(1, Cp).astype(jnp.float32)

    # NCHW -> NHWC, pad: 2 halo rows on top, 3 below (2 halo + 1 flat-layout
    # slack row), 1 col halo each side, channels to Cp; flatten (H, Wp) rows
    # so the kernel can DMA a contiguous row window per tile.
    x = jnp.transpose(x_nchw, (0, 2, 3, 1)).astype(compute_dtype)
    xp = jnp.pad(x, ((0, 0), (2, 3), (1, 1), (0, Cp - C)))
    xflat = xp.reshape(N, (H + 5) * Wp, Cp)

    kernel = partial(_basic_block_kernel, th=th, W=W, T=T)

    y = pl.pallas_call(
        kernel,
        out_shape=jax.ShapeDtypeStruct((N, H * Wp, Cp), compute_dtype),
        grid_spec=pltpu.PrefetchScalarGridSpec(
            num_scalar_prefetch=0,
            grid=(N, T),
            in_specs=[
                pl.BlockSpec(memory_space=pl.ANY),                 # x (HBM)
                pl.BlockSpec((9, Cp, Cp), lambda n, t: (0, 0, 0)), # w1
                pl.BlockSpec((1, Cp), lambda n, t: (0, 0)),        # b1
                pl.BlockSpec((9, Cp, Cp), lambda n, t: (0, 0, 0)), # w2
                pl.BlockSpec((1, Cp), lambda n, t: (0, 0)),        # b2
            ],
            out_specs=pl.BlockSpec((None, th * Wp, Cp),
                                   lambda n, t: (n, t, 0)),
            scratch_shapes=[
                pltpu.VMEM((2, (th + 5) * Wp, Cp), compute_dtype),  # x_buf
                pltpu.SemaphoreType.DMA((2,)),                      # x_sem
                pltpu.VMEM(((th + 2) * Wp, Cp), jnp.float32),       # acc
                pltpu.VMEM(((th + 2) * Wp + 2 * HBASE, Cp),
                           compute_dtype),                          # h
            ],
        ),
        compiler_params=pltpu.CompilerParams(
            dimension_semantics=("parallel", "arbitrary")),
    )(xflat, w1, b1p, w2, b2p)

    # Drop the 2 junk columns and the channel padding, NHWC -> NCHW.
    y = y.reshape(N, H, Wp, Cp)[:, :, :W, :C]
    return jnp.transpose(y, (0, 3, 1, 2)).astype(x_nchw.dtype)


# ----------------------------------------------------------------------------
# Pure-JAX reference (for correctness check)
# ----------------------------------------------------------------------------
def basic_block_ref(x_nchw, params):
    def conv(x, w):
        return lax.conv_general_dilated(
            x, w, window_strides=(1, 1), padding=((1, 1), (1, 1)),
            dimension_numbers=("NCHW", "OIHW", "NCHW"))

    def bn(x, g, b, m, v, eps=1e-5):
        sc = g / jnp.sqrt(v + eps)
        bi = b - m * sc
        return x * sc[None, :, None, None] + bi[None, :, None, None]

    out = conv(x_nchw, params["conv1_w"])
    out = bn(out, params["bn1_gamma"], params["bn1_beta"],
             params["bn1_mean"], params["bn1_var"])
    out = jnp.maximum(out, 0.0)
    out = conv(out, params["conv2_w"])
    out = bn(out, params["bn2_gamma"], params["bn2_beta"],
             params["bn2_mean"], params["bn2_var"])
    out = out + x_nchw
    return jnp.maximum(out, 0.0)


# ----------------------------------------------------------------------------
if __name__ == "__main__":
    C = 8                                     # inplanes = planes = 8, stride 1
    key = jax.random.PRNGKey(0)
    keys = jax.random.split(key, 10)

    params = {
        "conv1_w":  0.1 * jax.random.normal(keys[0], (C, C, 3, 3), jnp.float32),
        "conv2_w":  0.1 * jax.random.normal(keys[1], (C, C, 3, 3), jnp.float32),
        "bn1_gamma": 1.0 + 0.1 * jax.random.normal(keys[2], (C,), jnp.float32),
        "bn1_beta":  0.05 * jax.random.normal(keys[3], (C,), jnp.float32),
        "bn1_mean":  0.01 * jax.random.normal(keys[4], (C,), jnp.float32),
        "bn1_var":   1.0 + 0.1 * jax.random.uniform(keys[5], (C,), jnp.float32),
        "bn2_gamma": 1.0 + 0.1 * jax.random.normal(keys[6], (C,), jnp.float32),
        "bn2_beta":  0.05 * jax.random.normal(keys[7], (C,), jnp.float32),
        "bn2_mean":  jnp.zeros((C,), jnp.float32),
        "bn2_var":   jnp.ones((C,), jnp.float32),
    }

    # 1) f32 path, two row tiles (exercises both image-border branches).
    x = jax.random.normal(keys[8], (2, C, 16, 16), jnp.float32)
    ref = jax.block_until_ready(basic_block_ref(x, params))
    out = jax.block_until_ready(basic_block_forward(x, params, th=8))
    assert out.shape == x.shape and out.dtype == x.dtype
    assert jnp.allclose(out, ref, atol=1e-3, rtol=1e-3), "f32 (T=2) mismatch"

    # 2) f32 path, three row tiles (adds an interior tile).
    x2 = jax.random.normal(keys[9], (1, C, 24, 16), jnp.float32)
    ref2 = jax.block_until_ready(basic_block_ref(x2, params))
    out2 = jax.block_until_ready(basic_block_forward(x2, params, th=8))
    assert jnp.allclose(out2, ref2, atol=1e-3, rtol=1e-3), "f32 (T=3) mismatch"

    # 3) bf16 activations/weights to the MXU (f32 accumulate + f32 epilogue),
    #    default (full-height) row tile -> T == 1 path.
    out_bf16 = jax.block_until_ready(
        basic_block_forward(x, params, compute_dtype=jnp.bfloat16))
    assert jnp.allclose(out_bf16, ref, atol=1e-1, rtol=1e-1), "bf16 mismatch"

    print("KERNEL_OK")
</pallas_src>

<mosaic_0001>
module attributes {stable_mosaic.version = 11 : i64} {
  func.func @_basic_block_kernel(%arg0: i32, %arg1: i32, %arg2: memref<2x378x128xf32, #tpu.memory_space<any>>, %arg3: memref<9x128x128xf32, #tpu.memory_space<vmem>>, %arg4: memref<1x128xf32, #tpu.memory_space<vmem>>, %arg5: memref<9x128x128xf32, #tpu.memory_space<vmem>>, %arg6: memref<1x128xf32, #tpu.memory_space<vmem>>, %arg7: memref<1x144x128xf32, #tpu.memory_space<vmem>>, %arg8: memref<2x234x128xf32, #tpu.memory_space<vmem>>, %arg9: memref<2x!tpu.dma_semaphore, #tpu.memory_space<semaphore_mem>>, %arg10: memref<180x128xf32, #tpu.memory_space<vmem>>, %arg11: memref<196x128xf32, #tpu.memory_space<vmem>>) attributes {dimension_semantics = [#tpu.dimension_semantics<parallel>, #tpu.dimension_semantics<arbitrary>], iteration_bounds = array<i64: 2, 2>, scalar_prefetch = 0 : i64, scratch_operands = 4 : i64, tpu.core_type = #tpu.core_type<tc>, window_params = [{}, {pipeline_mode = #tpu.pipeline_mode<synchronous>, transform_indices = @transform_1, window_bounds = array<i64: 9, 128, 128>}, {pipeline_mode = #tpu.pipeline_mode<synchronous>, transform_indices = @transform_2, window_bounds = array<i64: 1, 128>}, {pipeline_mode = #tpu.pipeline_mode<synchronous>, transform_indices = @transform_3, window_bounds = array<i64: 9, 128, 128>}, {pipeline_mode = #tpu.pipeline_mode<synchronous>, transform_indices = @transform_4, window_bounds = array<i64: 1, 128>}, {transform_indices = @transform_5, window_bounds = array<i64: 1, 144, 128>}]} {
    %c2_i32 = arith.constant 2 : i32
    %c0_i32 = arith.constant 0 : i32
    %0 = arith.cmpi eq, %c2_i32, %c0_i32 : i32
    %c1_i32 = arith.constant 1 : i32
    %1 = arith.select %0, %c1_i32, %c2_i32 : i32
    %2 = arith.remsi %arg1, %1 : i32
    %c0_i32_0 = arith.constant 0 : i32
    %3 = arith.cmpi ne, %2, %c0_i32_0 : i32
    %c0_i32_1 = arith.constant 0 : i32
    %4 = arith.cmpi slt, %2, %c0_i32_1 : i32
    %c0_i32_2 = arith.constant 0 : i32
    %5 = arith.cmpi slt, %1, %c0_i32_2 : i32
    %6 = arith.xori %4, %5 : i1
    %7 = arith.andi %6, %3 : i1
    %8 = arith.addi %2, %1 : i32
    %9 = arith.select %7, %8, %2 : i32
    %c0_i32_3 = arith.constant 0 : i32
    %10 = arith.cmpi eq, %arg1, %c0_i32_3 : i32
    %11 = arith.extui %10 : i1 to i32
    %c0_i32_4 = arith.constant 0 : i32
    %12 = arith.cmpi ne, %11, %c0_i32_4 : i32
    scf.if %12 {
      %c0_i32_215 = arith.constant 0 : i32
      %c0_i32_216 = arith.constant 0 : i32
      %c0_i32_217 = arith.constant 0 : i32
      %c0_i32_218 = arith.constant 0 : i32
      %214 = tpu.memref_slice %arg2[%arg0, %c0_i32_217, %c0_i32_218] : memref<2x378x128xf32, #tpu.memory_space<any>> -> memref<1x234x128xf32, #tpu.memory_space<any>>
      %215 = tpu.memref_squeeze %214 : memref<1x234x128xf32, #tpu.memory_space<any>> -> memref<234x128xf32, #tpu.memory_space<any>>
      %c0_i32_219 = arith.constant 0 : i32
      %c0_i32_220 = arith.constant 0 : i32
      %216 = tpu.memref_slice %arg8[%c0_i32_215, %c0_i32_219, %c0_i32_220] : memref<2x234x128xf32, #tpu.memory_space<vmem>> -> memref<1x234x128xf32, #tpu.memory_space<vmem>>
      %217 = tpu.memref_squeeze %216 : memref<1x234x128xf32, #tpu.memory_space<vmem>> -> memref<234x128xf32, #tpu.memory_space<vmem>>
      %218 = tpu.memref_slice %arg9[%c0_i32_216] : memref<2x!tpu.dma_semaphore, #tpu.memory_space<semaphore_mem>> -> memref<1x!tpu.dma_semaphore, #tpu.memory_space<semaphore_mem>>
      %219 = tpu.memref_squeeze %218 : memref<1x!tpu.dma_semaphore, #tpu.memory_space<semaphore_mem>> -> memref<!tpu.dma_semaphore, #tpu.memory_space<semaphore_mem>>
      tpu.enqueue_dma source(%215 : memref<234x128xf32, #tpu.memory_space<any>>) target(%217 : memref<234x128xf32, #tpu.memory_space<vmem>>) target_semaphore(%219 : memref<!tpu.dma_semaphore, #tpu.memory_space<semaphore_mem>>)
    } else {
    }
    %c0_i32_5 = arith.constant 0 : i32
    %c0_i32_6 = arith.constant 0 : i32
    %13 = tpu.memref_slice %arg2[%arg0, %c0_i32_5, %c0_i32_6] : memref<2x378x128xf32, #tpu.memory_space<any>> -> memref<1x234x128xf32, #tpu.memory_space<any>>
    %14 = tpu.memref_squeeze %13 : memref<1x234x128xf32, #tpu.memory_space<any>> -> memref<234x128xf32, #tpu.memory_space<any>>
    %c0_i32_7 = arith.constant 0 : i32
    %c0_i32_8 = arith.constant 0 : i32
    %15 = tpu.memref_slice %arg8[%9, %c0_i32_7, %c0_i32_8] : memref<2x234x128xf32, #tpu.memory_space<vmem>> -> memref<1x234x128xf32, #tpu.memory_space<vmem>>
    %16 = tpu.memref_squeeze %15 : memref<1x234x128xf32, #tpu.memory_space<vmem>> -> memref<234x128xf32, #tpu.memory_space<vmem>>
    %17 = tpu.memref_slice %arg9[%9] : memref<2x!tpu.dma_semaphore, #tpu.memory_space<semaphore_mem>> -> memref<1x!tpu.dma_semaphore, #tpu.memory_space<semaphore_mem>>
    %18 = tpu.memref_squeeze %17 : memref<1x!tpu.dma_semaphore, #tpu.memory_space<semaphore_mem>> -> memref<!tpu.dma_semaphore, #tpu.memory_space<semaphore_mem>>
    tpu.wait_dma2 semaphore(%18 : memref<!tpu.dma_semaphore, #tpu.memory_space<semaphore_mem>>) src(%14 : memref<234x128xf32, #tpu.memory_space<any>>) dst(%16 : memref<234x128xf32, #tpu.memory_space<vmem>>)
    %c1_i32_9 = arith.constant 1 : i32
    %19 = arith.addi %arg1, %c1_i32_9 : i32
    %c2_i32_10 = arith.constant 2 : i32
    %20 = arith.cmpi slt, %19, %c2_i32_10 : i32
    %21 = arith.extui %20 : i1 to i32
    %c0_i32_11 = arith.constant 0 : i32
    %22 = arith.cmpi ne, %21, %c0_i32_11 : i32
    scf.if %22 {
      %c1_i32_215 = arith.constant 1 : i32
      %214 = arith.addi %arg1, %c1_i32_215 : i32
      %c1_i32_216 = arith.constant 1 : i32
      %215 = arith.subi %c1_i32_216, %9 : i32
      %c144_i32 = arith.constant 144 : i32
      %216 = arith.muli %214, %c144_i32 : i32
      %c0_i32_217 = arith.constant 0 : i32
      %217 = tpu.memref_slice %arg2[%arg0, %216, %c0_i32_217] : memref<2x378x128xf32, #tpu.memory_space<any>> -> memref<1x234x128xf32, #tpu.memory_space<any>>
      %218 = tpu.memref_squeeze %217 : memref<1x234x128xf32, #tpu.memory_space<any>> -> memref<234x128xf32, #tpu.memory_space<any>>
      %c0_i32_218 = arith.constant 0 : i32
      %c0_i32_219 = arith.constant 0 : i32
      %219 = tpu.memref_slice %arg8[%215, %c0_i32_218, %c0_i32_219] : memref<2x234x128xf32, #tpu.memory_space<vmem>> -> memref<1x234x128xf32, #tpu.memory_space<vmem>>
      %220 = tpu.memref_squeeze %219 : memref<1x234x128xf32, #tpu.memory_space<vmem>> -> memref<234x128xf32, #tpu.memory_space<vmem>>
      %221 = tpu.memref_slice %arg9[%215] : memref<2x!tpu.dma_semaphore, #tpu.memory_space<semaphore_mem>> -> memref<1x!tpu.dma_semaphore, #tpu.memory_space<semaphore_mem>>
      %222 = tpu.memref_squeeze %221 : memref<1x!tpu.dma_semaphore, #tpu.memory_space<semaphore_mem>> -> memref<!tpu.dma_semaphore, #tpu.memory_space<semaphore_mem>>
      tpu.enqueue_dma source(%218 : memref<234x128xf32, #tpu.memory_space<any>>) target(%220 : memref<234x128xf32, #tpu.memory_space<vmem>>) target_semaphore(%222 : memref<!tpu.dma_semaphore, #tpu.memory_space<semaphore_mem>>)
    } else {
    }
    %c0_i32_12 = arith.constant 0 : i32
    %c0_i32_13 = arith.constant 0 : i32
    %23 = tpu.memref_slice %arg8[%9, %c0_i32_12, %c0_i32_13] : memref<2x234x128xf32, #tpu.memory_space<vmem>> -> memref<1x234x128xf32, #tpu.memory_space<vmem>>
    %24 = tpu.memref_squeeze %23 : memref<1x234x128xf32, #tpu.memory_space<vmem>> -> memref<234x128xf32, #tpu.memory_space<vmem>>
    %c0 = arith.constant 0 : index
    %c0_14 = arith.constant 0 : index
    %25 = vector.load %24[%c0, %c0_14] : memref<234x128xf32, #tpu.memory_space<vmem>>, vector<180x128xf32>
    %c0_15 = arith.constant 0 : index
    %c0_16 = arith.constant 0 : index
    %c0_17 = arith.constant 0 : index
    %26 = vector.load %arg3[%c0_15, %c0_16, %c0_17] : memref<9x128x128xf32, #tpu.memory_space<vmem>>, vector<1x128x128xf32>
    %27 = vector.shape_cast %26 : vector<1x128x128xf32> to vector<128x128xf32>
    %cst = arith.constant dense<0.000000e+00> : vector<180x128xf32>
    %28 = tpu.matmul %25, %27, %cst {dimension_numbers = #tpu.dot_dimension_numbers<[1], [0], [0], [1], [0, 0, 1, 1], [], []>} : vector<180x128xf32>, vector<128x128xf32>, vector<180x128xf32> -> vector<180x128xf32>
    %c0_18 = arith.constant 0 : index
    %c0_19 = arith.constant 0 : index
    %29 = vector.load %arg10[%c0_18, %c0_19] : memref<180x128xf32, #tpu.memory_space<vmem>>, vector<180x128xf32>
    tpu.vector_store %arg10[%c0_18, %c0_19], %28 {strides = array<i32>} : memref<180x128xf32, #tpu.memory_space<vmem>>, vector<180x128xf32>,
    %c0_i32_20 = arith.constant 0 : i32
    %c0_i32_21 = arith.constant 0 : i32
    %30 = tpu.memref_slice %arg8[%9, %c0_i32_20, %c0_i32_21] : memref<2x234x128xf32, #tpu.memory_space<vmem>> -> memref<1x234x128xf32, #tpu.memory_space<vmem>>
    %31 = tpu.memref_squeeze %30 : memref<1x234x128xf32, #tpu.memory_space<vmem>> -> memref<234x128xf32, #tpu.memory_space<vmem>>
    %c1 = arith.constant 1 : index
    %c0_22 = arith.constant 0 : index
    %32 = vector.load %31[%c1, %c0_22] : memref<234x128xf32, #tpu.memory_space<vmem>>, vector<180x128xf32>
    %c1_23 = arith.constant 1 : index
    %c0_24 = arith.constant 0 : index
    %c0_25 = arith.constant 0 : index
    %33 = vector.load %arg3[%c1_23, %c0_24, %c0_25] : memref<9x128x128xf32, #tpu.memory_space<vmem>>, vector<1x128x128xf32>
    %34 = vector.shape_cast %33 : vector<1x128x128xf32> to vector<128x128xf32>
    %cst_26 = arith.constant dense<0.000000e+00> : vector<180x128xf32>
    %35 = tpu.matmul %32, %34, %cst_26 {dimension_numbers = #tpu.dot_dimension_numbers<[1], [0], [0], [1], [0, 0, 1, 1], [], []>} : vector<180x128xf32>, vector<128x128xf32>, vector<180x128xf32> -> vector<180x128xf32>
    %c0_27 = arith.constant 0 : index
    %c0_28 = arith.constant 0 : index
    %36 = vector.load %arg10[%c0_27, %c0_28] : memref<180x128xf32, #tpu.memory_space<vmem>>, vector<180x128xf32>
    %37 = arith.addf %36, %35 : vector<180x128xf32>
    %c0_29 = arith.constant 0 : index
    %c0_30 = arith.constant 0 : index
    %38 = vector.load %arg10[%c0_29, %c0_30] : memref<180x128xf32, #tpu.memory_space<vmem>>, vector<180x128xf32>
    tpu.vector_store %arg10[%c0_29, %c0_30], %37 {strides = array<i32>} : memref<180x128xf32, #tpu.memory_space<vmem>>, vector<180x128xf32>,
    %c0_i32_31 = arith.constant 0 : i32
    %c0_i32_32 = arith.constant 0 : i32
    %39 = tpu.memref_slice %arg8[%9, %c0_i32_31, %c0_i32_32] : memref<2x234x128xf32, #tpu.memory_space<vmem>> -> memref<1x234x128xf32, #tpu.memory_space<vmem>>
    %40 = tpu.memref_squeeze %39 : memref<1x234x128xf32, #tpu.memory_space<vmem>> -> memref<234x128xf32, #tpu.memory_space<vmem>>
    %c2 = arith.constant 2 : index
    %c0_33 = arith.constant 0 : index
    %41 = vector.load %40[%c2, %c0_33] : memref<234x128xf32, #tpu.memory_space<vmem>>, vector<180x128xf32>
    %c2_34 = arith.constant 2 : index
    %c0_35 = arith.constant 0 : index
    %c0_36 = arith.constant 0 : index
    %42 = vector.load %arg3[%c2_34, %c0_35, %c0_36] : memref<9x128x128xf32, #tpu.memory_space<vmem>>, vector<1x128x128xf32>
    %43 = vector.shape_cast %42 : vector<1x128x128xf32> to vector<128x128xf32>
    %cst_37 = arith.constant dense<0.000000e+00> : vector<180x128xf32>
    %44 = tpu.matmul %41, %43, %cst_37 {dimension_numbers = #tpu.dot_dimension_numbers<[1], [0], [0], [1], [0, 0, 1, 1], [], []>} : vector<180x128xf32>, vector<128x128xf32>, vector<180x128xf32> -> vector<180x128xf32>
    %c0_38 = arith.constant 0 : index
    %c0_39 = arith.constant 0 : index
    %45 = vector.load %arg10[%c0_38, %c0_39] : memref<180x128xf32, #tpu.memory_space<vmem>>, vector<180x128xf32>
    %46 = arith.addf %45, %44 : vector<180x128xf32>
    %c0_40 = arith.constant 0 : index
    %c0_41 = arith.constant 0 : index
    %47 = vector.load %arg10[%c0_40, %c0_41] : memref<180x128xf32, #tpu.memory_space<vmem>>, vector<180x128xf32>
    tpu.vector_store %arg10[%c0_40, %c0_41], %46 {strides = array<i32>} : memref<180x128xf32, #tpu.memory_space<vmem>>, vector<180x128xf32>,
    %c0_i32_42 = arith.constant 0 : i32
    %c0_i32_43 = arith.constant 0 : i32
    %48 = tpu.memref_slice %arg8[%9, %c0_i32_42, %c0_i32_43] : memref<2x234x128xf32, #tpu.memory_space<vmem>> -> memref<1x234x128xf32, #tpu.memory_space<vmem>>
    %49 = tpu.memref_squeeze %48 : memref<1x234x128xf32, #tpu.memory_space<vmem>> -> memref<234x128xf32, #tpu.memory_space<vmem>>
    %c18 = arith.constant 18 : index
    %c0_44 = arith.constant 0 : index
    %50 = vector.load %49[%c18, %c0_44] : memref<234x128xf32, #tpu.memory_space<vmem>>, vector<180x128xf32>
    %c3 = arith.constant 3 : index
    %c0_45 = arith.constant 0 : index
    %c0_46 = arith.constant 0 : index
    %51 = vector.load %arg3[%c3, %c0_45, %c0_46] : memref<9x128x128xf32, #tpu.memory_space<vmem>>, vector<1x128x128xf32>
    %52 = vector.shape_cast %51 : vector<1x128x128xf32> to vector<128x128xf32>
    %cst_47 = arith.constant dense<0.000000e+00> : vector<180x128xf32>
    %53 = tpu.matmul %50, %52, %cst_47 {dimension_numbers = #tpu.dot_dimension_numbers<[1], [0], [0], [1], [0, 0, 1, 1], [], []>} : vector<180x128xf32>, vector<128x128xf32>, vector<180x128xf32> -> vector<180x128xf32>
    %c0_48 = arith.constant 0 : index
    %c0_49 = arith.constant 0 : index
    %54 = vector.load %arg10[%c0_48, %c0_49] : memref<180x128xf32, #tpu.memory_space<vmem>>, vector<180x128xf32>
    %55 = arith.addf %54, %53 : vector<180x128xf32>
    %c0_50 = arith.constant 0 : index
    %c0_51 = arith.constant 0 : index
    %56 = vector.load %arg10[%c0_50, %c0_51] : memref<180x128xf32, #tpu.memory_space<vmem>>, vector<180x128xf32>
    tpu.vector_store %arg10[%c0_50, %c0_51], %55 {strides = array<i32>} : memref<180x128xf32, #tpu.memory_space<vmem>>, vector<180x128xf32>,
    %c0_i32_52 = arith.constant 0 : i32
    %c0_i32_53 = arith.constant 0 : i32
    %57 = tpu.memref_slice %arg8[%9, %c0_i32_52, %c0_i32_53] : memref<2x234x128xf32, #tpu.memory_space<vmem>> -> memref<1x234x128xf32, #tpu.memory_space<vmem>>
    %58 = tpu.memref_squeeze %57 : memref<1x234x128xf32, #tpu.memory_space<vmem>> -> memref<234x128xf32, #tpu.memory_space<vmem>>
    %c19 = arith.constant 19 : index
    %c0_54 = arith.constant 0 : index
    %59 = vector.load %58[%c19, %c0_54] : memref<234x128xf32, #tpu.memory_space<vmem>>, vector<180x128xf32>
    %c4 = arith.constant 4 : index
    %c0_55 = arith.constant 0 : index
    %c0_56 = arith.constant 0 : index
    %60 = vector.load %arg3[%c4, %c0_55, %c0_56] : memref<9x128x128xf32, #tpu.memory_space<vmem>>, vector<1x128x128xf32>
    %61 = vector.shape_cast %60 : vector<1x128x128xf32> to vector<128x128xf32>
    %cst_57 = arith.constant dense<0.000000e+00> : vector<180x128xf32>
    %62 = tpu.matmul %59, %61, %cst_57 {dimension_numbers = #tpu.dot_dimension_numbers<[1], [0], [0], [1], [0, 0, 1, 1], [], []>} : vector<180x128xf32>, vector<128x128xf32>, vector<180x128xf32> -> vector<180x128xf32>
    %c0_58 = arith.constant 0 : index
    %c0_59 = arith.constant 0 : index
    %63 = vector.load %arg10[%c0_58, %c0_59] : memref<180x128xf32, #tpu.memory_space<vmem>>, vector<180x128xf32>
    %64 = arith.addf %63, %62 : vector<180x128xf32>
    %c0_60 = arith.constant 0 : index
    %c0_61 = arith.constant 0 : index
    %65 = vector.load %arg10[%c0_60, %c0_61] : memref<180x128xf32, #tpu.memory_space<vmem>>, vector<180x128xf32>
    tpu.vector_store %arg10[%c0_60, %c0_61], %64 {strides = array<i32>} : memref<180x128xf32, #tpu.memory_space<vmem>>, vector<180x128xf32>,
    %c0_i32_62 = arith.constant 0 : i32
    %c0_i32_63 = arith.constant 0 : i32
    %66 = tpu.memref_slice %arg8[%9, %c0_i32_62, %c0_i32_63] : memref<2x234x128xf32, #tpu.memory_space<vmem>> -> memref<1x234x128xf32, #tpu.memory_space<vmem>>
    %67 = tpu.memref_squeeze %66 : memref<1x234x128xf32, #tpu.memory_space<vmem>> -> memref<234x128xf32, #tpu.memory_space<vmem>>
    %c20 = arith.constant 20 : index
    %c0_64 = arith.constant 0 : index
    %68 = vector.load %67[%c20, %c0_64] : memref<234x128xf32, #tpu.memory_space<vmem>>, vector<180x128xf32>
    %c5 = arith.constant 5 : index
    %c0_65 = arith.constant 0 : index
    %c0_66 = arith.constant 0 : index
    %69 = vector.load %arg3[%c5, %c0_65, %c0_66] : memref<9x128x128xf32, #tpu.memory_space<vmem>>, vector<1x128x128xf32>
    %70 = vector.shape_cast %69 : vector<1x128x128xf32> to vector<128x128xf32>
    %cst_67 = arith.constant dense<0.000000e+00> : vector<180x128xf32>
    %71 = tpu.matmul %68, %70, %cst_67 {dimension_numbers = #tpu.dot_dimension_numbers<[1], [0], [0], [1], [0, 0, 1, 1], [], []>} : vector<180x128xf32>, vector<128x128xf32>, vector<180x128xf32> -> vector<180x128xf32>
    %c0_68 = arith.constant 0 : index
    %c0_69 = arith.constant 0 : index
    %72 = vector.load %arg10[%c0_68, %c0_69] : memref<180x128xf32, #tpu.memory_space<vmem>>, vector<180x128xf32>
    %73 = arith.addf %72, %71 : vector<180x128xf32>
    %c0_70 = arith.constant 0 : index
    %c0_71 = arith.constant 0 : index
    %74 = vector.load %arg10[%c0_70, %c0_71] : memref<180x128xf32, #tpu.memory_space<vmem>>, vector<180x128xf32>
    tpu.vector_store %arg10[%c0_70, %c0_71], %73 {strides = array<i32>} : memref<180x128xf32, #tpu.memory_space<vmem>>, vector<180x128xf32>,
    %c0_i32_72 = arith.constant 0 : i32
    %c0_i32_73 = arith.constant 0 : i32
    %75 = tpu.memref_slice %arg8[%9, %c0_i32_72, %c0_i32_73] : memref<2x234x128xf32, #tpu.memory_space<vmem>> -> memref<1x234x128xf32, #tpu.memory_space<vmem>>
    %76 = tpu.memref_squeeze %75 : memref<1x234x128xf32, #tpu.memory_space<vmem>> -> memref<234x128xf32, #tpu.memory_space<vmem>>
    %c36 = arith.constant 36 : index
    %c0_74 = arith.constant 0 : index
    %77 = vector.load %76[%c36, %c0_74] : memref<234x128xf32, #tpu.memory_space<vmem>>, vector<180x128xf32>
    %c6 = arith.constant 6 : index
    %c0_75 = arith.constant 0 : index
    %c0_76 = arith.constant 0 : index
    %78 = vector.load %arg3[%c6, %c0_75, %c0_76] : memref<9x128x128xf32, #tpu.memory_space<vmem>>, vector<1x128x128xf32>
    %79 = vector.shape_cast %78 : vector<1x128x128xf32> to vector<128x128xf32>
    %cst_77 = arith.constant dense<0.000000e+00> : vector<180x128xf32>
    %80 = tpu.matmul %77, %79, %cst_77 {dimension_numbers = #tpu.dot_dimension_numbers<[1], [0], [0], [1], [0, 0, 1, 1], [], []>} : vector<180x128xf32>, vector<128x128xf32>, vector<180x128xf32> -> vector<180x128xf32>
    %c0_78 = arith.constant 0 : index
    %c0_79 = arith.constant 0 : index
    %81 = vector.load %arg10[%c0_78, %c0_79] : memref<180x128xf32, #tpu.memory_space<vmem>>, vector<180x128xf32>
    %82 = arith.addf %81, %80 : vector<180x128xf32>
    %c0_80 = arith.constant 0 : index
    %c0_81 = arith.constant 0 : index
    %83 = vector.load %arg10[%c0_80, %c0_81] : memref<180x128xf32, #tpu.memory_space<vmem>>, vector<180x128xf32>
    tpu.vector_store %arg10[%c0_80, %c0_81], %82 {strides = array<i32>} : memref<180x128xf32, #tpu.memory_space<vmem>>, vector<180x128xf32>,
    %c0_i32_82 = arith.constant 0 : i32
    %c0_i32_83 = arith.constant 0 : i32
    %84 = tpu.memref_slice %arg8[%9, %c0_i32_82, %c0_i32_83] : memref<2x234x128xf32, #tpu.memory_space<vmem>> -> memref<1x234x128xf32, #tpu.memory_space<vmem>>
    %85 = tpu.memref_squeeze %84 : memref<1x234x128xf32, #tpu.memory_space<vmem>> -> memref<234x128xf32, #tpu.memory_space<vmem>>
    %c37 = arith.constant 37 : index
    %c0_84 = arith.constant 0 : index
    %86 = vector.load %85[%c37, %c0_84] : memref<234x128xf32, #tpu.memory_space<vmem>>, vector<180x128xf32>
    %c7 = arith.constant 7 : index
    %c0_85 = arith.constant 0 : index
    %c0_86 = arith.constant 0 : index
    %87 = vector.load %arg3[%c7, %c0_85, %c0_86] : memref<9x128x128xf32, #tpu.memory_space<vmem>>, vector<1x128x128xf32>
    %88 = vector.shape_cast %87 : vector<1x128x128xf32> to vector<128x128xf32>
    %cst_87 = arith.constant dense<0.000000e+00> : vector<180x128xf32>
    %89 = tpu.matmul %86, %88, %cst_87 {dimension_numbers = #tpu.dot_dimension_numbers<[1], [0], [0], [1], [0, 0, 1, 1], [], []>} : vector<180x128xf32>, vector<128x128xf32>, vector<180x128xf32> -> vector<180x128xf32>
    %c0_88 = arith.constant 0 : index
    %c0_89 = arith.constant 0 : index
    %90 = vector.load %arg10[%c0_88, %c0_89] : memref<180x128xf32, #tpu.memory_space<vmem>>, vector<180x128xf32>
    %91 = arith.addf %90, %89 : vector<180x128xf32>
    %c0_90 = arith.constant 0 : index
    %c0_91 = arith.constant 0 : index
    %92 = vector.load %arg10[%c0_90, %c0_91] : memref<180x128xf32, #tpu.memory_space<vmem>>, vector<180x128xf32>
    tpu.vector_store %arg10[%c0_90, %c0_91], %91 {strides = array<i32>} : memref<180x128xf32, #tpu.memory_space<vmem>>, vector<180x128xf32>,
    %c0_i32_92 = arith.constant 0 : i32
    %c0_i32_93 = arith.constant 0 : i32
    %93 = tpu.memref_slice %arg8[%9, %c0_i32_92, %c0_i32_93] : memref<2x234x128xf32, #tpu.memory_space<vmem>> -> memref<1x234x128xf32, #tpu.memory_space<vmem>>
    %94 = tpu.memref_squeeze %93 : memref<1x234x128xf32, #tpu.memory_space<vmem>> -> memref<234x128xf32, #tpu.memory_space<vmem>>
    %c38 = arith.constant 38 : index
    %c0_94 = arith.constant 0 : index
    %95 = vector.load %94[%c38, %c0_94] : memref<234x128xf32, #tpu.memory_space<vmem>>, vector<180x128xf32>
    %c8 = arith.constant 8 : index
    %c0_95 = arith.constant 0 : index
    %c0_96 = arith.constant 0 : index
    %96 = vector.load %arg3[%c8, %c0_95, %c0_96] : memref<9x128x128xf32, #tpu.memory_space<vmem>>, vector<1x128x128xf32>
    %97 = vector.shape_cast %96 : vector<1x128x128xf32> to vector<128x128xf32>
    %cst_97 = arith.constant dense<0.000000e+00> : vector<180x128xf32>
    %98 = tpu.matmul %95, %97, %cst_97 {dimension_numbers = #tpu.dot_dimension_numbers<[1], [0], [0], [1], [0, 0, 1, 1], [], []>} : vector<180x128xf32>, vector<128x128xf32>, vector<180x128xf32> -> vector<180x128xf32>
    %c0_98 = arith.constant 0 : index
    %c0_99 = arith.constant 0 : index
    %99 = vector.load %arg10[%c0_98, %c0_99] : memref<180x128xf32, #tpu.memory_space<vmem>>, vector<180x128xf32>
    %100 = arith.addf %99, %98 : vector<180x128xf32>
    %c0_100 = arith.constant 0 : index
    %c0_101 = arith.constant 0 : index
    %101 = vector.load %arg10[%c0_100, %c0_101] : memref<180x128xf32, #tpu.memory_space<vmem>>, vector<180x128xf32>
    tpu.vector_store %arg10[%c0_100, %c0_101], %100 {strides = array<i32>} : memref<180x128xf32, #tpu.memory_space<vmem>>, vector<180x128xf32>,
    %102 = tpu.iota {dimensions = array<i32: 0>} : vector<180x1xi32>
    %c18_i32 = arith.constant 18 : i32
    %c0_i32_102 = arith.constant 0 : i32
    %103 = arith.cmpi eq, %c18_i32, %c0_i32_102 : i32
    %c1_i32_103 = arith.constant 1 : i32
    %104 = arith.select %103, %c1_i32_103, %c18_i32 : i32
    %105 = vector.broadcast %104 : i32 to vector<180x1xi32>
    %106 = arith.remsi %102, %105 : vector<180x1xi32>
    %c0_i32_104 = arith.constant 0 : i32
    %107 = vector.broadcast %c0_i32_104 : i32 to vector<180x1xi32>
    %108 = arith.cmpi ne, %106, %107 : vector<180x1xi32>
    %c0_i32_105 = arith.constant 0 : i32
    %109 = vector.broadcast %c0_i32_105 : i32 to vector<180x1xi32>
    %110 = arith.cmpi slt, %106, %109 : vector<180x1xi32>
    %c0_i32_106 = arith.constant 0 : i32
    %111 = arith.cmpi slt, %104, %c0_i32_106 : i32
    %112 = vector.broadcast %111 : i1 to vector<180x1xi1>
    %113 = vector.broadcast %112 : vector<180x1xi1> to vector<180x1xi1>
    %114 = arith.xori %110, %113 : vector<180x1xi1>
    %115 = arith.andi %114, %108 : vector<180x1xi1>
    %116 = vector.broadcast %104 : i32 to vector<180x1xi32>
    %117 = arith.addi %106, %116 : vector<180x1xi32>
    %118 = arith.select %115, %117, %106 : vector<180x1xi1>, vector<180x1xi32>
    %c0_107 = arith.constant 0 : index
    %c0_108 = arith.constant 0 : index
    %119 = vector.load %arg10[%c0_107, %c0_108] : memref<180x128xf32, #tpu.memory_space<vmem>>, vector<180x128xf32>
    %c0_109 = arith.constant 0 : index
    %c0_110 = arith.constant 0 : index
    %120 = vector.load %arg4[%c0_109, %c0_110] : memref<1x128xf32, #tpu.memory_space<vmem>>, vector<1x128xf32>
    %121 = vector.broadcast %120 : vector<1x128xf32> to vector<180x128xf32>
    %122 = arith.addf %119, %121 : vector<180x128xf32>
    %cst_111 = arith.constant 0.000000e+00 : f32
    %123 = vector.broadcast %cst_111 : f32 to vector<180x128xf32>
    %124 = arith.maximumf %122, %123 : vector<180x128xf32>
    %c16_i32 = arith.constant 16 : i32
    %125 = vector.broadcast %c16_i32 : i32 to vector<180x1xi32>
    %126 = arith.cmpi slt, %118, %125 : vector<180x1xi32>
    %cst_112 = arith.constant 0.000000e+00 : f32
    %127 = vector.shape_cast %126 : vector<180x1xi1> to vector<180x1xi1>
    %128 = vector.broadcast %127 : vector<180x1xi1> to vector<180x128xi1>
    %129 = vector.broadcast %cst_112 : f32 to vector<180x128xf32>
    %130 = arith.select %128, %124, %129 : vector<180x128xi1>, vector<180x128xf32>
    %c8_113 = arith.constant 8 : index
    %c0_114 = arith.constant 0 : index
    %131 = vector.load %arg11[%c8_113, %c0_114] : memref<196x128xf32, #tpu.memory_space<vmem>>, vector<180x128xf32>
    tpu.vector_store %arg11[%c8_113, %c0_114], %130 {strides = array<i32>} : memref<196x128xf32, #tpu.memory_space<vmem>>, vector<180x128xf32>,
    %cst_115 = arith.constant 0.000000e+00 : f32
    %132 = vector.broadcast %cst_115 : f32 to vector<1x128xf32>
    %c7_116 = arith.constant 7 : index
    %c0_117 = arith.constant 0 : index
    %133 = vector.load %arg11[%c7_116, %c0_117] : memref<196x128xf32, #tpu.memory_space<vmem>>, vector<1x128xf32>
    tpu.vector_store %arg11[%c7_116, %c0_117], %132 {strides = array<i32>} : memref<196x128xf32, #tpu.memory_space<vmem>>, vector<1x128xf32>,
    %c0_i32_118 = arith.constant 0 : i32
    %134 = arith.cmpi eq, %arg1, %c0_i32_118 : i32
    %135 = arith.extui %134 : i1 to i32
    %c0_i32_119 = arith.constant 0 : i32
    %136 = arith.cmpi ne, %135, %c0_i32_119 : i32
    scf.if %136 {
      %cst_215 = arith.constant 0.000000e+00 : f32
      %214 = vector.broadcast %cst_215 : f32 to vector<18x128xf32>
      %c8_216 = arith.constant 8 : index
      %c0_217 = arith.constant 0 : index
      %215 = vector.load %arg11[%c8_216, %c0_217] : memref<196x128xf32, #tpu.memory_space<vmem>>, vector<18x128xf32>
      tpu.vector_store %arg11[%c8_216, %c0_217], %214 {strides = array<i32>} : memref<196x128xf32, #tpu.memory_space<vmem>>, vector<18x128xf32>,
    } else {
    }
    %c1_i32_120 = arith.constant 1 : i32
    %137 = arith.cmpi eq, %arg1, %c1_i32_120 : i32
    %138 = arith.extui %137 : i1 to i32
    %c0_i32_121 = arith.constant 0 : i32
    %139 = arith.cmpi ne, %138, %c0_i32_121 : i32
    scf.if %139 {
      %cst_215 = arith.constant 0.000000e+00 : f32
      %214 = vector.broadcast %cst_215 : f32 to vector<18x128xf32>
      %c170 = arith.constant 170 : index
      %c0_216 = arith.constant 0 : index
      %215 = vector.load %arg11[%c170, %c0_216] : memref<196x128xf32, #tpu.memory_space<vmem>>, vector<18x128xf32>
      tpu.vector_store %arg11[%c170, %c0_216], %214 {strides = array<i32>} : memref<196x128xf32, #tpu.memory_space<vmem>>, vector<18x128xf32>,
    } else {
    }
    %c7_122 = arith.constant 7 : index
    %c0_123 = arith.constant 0 : index
    %140 = vector.load %arg11[%c7_122, %c0_123] : memref<196x128xf32, #tpu.memory_space<vmem>>, vector<144x128xf32>
    %c0_124 = arith.constant 0 : index
    %c0_125 = arith.constant 0 : index
    %c0_126 = arith.constant 0 : index
    %141 = vector.load %arg5[%c0_124, %c0_125, %c0_126] : memref<9x128x128xf32, #tpu.memory_space<vmem>>, vector<1x128x128xf32>
    %142 = vector.shape_cast %141 : vector<1x128x128xf32> to vector<128x128xf32>
    %cst_127 = arith.constant dense<0.000000e+00> : vector<144x128xf32>
    %143 = tpu.matmul %140, %142, %cst_127 {dimension_numbers = #tpu.dot_dimension_numbers<[1], [0], [0], [1], [0, 0, 1, 1], [], []>} : vector<144x128xf32>, vector<128x128xf32>, vector<144x128xf32> -> vector<144x128xf32>
    %c0_128 = arith.constant 0 : index
    %c0_129 = arith.constant 0 : index
    %144 = vector.load %arg10[%c0_128, %c0_129] : memref<180x128xf32, #tpu.memory_space<vmem>>, vector<144x128xf32>
    tpu.vector_store %arg10[%c0_128, %c0_129], %143 {strides = array<i32>} : memref<180x128xf32, #tpu.memory_space<vmem>>, vector<144x128xf32>,
    %c8_130 = arith.constant 8 : index
    %c0_131 = arith.constant 0 : index
    %145 = vector.load %arg11[%c8_130, %c0_131] : memref<196x128xf32, #tpu.memory_space<vmem>>, vector<144x128xf32>
    %c1_132 = arith.constant 1 : index
    %c0_133 = arith.constant 0 : index
    %c0_134 = arith.constant 0 : index
    %146 = vector.load %arg5[%c1_132, %c0_133, %c0_134] : memref<9x128x128xf32, #tpu.memory_space<vmem>>, vector<1x128x128xf32>
    %147 = vector.shape_cast %146 : vector<1x128x128xf32> to vector<128x128xf32>
    %cst_135 = arith.constant dense<0.000000e+00> : vector<144x128xf32>
    %148 = tpu.matmul %145, %147, %cst_135 {dimension_numbers = #tpu.dot_dimension_numbers<[1], [0], [0], [1], [0, 0, 1, 1], [], []>} : vector<144x128xf32>, vector<128x128xf32>, vector<144x128xf32> -> vector<144x128xf32>
    %c0_136 = arith.constant 0 : index
    %c0_137 = arith.constant 0 : index
    %149 = vector.load %arg10[%c0_136, %c0_137] : memref<180x128xf32, #tpu.memory_space<vmem>>, vector<144x128xf32>
    %150 = arith.addf %149, %148 : vector<144x128xf32>
    %c0_138 = arith.constant 0 : index
    %c0_139 = arith.constant 0 : index
    %151 = vector.load %arg10[%c0_138, %c0_139] : memref<180x128xf32, #tpu.memory_space<vmem>>, vector<144x128xf32>
    tpu.vector_store %arg10[%c0_138, %c0_139], %150 {strides = array<i32>} : memref<180x128xf32, #tpu.memory_space<vmem>>, vector<144x128xf32>,
    %c9 = arith.constant 9 : index
    %c0_140 = arith.constant 0 : index
    %152 = vector.load %arg11[%c9, %c0_140] : memref<196x128xf32, #tpu.memory_space<vmem>>, vector<144x128xf32>
    %c2_141 = arith.constant 2 : index
    %c0_142 = arith.constant 0 : index
    %c0_143 = arith.constant 0 : index
    %153 = vector.load %arg5[%c2_141, %c0_142, %c0_143] : memref<9x128x128xf32, #tpu.memory_space<vmem>>, vector<1x128x128xf32>
    %154 = vector.shape_cast %153 : vector<1x128x128xf32> to vector<128x128xf32>
    %cst_144 = arith.constant dense<0.000000e+00> : vector<144x128xf32>
    %155 = tpu.matmul %152, %154, %cst_144 {dimension_numbers = #tpu.dot_dimension_numbers<[1], [0], [0], [1], [0, 0, 1, 1], [], []>} : vector<144x128xf32>, vector<128x128xf32>, vector<144x128xf32> -> vector<144x128xf32>
    %c0_145 = arith.constant 0 : index
    %c0_146 = arith.constant 0 : index
    %156 = vector.load %arg10[%c0_145, %c0_146] : memref<180x128xf32, #tpu.memory_space<vmem>>, vector<144x128xf32>
    %157 = arith.addf %156, %155 : vector<144x128xf32>
    %c0_147 = arith.constant 0 : index
    %c0_148 = arith.constant 0 : index
    %158 = vector.load %arg10[%c0_147, %c0_148] : memref<180x128xf32, #tpu.memory_space<vmem>>, vector<144x128xf32>
    tpu.vector_store %arg10[%c0_147, %c0_148], %157 {strides = array<i32>} : memref<180x128xf32, #tpu.memory_space<vmem>>, vector<144x128xf32>,
    %c25 = arith.constant 25 : index
    %c0_149 = arith.constant 0 : index
    %159 = vector.load %arg11[%c25, %c0_149] : memref<196x128xf32, #tpu.memory_space<vmem>>, vector<144x128xf32>
    %c3_150 = arith.constant 3 : index
    %c0_151 = arith.constant 0 : index
    %c0_152 = arith.constant 0 : index
    %160 = vector.load %arg5[%c3_150, %c0_151, %c0_152] : memref<9x128x128xf32, #tpu.memory_space<vmem>>, vector<1x128x128xf32>
    %161 = vector.shape_cast %160 : vector<1x128x128xf32> to vector<128x128xf32>
    %cst_153 = arith.constant dense<0.000000e+00> : vector<144x128xf32>
    %162 = tpu.matmul %159, %161, %cst_153 {dimension_numbers = #tpu.dot_dimension_numbers<[1], [0], [0], [1], [0, 0, 1, 1], [], []>} : vector<144x128xf32>, vector<128x128xf32>, vector<144x128xf32> -> vector<144x128xf32>
    %c0_154 = arith.constant 0 : index
    %c0_155 = arith.constant 0 : index
    %163 = vector.load %arg10[%c0_154, %c0_155] : memref<180x128xf32, #tpu.memory_space<vmem>>, vector<144x128xf32>
    %164 = arith.addf %163, %162 : vector<144x128xf32>
    %c0_156 = arith.constant 0 : index
    %c0_157 = arith.constant 0 : index
    %165 = vector.load %arg10[%c0_156, %c0_157] : memref<180x128xf32, #tpu.memory_space<vmem>>, vector<144x128xf32>
    tpu.vector_store %arg10[%c0_156, %c0_157], %164 {strides = array<i32>} : memref<180x128xf32, #tpu.memory_space<vmem>>, vector<144x128xf32>,
    %c26 = arith.constant 26 : index
    %c0_158 = arith.constant 0 : index
    %166 = vector.load %arg11[%c26, %c0_158] : memref<196x128xf32, #tpu.memory_space<vmem>>, vector<144x128xf32>
    %c4_159 = arith.constant 4 : index
    %c0_160 = arith.constant 0 : index
    %c0_161 = arith.constant 0 : index
    %167 = vector.load %arg5[%c4_159, %c0_160, %c0_161] : memref<9x128x128xf32, #tpu.memory_space<vmem>>, vector<1x128x128xf32>
    %168 = vector.shape_cast %167 : vector<1x128x128xf32> to vector<128x128xf32>
    %cst_162 = arith.constant dense<0.000000e+00> : vector<144x128xf32>
    %169 = tpu.matmul %166, %168, %cst_162 {dimension_numbers = #tpu.dot_dimension_numbers<[1], [0], [0], [1], [0, 0, 1, 1], [], []>} : vector<144x128xf32>, vector<128x128xf32>, vector<144x128xf32> -> vector<144x128xf32>
    %c0_163 = arith.constant 0 : index
    %c0_164 = arith.constant 0 : index
    %170 = vector.load %arg10[%c0_163, %c0_164] : memref<180x128xf32, #tpu.memory_space<vmem>>, vector<144x128xf32>
    %171 = arith.addf %170, %169 : vector<144x128xf32>
    %c0_165 = arith.constant 0 : index
    %c0_166 = arith.constant 0 : index
    %172 = vector.load %arg10[%c0_165, %c0_166] : memref<180x128xf32, #tpu.memory_space<vmem>>, vector<144x128xf32>
    tpu.vector_store %arg10[%c0_165, %c0_166], %171 {strides = array<i32>} : memref<180x128xf32, #tpu.memory_space<vmem>>, vector<144x128xf32>,
    %c27 = arith.constant 27 : index
    %c0_167 = arith.constant 0 : index
    %173 = vector.load %arg11[%c27, %c0_167] : memref<196x128xf32, #tpu.memory_space<vmem>>, vector<144x128xf32>
    %c5_168 = arith.constant 5 : index
    %c0_169 = arith.constant 0 : index
    %c0_170 = arith.constant 0 : index
    %174 = vector.load %arg5[%c5_168, %c0_169, %c0_170] : memref<9x128x128xf32, #tpu.memory_space<vmem>>, vector<1x128x128xf32>
    %175 = vector.shape_cast %174 : vector<1x128x128xf32> to vector<128x128xf32>
    %cst_171 = arith.constant dense<0.000000e+00> : vector<144x128xf32>
    %176 = tpu.matmul %173, %175, %cst_171 {dimension_numbers = #tpu.dot_dimension_numbers<[1], [0], [0], [1], [0, 0, 1, 1], [], []>} : vector<144x128xf32>, vector<128x128xf32>, vector<144x128xf32> -> vector<144x128xf32>
    %c0_172 = arith.constant 0 : index
    %c0_173 = arith.constant 0 : index
    %177 = vector.load %arg10[%c0_172, %c0_173] : memref<180x128xf32, #tpu.memory_space<vmem>>, vector<144x128xf32>
    %178 = arith.addf %177, %176 : vector<144x128xf32>
    %c0_174 = arith.constant 0 : index
    %c0_175 = arith.constant 0 : index
    %179 = vector.load %arg10[%c0_174, %c0_175] : memref<180x128xf32, #tpu.memory_space<vmem>>, vector<144x128xf32>
    tpu.vector_store %arg10[%c0_174, %c0_175], %178 {strides = array<i32>} : memref<180x128xf32, #tpu.memory_space<vmem>>, vector<144x128xf32>,
    %c43 = arith.constant 43 : index
    %c0_176 = arith.constant 0 : index
    %180 = vector.load %arg11[%c43, %c0_176] : memref<196x128xf32, #tpu.memory_space<vmem>>, vector<144x128xf32>
    %c6_177 = arith.constant 6 : index
    %c0_178 = arith.constant 0 : index
    %c0_179 = arith.constant 0 : index
    %181 = vector.load %arg5[%c6_177, %c0_178, %c0_179] : memref<9x128x128xf32, #tpu.memory_space<vmem>>, vector<1x128x128xf32>
    %182 = vector.shape_cast %181 : vector<1x128x128xf32> to vector<128x128xf32>
    %cst_180 = arith.constant dense<0.000000e+00> : vector<144x128xf32>
    %183 = tpu.matmul %180, %182, %cst_180 {dimension_numbers = #tpu.dot_dimension_numbers<[1], [0], [0], [1], [0, 0, 1, 1], [], []>} : vector<144x128xf32>, vector<128x128xf32>, vector<144x128xf32> -> vector<144x128xf32>
    %c0_181 = arith.constant 0 : index
    %c0_182 = arith.constant 0 : index
    %184 = vector.load %arg10[%c0_181, %c0_182] : memref<180x128xf32, #tpu.memory_space<vmem>>, vector<144x128xf32>
    %185 = arith.addf %184, %183 : vector<144x128xf32>
    %c0_183 = arith.constant 0 : index
    %c0_184 = arith.constant 0 : index
    %186 = vector.load %arg10[%c0_183, %c0_184] : memref<180x128xf32, #tpu.memory_space<vmem>>, vector<144x128xf32>
    tpu.vector_store %arg10[%c0_183, %c0_184], %185 {strides = array<i32>} : memref<180x128xf32, #tpu.memory_space<vmem>>, vector<144x128xf32>,
    %c44 = arith.constant 44 : index
    %c0_185 = arith.constant 0 : index
    %187 = vector.load %arg11[%c44, %c0_185] : memref<196x128xf32, #tpu.memory_space<vmem>>, vector<144x128xf32>
    %c7_186 = arith.constant 7 : index
    %c0_187 = arith.constant 0 : index
    %c0_188 = arith.constant 0 : index
    %188 = vector.load %arg5[%c7_186, %c0_187, %c0_188] : memref<9x128x128xf32, #tpu.memory_space<vmem>>, vector<1x128x128xf32>
    %189 = vector.shape_cast %188 : vector<1x128x128xf32> to vector<128x128xf32>
    %cst_189 = arith.constant dense<0.000000e+00> : vector<144x128xf32>
    %190 = tpu.matmul %187, %189, %cst_189 {dimension_numbers = #tpu.dot_dimension_numbers<[1], [0], [0], [1], [0, 0, 1, 1], [], []>} : vector<144x128xf32>, vector<128x128xf32>, vector<144x128xf32> -> vector<144x128xf32>
    %c0_190 = arith.constant 0 : index
    %c0_191 = arith.constant 0 : index
    %191 = vector.load %arg10[%c0_190, %c0_191] : memref<180x128xf32, #tpu.memory_space<vmem>>, vector<144x128xf32>
    %192 = arith.addf %191, %190 : vector<144x128xf32>
    %c0_192 = arith.constant 0 : index
    %c0_193 = arith.constant 0 : index
    %193 = vector.load %arg10[%c0_192, %c0_193] : memref<180x128xf32, #tpu.memory_space<vmem>>, vector<144x128xf32>
    tpu.vector_store %arg10[%c0_192, %c0_193], %192 {strides = array<i32>} : memref<180x128xf32, #tpu.memory_space<vmem>>, vector<144x128xf32>,
    %c45 = arith.constant 45 : index
    %c0_194 = arith.constant 0 : index
    %194 = vector.load %arg11[%c45, %c0_194] : memref<196x128xf32, #tpu.memory_space<vmem>>, vector<144x128xf32>
    %c8_195 = arith.constant 8 : index
    %c0_196 = arith.constant 0 : index
    %c0_197 = arith.constant 0 : index
    %195 = vector.load %arg5[%c8_195, %c0_196, %c0_197] : memref<9x128x128xf32, #tpu.memory_space<vmem>>, vector<1x128x128xf32>
    %196 = vector.shape_cast %195 : vector<1x128x128xf32> to vector<128x128xf32>
    %cst_198 = arith.constant dense<0.000000e+00> : vector<144x128xf32>
    %197 = tpu.matmul %194, %196, %cst_198 {dimension_numbers = #tpu.dot_dimension_numbers<[1], [0], [0], [1], [0, 0, 1, 1], [], []>} : vector<144x128xf32>, vector<128x128xf32>, vector<144x128xf32> -> vector<144x128xf32>
    %c0_199 = arith.constant 0 : index
    %c0_200 = arith.constant 0 : index
    %198 = vector.load %arg10[%c0_199, %c0_200] : memref<180x128xf32, #tpu.memory_space<vmem>>, vector<144x128xf32>
    %199 = arith.addf %198, %197 : vector<144x128xf32>
    %c0_201 = arith.constant 0 : index
    %c0_202 = arith.constant 0 : index
    %200 = vector.load %arg10[%c0_201, %c0_202] : memref<180x128xf32, #tpu.memory_space<vmem>>, vector<144x128xf32>
    tpu.vector_store %arg10[%c0_201, %c0_202], %199 {strides = array<i32>} : memref<180x128xf32, #tpu.memory_space<vmem>>, vector<144x128xf32>,
    %c0_i32_203 = arith.constant 0 : i32
    %c0_i32_204 = arith.constant 0 : i32
    %201 = tpu.memref_slice %arg8[%9, %c0_i32_203, %c0_i32_204] : memref<2x234x128xf32, #tpu.memory_space<vmem>> -> memref<1x234x128xf32, #tpu.memory_space<vmem>>
    %202 = tpu.memref_squeeze %201 : memref<1x234x128xf32, #tpu.memory_space<vmem>> -> memref<234x128xf32, #tpu.memory_space<vmem>>
    %c37_205 = arith.constant 37 : index
    %c0_206 = arith.constant 0 : index
    %203 = vector.load %202[%c37_205, %c0_206] : memref<234x128xf32, #tpu.memory_space<vmem>>, vector<144x128xf32>
    %c0_207 = arith.constant 0 : index
    %c0_208 = arith.constant 0 : index
    %204 = vector.load %arg10[%c0_207, %c0_208] : memref<180x128xf32, #tpu.memory_space<vmem>>, vector<144x128xf32>
    %c0_209 = arith.constant 0 : index
    %c0_210 = arith.constant 0 : index
    %205 = vector.load %arg6[%c0_209, %c0_210] : memref<1x128xf32, #tpu.memory_space<vmem>>, vector<1x128xf32>
    %206 = vector.broadcast %205 : vector<1x128xf32> to vector<144x128xf32>
    %207 = arith.addf %204, %206 : vector<144x128xf32>
    %208 = arith.addf %207, %203 : vector<144x128xf32>
    %cst_211 = arith.constant 0.000000e+00 : f32
    %209 = vector.broadcast %cst_211 : f32 to vector<144x128xf32>
    %210 = arith.maximumf %208, %209 : vector<144x128xf32>
    %c0_212 = arith.constant 0 : index
    %c0_213 = arith.constant 0 : index
    %c0_214 = arith.constant 0 : index
    %211 = vector.load %arg7[%c0_212, %c0_213, %c0_214] : memref<1x144x128xf32, #tpu.memory_space<vmem>>, vector<1x144x128xf32>
    %212 = vector.shape_cast %211 : vector<1x144x128xf32> to vector<144x128xf32>
    %213 = vector.shape_cast %210 : vector<144x128xf32> to vector<1x144x128xf32>
    tpu.vector_store %arg7[%c0_212, %c0_213, %c0_214], %213 {strides = array<i32>} : memref<1x144x128xf32, #tpu.memory_space<vmem>>, vector<1x144x128xf32>,
    return
  }
  func.func @transform_1(%arg0: i32, %arg1: i32) -> (i32, i32, i32) {
    %c0_i32 = arith.constant 0 : i32
    %c0_i32_0 = arith.constant 0 : i32
    %c0_i32_1 = arith.constant 0 : i32
    %c0_i32_2 = arith.constant 0 : i32
    return %c0_i32, %c0_i32_0, %c0_i32_1 : i32, i32, i32
  }
  func.func @transform_2(%arg0: i32, %arg1: i32) -> (i32, i32) {
    %c0_i32 = arith.constant 0 : i32
    %c0_i32_0 = arith.constant 0 : i32
    %c0_i32_1 = arith.constant 0 : i32
    return %c0_i32, %c0_i32_0 : i32, i32
  }
  func.func @transform_3(%arg0: i32, %arg1: i32) -> (i32, i32, i32) {
    %c0_i32 = arith.constant 0 : i32
    %c0_i32_0 = arith.constant 0 : i32
    %c0_i32_1 = arith.constant 0 : i32
    %c0_i32_2 = arith.constant 0 : i32
    return %c0_i32, %c0_i32_0, %c0_i32_1 : i32, i32, i32
  }
  func.func @transform_4(%arg0: i32, %arg1: i32) -> (i32, i32) {
    %c0_i32 = arith.constant 0 : i32
    %c0_i32_0 = arith.constant 0 : i32
    %c0_i32_1 = arith.constant 0 : i32
    return %c0_i32, %c0_i32_0 : i32, i32
  }
  func.func @transform_5(%arg0: i32, %arg1: i32) -> (i32, i32, i32) {
    %c0_i32 = arith.constant 0 : i32
    %c0_i32_0 = arith.constant 0 : i32
    return %arg0, %arg1, %c0_i32 : i32, i32, i32
  }
}

</mosaic_0001>

<bundles_post_ra>
// kernel: tpu_custom_call.1
= control target key start
LH: loop header
LB: loop body
LE: loop exit
PB: predicated region body
PF: predicated region fallthrough
CT: control target
= control target key end

     0   :  { %s7552_s0 = inlined_call_operand.vmem [shape: f32[2,378,128], index: 0, kind: input, shape index: {}]   ;;  %s7553_s1 = inlined_call_operand.vmem [shape: f32[9,128,128], index: 1, kind: input, shape index: {}]   ;;  %s7554_s2 = inlined_call_operand.vmem [shape: f32[1,128], index: 2, kind: input, shape index: {}]   ;;  %s7555_s3 = inlined_call_operand.hbm [shape: f32[9,128,128], index: 3, kind: input, shape index: {}]   ;;  %s7556_s4 = inlined_call_operand.vmem [shape: f32[1,128], index: 4, kind: input, shape index: {}]   ;;  %s7557_s5 = inlined_call_operand.hbm [shape: f32[2,288,128], index: 5, kind: output, shape index: {}]  }
   0x1   :  { %7559 = sst [smem:[#allocation21_spill]] %s7555_s3 }
   0x2   :  { %10 = vsyncpa [#allocation7], 0 }
   0x3   :  { %11 = vsyncpa [#allocation8], 0 }
   0x4   :  { %13 = vsyncpa [#allocation8 + $0x1], 0  ;;  %s5278_s18 = smov 0   ;;  %s5280_s19 = smov 0  }
   0x5   :  { %s5282_s20 = smov 0   ;;  %s5284_s21 = smov 0  }
   0x6   :  { %s5286_s22 = smov 0   ;;  %s5288_s23 = smov 0  }
   0x7   :  { %s5290_s24 = smov 0   ;;  %s5292_s25 = smov 0  }
   0x8 LB: > { %s4786_s26 = sadd.s32 4294967295, %s5237_s25   ;;  %s4787_s27 = sadd.s32 4294967294, %s5237_s25   ;;  %s5237_s25 = sphi %s5292_s25, %s19_s25   ;;  %s5233_s24 = sphi %s5290_s24, %s7650_s24   ;;  %s5229_s23 = sphi %s5288_s23, %s7649_s23   ;;  %s5225_s22 = sphi %s5286_s22, %s7648_s22   ;;  %s5221_s21 = sphi %s5284_s21, %s7647_s21   ;;  %s5217_s20 = sphi %s5282_s20, %s7646_s20   ;;  %s5213_s19 = sphi %s5280_s19, %s7645_s19   ;;  %s5209_s18 = sphi %s5278_s18, %s7644_s18  }
   0x9   : > { %s28_s28 = sadd.s32 1, %s5229_s23  ;;  %s31_s29 = sadd.s32 1, %s5233_s24 }
   0xa   : > { %p29_p0 = scmp.ge.s32.totalorder %s28_s28, 2  ;;  %s124_s30 = sadd.s32 1, %s5217_s20 }
   0xb   : > { %p134_p1 = scmp.ne.s32.totalorder %s5217_s20, %s5213_s19  ;;  %p135_p2 = scmp.eq.s32.totalorder %s4786_s26, 3 }
   0xc   : > { %s7652_s28 = smov (%p29_p0, %s28_s28), 0  ;;  %s7654_s29 = smov (!%p29_p0, %s31_s29), %s5233_s24 }
   0xd   : > { %s120_s6 = ssub.s32 %s5229_s23, %s7652_s28  ;;  %p5330_p3 = por %p135_p2, %p134_p1 }
   0xe   : > { %p33_p4 = scmp.ge.s32.totalorder %s7654_s29, 2  ;;  %p140_p5 = scmp.ne.s32.totalorder %s5213_s19, %s5209_s18 }
   0xf   : > { %p141_p6 = scmp.eq.s32.totalorder %s4787_s27, 3  ;;  %p4788_p7 = scmp.ge.s32.totalorder %s5237_s25, 1 }
  0x10   : > { %s7656_s29 = smov (%p33_p4, %s7654_s29), 0  ;;  %p148_p9 = scmp.lt.s32.totalorder %s5237_s25, 5 }
  0x11   : > { %p5339_p8 = por %p141_p6, %p140_p5  ;;  %s119_s9 = ssub.s32 %s5233_s24, %s7656_s29 }
  0x12   : > { %s121_s10 = sor.u32 %s120_s6, %s119_s9  ;;  %p5346_p10 = pnand %p4788_p7, %p148_p9 }
  0x13   : > { %p122_p11 = scmp.eq.s32.totalorder %s121_s10, 0  ;;  %p5350_p12 = scmp.eq.s32.totalorder %s4786_s26, 0 }
  0x14   : > { %p5020_p13 = pneg %p5346_p10  ;;  %s7564_s3 = sld [smem:[#allocation21_spill]] }
  0x15   : > { %s5360_s16 = scalar_select %p122_p11, %s5217_s20, %s124_s30  }
  0x16   : > { %s5239_s17 = smov [#allocation6]   ;;  %p5021_p0 = pnand %p5350_p12, %p5020_p13 }
  0x17   : > { %s167_s27 = sshll.u32 %s5239_s17, 4  ;;  %s5240_s6 = smov 128   ;;  %s168_s27 = int_to_ptr.vmem [resolvable:$true] %s167_s27 }
  0x18   : > { %s5241_s26 = smov 8   ;;  %186 = sbr.rel (%p5346_p10) target bundleno = 1481 (0x5c9), region = 36 }
  0x1a   : > { %s165_s15 = sshll.u32 %s7564_s3, 4  ;;  %s166_s15 = int_to_ptr.hbm [resolvable:$true] %s165_s15 }
  0x1b   : > { %5023 = dma.hbm_to_vmem [thread:$0]  (!%p5021_p0), %s166_s15, 18432, %s168_s27, [#allocation7], %s5240_s6, %s5240_s6, %s5241_s26  }
  0x1d   : > { %5198 = dma.done.wait (%p5350_p12), [#allocation7], 18432  }
  0x1e   : > { %5200 = vsyncadd (%p5350_p12), [#allocation7], 4294948864  ;;  %s7558_s30 = sand.u32 1, %s5213_s19   ;;  %p209_p1 = scmp.lt.s32.totalorder %s5221_s21, 0 }
  0x1f   : > { %s5012_s9 = smul.u32 144, %s7558_s30  ;;  %s210_s10 = ssub.s32 0, %s5221_s21 }
  0x20   : > { %s4792_s13 = smin.u32 %s5221_s21, %s210_s10  ;;  %p4795_p4 = scmp.ne.s32.totalorder %s5221_s21, 0 }
  0x21   : > { %s212_s14 = sand.u32 1, %s4792_s13   ;;  %s5378_s12 = scalar_lea.vmem [#allocation9], %s5012_s9 }
  0x22   : > { %s213_s11 = ssub.s32 0, %s212_s14  ;;  %224 = sbr.rel (%p4795_p4) target bundleno = 71 (0x47), region = 44 }
  0x23   : > { %s7658_s11 = smov (!%p209_p1, %s213_s11), %s212_s14  ;;  %s225_s17 = smul.u32 (!%p4795_p4), 384, %s5225_s22 }
  0x24   : > { %p4794_p2 = scmp.lt.s32.totalorder %s7658_s11, 0  ;;  %s219_s15 = sadd.s32 2, %s7658_s11 }
  0x25   : > { %s5387_s26 = scalar_lea.vmem (!%p4795_p4), %s7552_s0, %s225_s17 }
  0x26   : > { %s7660_s15 = smov (!%p4794_p2, %s219_s15), %s7658_s11 }
  0x27   : > { %v239_v0 = vld [vmem:[%s5387_s26] sm:$0xff]  ;;  %v241_v1 = vld [vmem:[%s5387_s26 + $0x8] sm:$0xff]  ;;  %v243_v2 = vld [vmem:[%s5387_s26 + $0x10] sm:$0xff] }
  0x28   : > { %240 = vst [vmem:[#allocation2] sm:$0xff] %v239_v0  ;;  %v245_v3 = vld [vmem:[%s5387_s26 + $0x18] sm:$0xff]  ;;  %v247_v4 = vld [vmem:[%s5387_s26 + $0x20] sm:$0xff]  ;;  %v249_v5 = vld [vmem:[%s5387_s26 + $0x28] sm:$0xff] }
  0x29   : > { %242 = vst [vmem:[#allocation2 + $0x8] sm:$0xff] %v241_v1  ;;  %v251_v6 = vld [vmem:[%s5387_s26 + $0x30] sm:$0xff]  ;;  %v253_v7 = vld [vmem:[%s5387_s26 + $0x38] sm:$0xff]  ;;  %v255_v8 = vld [vmem:[%s5387_s26 + $0x40] sm:$0xff] }
  0x2a   : > { %244 = vst [vmem:[#allocation2 + $0x10] sm:$0xff] %v243_v2  ;;  %v257_v9 = vld [vmem:[%s5387_s26 + $0x48] sm:$0xff]  ;;  %v259_v10 = vld [vmem:[%s5387_s26 + $0x50] sm:$0xff]  ;;  %v261_v11 = vld [vmem:[%s5387_s26 + $0x58] sm:$0xff] }
  0x2b   : > { %246 = vst [vmem:[#allocation2 + $0x18] sm:$0xff] %v245_v3  ;;  %v263_v12 = vld [vmem:[%s5387_s26 + $0x60] sm:$0xff]  ;;  %v265_v13 = vld [vmem:[%s5387_s26 + $0x68] sm:$0xff]  ;;  %v267_v14 = vld [vmem:[%s5387_s26 + $0x70] sm:$0xff] }
  0x2c   : > { %248 = vst [vmem:[#allocation2 + $0x20] sm:$0xff] %v247_v4  ;;  %v269_v15 = vld [vmem:[%s5387_s26 + $0x78] sm:$0xff]  ;;  %v271_v16 = vld [vmem:[%s5387_s26 + $0x80] sm:$0xff]  ;;  %v273_v17 = vld [vmem:[%s5387_s26 + $0x88] sm:$0xff] }
  0x2d   : > { %250 = vst [vmem:[#allocation2 + $0x28] sm:$0xff] %v249_v5  ;;  %v275_v18 = vld [vmem:[%s5387_s26 + $0x90] sm:$0xff]  ;;  %v277_v19 = vld [vmem:[%s5387_s26 + $0x98] sm:$0xff]  ;;  %v279_v20 = vld [vmem:[%s5387_s26 + $0xa0] sm:$0xff] }
  0x2e   : > { %252 = vst [vmem:[#allocation2 + $0x30] sm:$0xff] %v251_v6  ;;  %v281_v21 = vld [vmem:[%s5387_s26 + $0xa8] sm:$0xff]  ;;  %v283_v22 = vld [vmem:[%s5387_s26 + $0xb0] sm:$0xff]  ;;  %v285_v23 = vld [vmem:[%s5387_s26 + $0xb8] sm:$0xff] }
  0x2f   : > { %254 = vst [vmem:[#allocation2 + $0x38] sm:$0xff] %v253_v7  ;;  %v287_v24 = vld [vmem:[%s5387_s26 + $0xc0] sm:$0xff]  ;;  %v289_v25 = vld [vmem:[%s5387_s26 + $0xc8] sm:$0xff]  ;;  %v291_v26 = vld [vmem:[%s5387_s26 + $0xd0] sm:$0xff] }
  0x30   : > { %256 = vst [vmem:[#allocation2 + $0x40] sm:$0xff] %v255_v8  ;;  %v293_v27 = vld [vmem:[%s5387_s26 + $0xd8] sm:$0xff]  ;;  %v295_v28 = vld [vmem:[%s5387_s26 + $0xe0] sm:$0xff]  ;;  %v4796_v29 = vld [vmem:[%s5387_s26 + $0xe8] sm:$0x3] }
  0x31   : > { %258 = vst [vmem:[#allocation2 + $0x48] sm:$0xff] %v257_v9 }
  0x32   : > { %260 = vst [vmem:[#allocation2 + $0x50] sm:$0xff] %v259_v10 }
  0x33   : > { %262 = vst [vmem:[#allocation2 + $0x58] sm:$0xff] %v261_v11 }
  0x34   : > { %264 = vst [vmem:[#allocation2 + $0x60] sm:$0xff] %v263_v12 }
  0x35   : > { %266 = vst [vmem:[#allocation2 + $0x68] sm:$0xff] %v265_v13 }
  0x36   : > { %268 = vst [vmem:[#allocation2 + $0x70] sm:$0xff] %v267_v14 }
  0x37   : > { %270 = vst [vmem:[#allocation2 + $0x78] sm:$0xff] %v269_v15 }
  0x38   : > { %272 = vst [vmem:[#allocation2 + $0x80] sm:$0xff] %v271_v16 }
  0x39   : > { %274 = vst [vmem:[#allocation2 + $0x88] sm:$0xff] %v273_v17 }
  0x3a   : > { %276 = vst [vmem:[#allocation2 + $0x90] sm:$0xff] %v275_v18 }
  0x3b   : > { %278 = vst [vmem:[#allocation2 + $0x98] sm:$0xff] %v277_v19 }
  0x3c   : > { %280 = vst [vmem:[#allocation2 + $0xa0] sm:$0xff] %v279_v20 }
  0x3d   : > { %282 = vst [vmem:[#allocation2 + $0xa8] sm:$0xff] %v281_v21 }
  0x3e   : > { %284 = vst [vmem:[#allocation2 + $0xb0] sm:$0xff] %v283_v22 }
  0x3f   : > { %286 = vst [vmem:[#allocation2 + $0xb8] sm:$0xff] %v285_v23 }
  0x40   : > { %288 = vst [vmem:[#allocation2 + $0xc0] sm:$0xff] %v287_v24 }
  0x41   : > { %290 = vst [vmem:[#allocation2 + $0xc8] sm:$0xff] %v289_v25 }
  0x42   : > { %292 = vst [vmem:[#allocation2 + $0xd0] sm:$0xff] %v291_v26 }
  0x43   : > { %294 = vst [vmem:[#allocation2 + $0xd8] sm:$0xff] %v293_v27 }
  0x44   : > { %296 = vst [vmem:[#allocation2 + $0xe0] sm:$0xff] %v295_v28 }
  0x45   : > { %308 = vst [vmem:[#allocation2 + $0xe8] sm:$0x3] %v4796_v29 }
  0x46   : > { %312 = vsyncadd [#allocation3], 3744 }
  0x47 PF: > { %s313_s9 = smul.u32 240, %s7660_s15  ;;  %s315_s13 = scalar_lea.sflag [#allocation3], %s7660_s15 }
  0x49   : > { %s5420_s10 = scalar_lea.vmem [#allocation2], %s313_s9 }
  0x4a   : > { %5201 = dma.done.wait %s315_s13, 3744 }
  0x4b   : > { %5202 = vsyncadd %s315_s13, 4294963552  ;;  %s319_s14 = sadd.s32 1, %s5221_s21 }
  0x4c   : > { %p4797_p5 = scmp.ge.s32.totalorder %s319_s14, 2 }
  0x4d   : > { %s324_s11 = ssub.s32 (!%p4797_p5), 1, %s7660_s15  ;;  %s4715_s17 = smul.u32 (!%p4797_p5), 144, %s5221_s21 }
  0x4e   : > { %323 = sbr.rel (%p4797_p5) target bundleno = 115 (0x73), region = 70  ;;  %s331_s30 = scalar_lea.sflag (!%p4797_p5), [#allocation3], %s324_s11 }
  0x4f   : > { %s4716_s27 = smul.u32 (!%p4797_p5), 384, %s5225_s22 }
  0x50   : > { %s329_s6 = smul.u32 (!%p4797_p5), 240, %s324_s11 }
  0x51   : > { %s4717_s26 = sadd.s32 (!%p4797_p5), %s4716_s27, %s4715_s17 }
  0x52   : > { %s5432_s3 = scalar_lea.vmem (!%p4797_p5), %s7552_s0, %s4717_s26  ;;  %s5437_s13 = scalar_lea.vmem (!%p4797_p5), [#allocation2], %s329_s6 }
  0x53   : > { %v4798_v30 = vld [vmem:[%s5432_s3 + $0x90] sm:$0xff]  ;;  %v4799_v31 = vld [vmem:[%s5432_s3 + $0x98] sm:$0xff]  ;;  %v4800_v32 = vld [vmem:[%s5432_s3 + $0xa0] sm:$0xff] }
  0x54   : > { %345 = vst [vmem:[%s5437_s13] sm:$0xff] %v4798_v30  ;;  %v4801_v33 = vld [vmem:[%s5432_s3 + $0xa8] sm:$0xff]  ;;  %v4802_v34 = vld [vmem:[%s5432_s3 + $0xb0] sm:$0xff]  ;;  %v4803_v35 = vld [vmem:[%s5432_s3 + $0xb8] sm:$0xff] }
  0x55   : > { %347 = vst [vmem:[%s5437_s13 + $0x8] sm:$0xff] %v4799_v31  ;;  %v4804_v36 = vld [vmem:[%s5432_s3 + $0xc0] sm:$0xff]  ;;  %v4805_v37 = vld [vmem:[%s5432_s3 + $0xc8] sm:$0xff]  ;;  %v4806_v38 = vld [vmem:[%s5432_s3 + $0xd0] sm:$0xff] }
  0x56   : > { %349 = vst [vmem:[%s5437_s13 + $0x10] sm:$0xff] %v4800_v32  ;;  %v4807_v39 = vld [vmem:[%s5432_s3 + $0xd8] sm:$0xff]  ;;  %v4808_v40 = vld [vmem:[%s5432_s3 + $0xe0] sm:$0xff]  ;;  %v4809_v41 = vld [vmem:[%s5432_s3 + $0xe8] sm:$0xff] }
  0x57   : > { %351 = vst [vmem:[%s5437_s13 + $0x18] sm:$0xff] %v4801_v33  ;;  %v4810_v42 = vld [vmem:[%s5432_s3 + $0xf0] sm:$0xff]  ;;  %v4811_v43 = vld [vmem:[%s5432_s3 + $0xf8] sm:$0xff]  ;;  %v4812_v44 = vld [vmem:[%s5432_s3 + $0x100] sm:$0xff] }
  0x58   : > { %353 = vst [vmem:[%s5437_s13 + $0x20] sm:$0xff] %v4802_v34  ;;  %v4813_v45 = vld [vmem:[%s5432_s3 + $0x108] sm:$0xff]  ;;  %v4814_v46 = vld [vmem:[%s5432_s3 + $0x110] sm:$0xff]  ;;  %v4815_v47 = vld [vmem:[%s5432_s3 + $0x118] sm:$0xff] }
  0x59   : > { %355 = vst [vmem:[%s5437_s13 + $0x28] sm:$0xff] %v4803_v35  ;;  %v4816_v48 = vld [vmem:[%s5432_s3 + $0x120] sm:$0xff]  ;;  %v4817_v49 = vld [vmem:[%s5432_s3 + $0x128] sm:$0xff]  ;;  %v4818_v50 = vld [vmem:[%s5432_s3 + $0x130] sm:$0xff] }
  0x5a   : > { %357 = vst [vmem:[%s5437_s13 + $0x30] sm:$0xff] %v4804_v36  ;;  %v4819_v51 = vld [vmem:[%s5432_s3 + $0x138] sm:$0xff]  ;;  %v4820_v52 = vld [vmem:[%s5432_s3 + $0x140] sm:$0xff]  ;;  %v4821_v53 = vld [vmem:[%s5432_s3 + $0x148] sm:$0xff] }
  0x5b   : > { %359 = vst [vmem:[%s5437_s13 + $0x38] sm:$0xff] %v4805_v37  ;;  %v4822_v54 = vld [vmem:[%s5432_s3 + $0x150] sm:$0xff]  ;;  %v4823_v55 = vld [vmem:[%s5432_s3 + $0x158] sm:$0xff]  ;;  %v4824_v56 = vld [vmem:[%s5432_s3 + $0x160] sm:$0xff] }
  0x5c   : > { %361 = vst [vmem:[%s5437_s13 + $0x40] sm:$0xff] %v4806_v38  ;;  %v4825_v57 = vld [vmem:[%s5432_s3 + $0x168] sm:$0xff]  ;;  %v4826_v58 = vld [vmem:[%s5432_s3 + $0x170] sm:$0xff]  ;;  %v4827_v59 = vld [vmem:[%s5432_s3 + $0x178] sm:$0x3] }
  0x5d   : > { %363 = vst [vmem:[%s5437_s13 + $0x48] sm:$0xff] %v4807_v39 }
  0x5e   : > { %365 = vst [vmem:[%s5437_s13 + $0x50] sm:$0xff] %v4808_v40 }
  0x5f   : > { %367 = vst [vmem:[%s5437_s13 + $0x58] sm:$0xff] %v4809_v41 }
  0x60   : > { %369 = vst [vmem:[%s5437_s13 + $0x60] sm:$0xff] %v4810_v42 }
  0x61   : > { %371 = vst [vmem:[%s5437_s13 + $0x68] sm:$0xff] %v4811_v43 }
  0x62   : > { %373 = vst [vmem:[%s5437_s13 + $0x70] sm:$0xff] %v4812_v44 }
  0x63   : > { %375 = vst [vmem:[%s5437_s13 + $0x78] sm:$0xff] %v4813_v45 }
  0x64   : > { %377 = vst [vmem:[%s5437_s13 + $0x80] sm:$0xff] %v4814_v46 }
  0x65   : > { %379 = vst [vmem:[%s5437_s13 + $0x88] sm:$0xff] %v4815_v47 }
  0x66   : > { %381 = vst [vmem:[%s5437_s13 + $0x90] sm:$0xff] %v4816_v48 }
  0x67   : > { %383 = vst [vmem:[%s5437_s13 + $0x98] sm:$0xff] %v4817_v49 }
  0x68   : > { %385 = vst [vmem:[%s5437_s13 + $0xa0] sm:$0xff] %v4818_v50 }
  0x69   : > { %387 = vst [vmem:[%s5437_s13 + $0xa8] sm:$0xff] %v4819_v51 }
  0x6a   : > { %389 = vst [vmem:[%s5437_s13 + $0xb0] sm:$0xff] %v4820_v52 }
  0x6b   : > { %391 = vst [vmem:[%s5437_s13 + $0xb8] sm:$0xff] %v4821_v53 }
  0x6c   : > { %393 = vst [vmem:[%s5437_s13 + $0xc0] sm:$0xff] %v4822_v54 }
  0x6d   : > { %395 = vst [vmem:[%s5437_s13 + $0xc8] sm:$0xff] %v4823_v55 }
  0x6e   : > { %397 = vst [vmem:[%s5437_s13 + $0xd0] sm:$0xff] %v4824_v56 }
  0x6f   : > { %399 = vst [vmem:[%s5437_s13 + $0xd8] sm:$0xff] %v4825_v57 }
  0x70   : > { %401 = vst [vmem:[%s5437_s13 + $0xe0] sm:$0xff] %v4826_v58 }
  0x71   : > { %4828 = vst [vmem:[%s5437_s13 + $0xe8] sm:$0x3] %v4827_v59 }
  0x72   : > { %417 = vsyncadd %s331_s30, 3744 }
  0x73 PF: > { %v456_v60 = vld [vmem:[%s7553_s1 + $0x78] sm:$0xff]  ;;  %v455_v62 = vld [vmem:[%s7553_s1 + $0x70] sm:$0xff]  ;;  %v454_v0 = vld [vmem:[%s7553_s1 + $0x68] sm:$0xff] }
  0x74   : > { %v4844_v61 = vld [vmem:[%s7553_s1 + $0xf8] sm:$0xff]  ;;  %457 = vmatpush.msra.mxu0 %v456_v60  ;;  %v4843_v63 = vld [vmem:[%s7553_s1 + $0xf0] sm:$0xff]  ;;  %v4842_v1 = vld [vmem:[%s7553_s1 + $0xe8] sm:$0xff] }
  0x75   : > { %4964 = vmatpush.msra.mxu3 %v4844_v61  ;;  %606 = vmatpush.msra.mxu1 %v4844_v61  ;;  %v453_v2 = vld [vmem:[%s7553_s1 + $0x60] sm:$0xff]  ;;  %v452_v4 = vld [vmem:[%s7553_s1 + $0x58] sm:$0xff]  ;;  %v451_v6 = vld [vmem:[%s7553_s1 + $0x50] sm:$0xff] }
  0x76   : > { %458 = vmatpush.msra.mxu0 %v455_v62  ;;  %v4841_v3 = vld [vmem:[%s7553_s1 + $0xe0] sm:$0xff]  ;;  %v4840_v5 = vld [vmem:[%s7553_s1 + $0xd8] sm:$0xff]  ;;  %v4839_v7 = vld [vmem:[%s7553_s1 + $0xd0] sm:$0xff] }
  0x77   : > { %4965 = vmatpush.msra.mxu3 %v4843_v63  ;;  %607 = vmatpush.msra.mxu1 %v4843_v63  ;;  %v450_v8 = vld [vmem:[%s7553_s1 + $0x48] sm:$0xff]  ;;  %v5543_v10 = vld [vmem:[%s7553_s1 + $0x178] sm:$0xff]  ;;  %v449_v11 = vld [vmem:[%s7553_s1 + $0x40] sm:$0xff] }
  0x78   : > { %459 = vmatpush.msra.mxu0 %v454_v0  ;;  %v4838_v9 = vld [vmem:[%s7553_s1 + $0xc8] sm:$0xff]  ;;  %v4837_v12 = vld [vmem:[%s7553_s1 + $0xc0] sm:$0xff]  ;;  %v5554_v13 = vld [vmem:[%s7553_s1 + $0x170] sm:$0xff]  ;;  %4980 = vmatpush.msra.mxu2 %v5543_v10 }
  0x79   : > { %4966 = vmatpush.msra.mxu3 %v4842_v1  ;;  %608 = vmatpush.msra.mxu1 %v4842_v1  ;;  %v5560_v14 = vld [vmem:[%s7553_s1 + $0x168] sm:$0xff]  ;;  %v448_v15 = vld [vmem:[%s7553_s1 + $0x38] sm:$0xff]  ;;  %v5572_v17 = vld [vmem:[%s7553_s1 + $0x160] sm:$0xff] }
  0x7a   : > { %460 = vmatpush.msra.mxu0 %v453_v2  ;;  %v4836_v16 = vld [vmem:[%s7553_s1 + $0xb8] sm:$0xff]  ;;  %4982 = vmatpush.msra.mxu2 %v5554_v13  ;;  %v447_v18 = vld [vmem:[%s7553_s1 + $0x30] sm:$0xff]  ;;  %v446_v21 = vld [vmem:[%s7553_s1 + $0x28] sm:$0xff] }
  0x7b   : > { %4967 = vmatpush.msra.mxu3 %v4841_v3  ;;  %609 = vmatpush.msra.mxu1 %v4841_v3  ;;  %v4835_v19 = vld [vmem:[%s7553_s1 + $0xb0] sm:$0xff]  ;;  %v5584_v20 = vld [vmem:[%s7553_s1 + $0x158] sm:$0xff]  ;;  %v4834_v22 = vld [vmem:[%s7553_s1 + $0xa8] sm:$0xff] }
  0x7c   : > { %461 = vmatpush.msra.mxu0 %v452_v4  ;;  %4984 = vmatpush.msra.mxu2 %v5560_v14  ;;  %v5596_v23 = vld [vmem:[%s7553_s1 + $0x150] sm:$0xff]  ;;  %v445_v24 = vld [vmem:[%s7553_s1 + $0x20] sm:$0xff]  ;;  %v5608_v26 = vld [vmem:[%s7553_s1 + $0x148] sm:$0xff] }
  0x7d   : > { %4968 = vmatpush.msra.mxu3 %v4840_v5  ;;  %610 = vmatpush.msra.mxu1 %v4840_v5  ;;  %v4833_v25 = vld [vmem:[%s7553_s1 + $0xa0] sm:$0xff]  ;;  %v444_v27 = vld [vmem:[%s7553_s1 + $0x18] sm:$0xff]  ;;  %v443_v30 = vld [vmem:[%s7553_s1 + $0x10] sm:$0xff] }
  0x7e   : > { %462 = vmatpush.msra.mxu0 %v451_v6  ;;  %4986 = vmatpush.msra.mxu2 %v5572_v17  ;;  %v4832_v28 = vld [vmem:[%s7553_s1 + $0x98] sm:$0xff]  ;;  %v5620_v29 = vld [vmem:[%s7553_s1 + $0x140] sm:$0xff]  ;;  %v4831_v31 = vld [vmem:[%s7553_s1 + $0x90] sm:$0xff] }
  0x7f   : > { %4969 = vmatpush.msra.mxu3 %v4839_v7  ;;  %611 = vmatpush.msra.mxu1 %v4839_v7  ;;  %v5632_v32 = vld [vmem:[%s7553_s1 + $0x138] sm:$0xff]  ;;  %v442_v33 = vld [vmem:[%s7553_s1 + $0x8] sm:$0xff]  ;;  %v5644_v35 = vld [vmem:[%s7553_s1 + $0x130] sm:$0xff] }
  0x80   : > { %463 = vmatpush.msra.mxu0 %v450_v8  ;;  %4988 = vmatpush.msra.mxu2 %v5584_v20  ;;  %v4830_v34 = vld [vmem:[%s7553_s1 + $0x88] sm:$0xff]  ;;  %v441_v36 = vld [vmem:[%s7553_s1] sm:$0xff]  ;;  %v4848_v43 = vld [vmem:[%s7553_s1 + $0x118] sm:$0xff] }
  0x81   : > { %4970 = vmatpush.msra.mxu3 %v4838_v9  ;;  %612 = vmatpush.msra.mxu1 %v4838_v9  ;;  %v4829_v37 = vld [vmem:[%s7553_s1 + $0x80] sm:$0xff]  ;;  %v4850_v41 = vld [vmem:[%s7553_s1 + $0x128] sm:$0xff]  ;;  %v4847_v46 = vld [vmem:[%s7553_s1 + $0x110] sm:$0xff] }
  0x82   : > { %464 = vmatpush.msra.mxu0 %v449_v11  ;;  %4990 = vmatpush.msra.mxu2 %v5596_v23  ;;  %v418_v38 = vld [vmem:[%s5420_s10] sm:$0xff]  ;;  %v419_v44 = vld [vmem:[%s5420_s10 + $0x8] sm:$0xff]  ;;  %v420_v51 = vld [vmem:[%s5420_s10 + $0x10] sm:$0xff] }
  0x83   : > { %4971 = vmatpush.msra.mxu3 %v4837_v12  ;;  %613 = vmatpush.msra.mxu1 %v4837_v12  ;;  %v582_v39 = vld [vmem:[%s5420_s10 + $0x81] sm:$0xff]  ;;  %v583_v45 = vld [vmem:[%s5420_s10 + $0x89] sm:$0xff]  ;;  %v584_v52 = vld [vmem:[%s5420_s10 + $0x91] sm:$0xff] }
  0x84   : > { %465 = vmatpush.msra.mxu0 %v448_v15  ;;  %4992 = vmatpush.msra.mxu2 %v5608_v26  ;;  %v566_v40 = vld [vmem:[%s5420_s10 + $0x1] sm:$0xff]  ;;  %v567_v47 = vld [vmem:[%s5420_s10 + $0x9] sm:$0xff]  ;;  %v568_v53 = vld [vmem:[%s5420_s10 + $0x11] sm:$0xff] }
  0x85   : > { %4972 = vmatpush.msra.mxu3 %v4836_v16  ;;  %614 = vmatpush.msra.mxu1 %v4836_v16  ;;  %v4849_v42 = vld [vmem:[%s7553_s1 + $0x120] sm:$0xff]  ;;  %v4846_v48 = vld [vmem:[%s7553_s1 + $0x108] sm:$0xff]  ;;  %v4876_v62 = vld [vmem:[%s7553_s1 + $0x1f8] sm:$0xff] }
  0x86   : > { %466 = vmatpush.msra.mxu0 %v447_v18  ;;  %4994 = vmatpush.msra.mxu2 %v5620_v29  ;;  %v4845_v49 = vld [vmem:[%s7553_s1 + $0x100] sm:$0xff]  ;;  %v421_v55 = vld [vmem:[%s5420_s10 + $0x18] sm:$0xff]  ;;  %v4875_v63 = vld [vmem:[%s7553_s1 + $0x1f0] sm:$0xff] }
  0x87   : > { %4973 = vmatpush.msra.mxu3 %v4835_v19  ;;  %615 = vmatpush.msra.mxu1 %v4835_v19  ;;  %v5689_v50 = vld [vmem:[%s5420_s10 + $0x22] sm:$0xff]  ;;  %v5703_v54 = vld [vmem:[%s5420_s10 + $0x2a] sm:$0xff]  ;;  %v585_v56 = vld [vmem:[%s5420_s10 + $0x99] sm:$0xff] }
  0x88   : > { %467 = vmatpush.msra.mxu0 %v446_v21  ;;  %4996 = vmatpush.msra.mxu2 %v5632_v32  ;;  %v569_v57 = vld [vmem:[%s5420_s10 + $0x19] sm:$0xff]  ;;  %v586_v60 = vld [vmem:[%s5420_s10 + $0xa1] sm:$0xff]  ;;  %v587_v3 = vld [vmem:[%s5420_s10 + $0xa9] sm:$0xff] }
  0x89   : > { %4974 = vmatpush.msra.mxu3 %v4834_v22  ;;  %616 = vmatpush.msra.mxu1 %v4834_v22  ;;  %v5713_v58 = vld [vmem:[%s5420_s10 + $0x32] sm:$0xff]  ;;  %v422_v59 = vld [vmem:[%s5420_s10 + $0x20] sm:$0xff]  ;;  %v423_v2 = vld [vmem:[%s5420_s10 + $0x28] sm:$0xff] }
  0x8a   : > { %468 = vmatpush.msra.mxu0 %v445_v24  ;;  %4998 = vmatpush.msra.mxu2 %v5644_v35  ;;  %v570_v61 = vld [vmem:[%s5420_s10 + $0x21] sm:$0xff]  ;;  %v571_v5 = vld [vmem:[%s5420_s10 + $0x29] sm:$0xff]  ;;  %v588_v11 = vld [vmem:[%s5420_s10 + $0xb1] sm:$0xf] }
  0x8b   : > { %4975 = vmatpush.msra.mxu3 %v4833_v25  ;;  %617 = vmatpush.msra.mxu1 %v4833_v25  ;;  %v4874_v0 = vld [vmem:[%s7553_s1 + $0x1e8] sm:$0xff]  ;;  %v4873_v4 = vld [vmem:[%s7553_s1 + $0x1e0] sm:$0xff]  ;;  %v4872_v6 = vld [vmem:[%s7553_s1 + $0x1d8] sm:$0xff] }
  0x8c   : > { %469 = vmatpush.msra.mxu0 %v444_v27  ;;  %5000 = vmatpush.msra.mxu2 %v4850_v41  ;;  %v5729_v1 = vld [vmem:[%s5420_s10 + $0x3a] sm:$0xff]  ;;  %v5745_v8 = vld [vmem:[%s5420_s10 + $0x42] sm:$0xff]  ;;  %v5764_v16 = vld [vmem:[%s5420_s10 + $0x4a] sm:$0xff] }
  0x8d   : > { %4976 = vmatpush.msra.mxu3 %v4832_v28  ;;  %618 = vmatpush.msra.mxu1 %v4832_v28  ;;  %v4871_v7 = vld [vmem:[%s7553_s1 + $0x1d0] sm:$0xff]  ;;  %v4870_v9 = vld [vmem:[%s7553_s1 + $0x1c8] sm:$0xff]  ;;  %v4869_v12 = vld [vmem:[%s7553_s1 + $0x1c0] sm:$0xff] }
  0x8e   : > { %470 = vmatpush.msra.mxu0 %v443_v30  ;;  %5002 = vmatpush.msra.mxu2 %v4849_v42  ;;  %v4867_v15 = vld [vmem:[%s7553_s1 + $0x1b0] sm:$0xff]  ;;  %v425_v18 = vld [vmem:[%s5420_s10 + $0x38] sm:$0xff]  ;;  %v4861_v28 = vld [vmem:[%s7553_s1 + $0x180] sm:$0xff] }
  0x8f   : > { %4977 = vmatpush.msra.mxu3 %v4831_v31  ;;  %619 = vmatpush.msra.mxu1 %v4831_v31  ;;  %v5771_v19 = vld [vmem:[%s5420_s10 + $0xa2] sm:$0xff]  ;;  %v573_v21 = vld [vmem:[%s5420_s10 + $0x39] sm:$0xff]  ;;  %v5793_v27 = vld [vmem:[%s5420_s10 + $0xaa] sm:$0xff] }
  0x90   : > { %471 = vmatpush.msra.mxu0 %v442_v33  ;;  %5004 = vmatpush.msra.mxu2 %v4848_v43  ;;  %v4864_v22 = vld [vmem:[%s7553_s1 + $0x198] sm:$0xff]  ;;  %v4862_v25 = vld [vmem:[%s7553_s1 + $0x188] sm:$0xff] }
  0x91   : > { %4978 = vmatpush.msra.mxu3 %v4830_v34  ;;  %620 = vmatpush.msra.mxu1 %v4830_v34  ;;  %v5786_v24 = vld [vmem:[%s5420_s10 + $0x52] sm:$0xff]  ;;  %v5802_v30 = vld [vmem:[%s5420_s10 + $0x5a] sm:$0xff]  ;;  %v427_v31 = vld [vmem:[%s5420_s10 + $0x48] sm:$0xff] }
  0x92   : > { %472 = vmatpush.msra.mxu0 %v441_v36  ;;  %5006 = vmatpush.msra.mxu2 %v4847_v46  ;;  %v575_v33 = vld [vmem:[%s5420_s10 + $0x49] sm:$0xff]  ;;  %v5813_v36 = vld [vmem:[%s5420_s10 + $0x12] sm:$0xff] }
  0x93   : > { %4979 = vmatpush.msra.mxu3 %v4829_v37  ;;  %473 = vmatmul.f32.vlgmr.msra.gmra.mxu0 %v418_v38  ;;  %v5809_v34 = vld [vmem:[%s5420_s10 + $0x62] sm:$0xff]  ;;  %v5819_v38 = vld [vmem:[%s5420_s10 + $0x6a] sm:$0xff] }
  0x94   : > { %670 = vmatmul.f32.vlgmr.msra.gmra.mxu3 %v582_v39  ;;  %801 = vmatpush.msrb.mxu0 %v5543_v10  ;;  %v429_v39 = vld [vmem:[%s5420_s10 + $0x58] sm:$0xff] }
  0x95   : > { %621 = vmatpush.msra.mxu1 %v4829_v37  ;;  %4981 = vmatpush.msrb.mxu3 %v5543_v10  ;;  %v424_v10 = vld [vmem:[%s5420_s10 + $0x30] sm:$0xff] }
  0x96   : > { %622 = vmatmul.f32.vlgmr.msra.gmra.mxu1 %v566_v40  ;;  %802 = vmatpush.msrb.mxu0 %v5554_v13  ;;  %v576_v37 = vld [vmem:[%s5420_s10 + $0x51] sm:$0xff]  ;;  %v5823_v40 = vld [vmem:[%s5420_s10 + $0x1a] sm:$0xff] }
  0x97   : > { %4983 = vmatpush.msrb.mxu3 %v5554_v13  ;;  %5008 = vmatpush.msra.mxu2 %v4846_v48  ;;  %v572_v13 = vld [vmem:[%s5420_s10 + $0x31] sm:$0xff] }
  0x98   : > { %803 = vmatpush.msrb.mxu0 %v5560_v14 }
  0x99   : > { %4985 = vmatpush.msrb.mxu3 %v5560_v14  ;;  %5010 = vmatpush.msra.mxu2 %v4845_v49  ;;  %v4868_v14 = vld [vmem:[%s7553_s1 + $0x1b8] sm:$0xff] }
  0x9a   : > { %804 = vmatpush.msrb.mxu0 %v5572_v17  ;;  %829 = vmatmul.f32.vlgmr.msra.gmra.mxu2 %v5689_v50 }
  0x9b   : > { %476 = vmatmul.f32.gmra.mxu0 %v419_v44  ;;  %4987 = vmatpush.msrb.mxu3 %v5572_v17  ;;  %v4866_v17 = vld [vmem:[%s7553_s1 + $0x1a8] sm:$0xff] }
  0x9c   : > { %673 = vmatmul.f32.gmra.mxu3 %v583_v45  ;;  %805 = vmatpush.msrb.mxu0 %v5584_v20  ;;  %v578_v44 = vld [vmem:[%s5420_s10 + $0x61] sm:$0xff] }
  0x9d   : > { %4989 = vmatpush.msrb.mxu3 %v5584_v20  ;;  %v4865_v20 = vld [vmem:[%s7553_s1 + $0x1a0] sm:$0xff] }
  0x9e   : > { %625 = vmatmul.f32.gmra.mxu1 %v567_v47  ;;  %806 = vmatpush.msrb.mxu0 %v5596_v23  ;;  %v5836_v45 = vld [vmem:[%s5420_s10 + $0x7a] sm:$0xff]  ;;  %v579_v47 = vld [vmem:[%s5420_s10 + $0x69] sm:$0xff] }
  0x9f   : > { %4991 = vmatpush.msrb.mxu3 %v5596_v23  ;;  %v4863_v23 = vld [vmem:[%s7553_s1 + $0x190] sm:$0xff] }
  0xa0   : > { %807 = vmatpush.msrb.mxu0 %v5608_v26 }
  0xa1   : > { %4993 = vmatpush.msrb.mxu3 %v5608_v26  ;;  %v426_v26 = vld [vmem:[%s5420_s10 + $0x40] sm:$0xff] }
  0xa2   : > { %808 = vmatpush.msrb.mxu0 %v5620_v29  ;;  %832 = vmatmul.f32.gmra.mxu2 %v5703_v54 }
  0xa3   : > { %479 = vmatmul.f32.gmra.mxu0 %v420_v51  ;;  %4995 = vmatpush.msrb.mxu3 %v5620_v29  ;;  %v574_v29 = vld [vmem:[%s5420_s10 + $0x41] sm:$0xff]  ;;  %v5850_v51 = vld [vmem:[%s5420_s10 + $0x8a] sm:$0xff] }
  0xa4   : > { %676 = vmatmul.f32.gmra.mxu3 %v584_v52  ;;  %809 = vmatpush.msrb.mxu0 %v5632_v32  ;;  %v433_v52 = vld [vmem:[%s5420_s10 + $0x78] sm:$0xff] }
  0xa5   : > { %4997 = vmatpush.msrb.mxu3 %v5632_v32  ;;  %v783_v32 = vld [vmem:[%s5420_s10 + $0xb2] sm:$0xf] }
  0xa6   : > { %628 = vmatmul.f32.gmra.mxu1 %v568_v53  ;;  %810 = vmatpush.msrb.mxu0 %v5644_v35  ;;  %v581_v53 = vld [vmem:[%s5420_s10 + $0x79] sm:$0xff] }
  0xa7   : > { %4999 = vmatpush.msrb.mxu3 %v5644_v35  ;;  %v428_v35 = vld [vmem:[%s5420_s10 + $0x50] sm:$0xff] }
  0xa8   : > { %811 = vmatpush.msrb.mxu0 %v4850_v41 }
  0xa9   : > { %5001 = vmatpush.msrb.mxu3 %v4850_v41  ;;  %v577_v41 = vld [vmem:[%s5420_s10 + $0x59] sm:$0xff] }
  0xaa   : > { %812 = vmatpush.msrb.mxu0 %v4849_v42  ;;  %835 = vmatmul.f32.gmra.mxu2 %v5713_v58 }
  0xab   : > { %482 = vmatmul.f32.gmra.mxu0 %v421_v55  ;;  %5003 = vmatpush.msrb.mxu3 %v4849_v42  ;;  %v5829_v42 = vld [vmem:[%s5420_s10 + $0x72] sm:$0xff] }
  0xac   : > { %679 = vmatmul.f32.gmra.mxu3 %v585_v56  ;;  %813 = vmatpush.msrb.mxu0 %v4848_v43  ;;  %v434_v56 = vld [vmem:[%s5420_s10 + $0x80] sm:$0xff] }
  0xad   : > { %5005 = vmatpush.msrb.mxu3 %v4848_v43  ;;  %v430_v43 = vld [vmem:[%s5420_s10 + $0x60] sm:$0xff] }
  0xae   : > { %631 = vmatmul.f32.gmra.mxu1 %v569_v57  ;;  %814 = vmatpush.msrb.mxu0 %v4847_v46 }
  0xaf   : > { %5007 = vmatpush.msrb.mxu3 %v4847_v46  ;;  %v431_v46 = vld [vmem:[%s5420_s10 + $0x68] sm:$0xff] }
  0xb0   : > { %815 = vmatpush.msrb.mxu0 %v4846_v48 }
  0xb1   : > { %5009 = vmatpush.msrb.mxu3 %v4846_v48  ;;  %v5843_v48 = vld [vmem:[%s5420_s10 + $0x82] sm:$0xff] }
  0xb2   : > { %816 = vmatpush.msrb.mxu0 %v4845_v49  ;;  %838 = vmatmul.f32.gmra.mxu2 %v5729_v1 }
  0xb3   : > { %485 = vmatmul.f32.gmra.mxu0 %v422_v59  ;;  %5011 = vmatpush.msrb.mxu3 %v4845_v49  ;;  %v432_v49 = vld [vmem:[%s5420_s10 + $0x70] sm:$0xff] }
  0xb4   : > { %682 = vmatmul.f32.gmra.mxu3 %v586_v60  ;;  %v5865_v60 = vld [vmem:[%s5420_s10 + $0x9a] sm:$0xff] }
  0xb5   : > { %996 = vmatpush.msra.mxu3 %v4876_v62  ;;  %v435_v62 = vld [vmem:[%s5420_s10 + $0x88] sm:$0xff] }
  0xb6   : > { %634 = vmatmul.f32.gmra.mxu1 %v570_v61 }
  0xb7   : > { %997 = vmatpush.msra.mxu3 %v4875_v63 }
  0xb9   : > { %998 = vmatpush.msra.mxu3 %v4874_v0 }
  0xba   : > { %841 = vmatmul.f32.gmra.mxu2 %v5745_v8 }
  0xbb   : > { %488 = vmatmul.f32.gmra.mxu0 %v423_v2  ;;  %999 = vmatpush.msra.mxu3 %v4873_v4 }
  0xbc   : > { %685 = vmatmul.f32.gmra.mxu3 %v587_v3  ;;  %v436_v3 = vld [vmem:[%s5420_s10 + $0x90] sm:$0xff] }
  0xbd   : > { %1000 = vmatpush.msra.mxu3 %v4872_v6 }
  0xbe   : > { %637 = vmatmul.f32.gmra.mxu1 %v571_v5 }
  0xbf   : > { %1001 = vmatpush.msra.mxu3 %v4871_v7 }
  0xc1   : > { %1002 = vmatpush.msra.mxu3 %v4870_v9 }
  0xc2   : > { %844 = vmatmul.f32.gmra.mxu2 %v5764_v16 }
  0xc3   : > { %491 = vmatmul.f32.gmra.mxu0 %v424_v10  ;;  %1003 = vmatpush.msra.mxu3 %v4869_v12  ;;  %v4891_v12 = vld [vmem:[%s7553_s1 + $0x270] sm:$0xff] }
  0xc4   : > { %688 = vmatmul.f32.gmra.mxu3 %v588_v11  ;;  %v4892_v11 = vld [vmem:[%s7553_s1 + $0x278] sm:$0xff] }
  0xc5   : > { %1004 = vmatpush.msra.mxu3 %v4868_v14  ;;  %1191 = vmatpush.msra.mxu0 %v4892_v11  ;;  %v4923_v14 = vld [vmem:[%s7553_s1 + $0x370] sm:$0xff]  ;;  %v4913_v11 = vld [vmem:[%s7553_s1 + $0x320] sm:$0xff] }
  0xc6   : > { %640 = vmatmul.f32.gmra.mxu1 %v572_v13  ;;  %v4924_v13 = vld [vmem:[%s7553_s1 + $0x378] sm:$0xff] }
  0xc7   : > { %1005 = vmatpush.msra.mxu3 %v4867_v15  ;;  %1581 = vmatpush.msrb.mxu2 %v4924_v13 }
  0xc8   : > { %1192 = vmatpush.msra.mxu0 %v4891_v12  ;;  %v4896_v12 = vld [vmem:[%s7553_s1 + $0x298] sm:$0xff] }
  0xc9   : > { %1006 = vmatpush.msra.mxu3 %v4866_v17  ;;  %1582 = vmatpush.msrb.mxu2 %v4923_v14  ;;  %v4908_v17 = vld [vmem:[%s7553_s1 + $0x2f8] sm:$0xff] }
  0xca   : > { %847 = vmatmul.f32.gmra.mxu2 %v5786_v24  ;;  %1386 = vmatpush.msrb.mxu1 %v4908_v17  ;;  %v761_v14 = vld [vmem:[%s5420_s10 + $0x2] sm:$0xff] }
  0xcb   : > { %494 = vmatmul.f32.gmra.mxu0 %v425_v18  ;;  %1007 = vmatpush.msra.mxu3 %v4865_v20  ;;  %v4922_v18 = vld [vmem:[%s7553_s1 + $0x368] sm:$0xff]  ;;  %v4895_v17 = vld [vmem:[%s7553_s1 + $0x290] sm:$0xff] }
  0xcc   : > { %877 = vmatmul.f32.vlgmr.msrb.gmra.mxu3 %v5771_v19  ;;  %1583 = vmatpush.msrb.mxu2 %v4922_v18  ;;  %v4912_v18 = vld [vmem:[%s7553_s1 + $0x318] sm:$0xff] }
  0xcd   : > { %1008 = vmatpush.msra.mxu3 %v4864_v22  ;;  %v4889_v22 = vld [vmem:[%s7553_s1 + $0x260] sm:$0xff] }
  0xce   : > { %643 = vmatmul.f32.gmra.mxu1 %v573_v21  ;;  %v438_v21 = vld [vmem:[%s5420_s10 + $0xa0] sm:$0xff] }
  0xcf   : > { %1009 = vmatpush.msra.mxu3 %v4863_v23  ;;  %v4907_v23 = vld [vmem:[%s7553_s1 + $0x2f0] sm:$0xff] }
  0xd0   : > { %1387 = vmatpush.msrb.mxu1 %v4907_v23  ;;  %v4911_v23 = vld [vmem:[%s7553_s1 + $0x310] sm:$0xff] }
  0xd1   : > { %1010 = vmatpush.msra.mxu3 %v4862_v25  ;;  %v4888_v25 = vld [vmem:[%s7553_s1 + $0x258] sm:$0xff] }
  0xd2   : > { %850 = vmatmul.f32.gmra.mxu2 %v5802_v30 }
  0xd3   : > { %497 = vmatmul.f32.gmra.mxu0 %v426_v26  ;;  %1011 = vmatpush.msra.mxu3 %v4861_v28  ;;  %v4887_v26 = vld [vmem:[%s7553_s1 + $0x250] sm:$0xff]  ;;  %v4906_v28 = vld [vmem:[%s7553_s1 + $0x2e8] sm:$0xff] }
  0xd4   : > { %880 = vmatmul.f32.gmra.mxu3 %v5793_v27  ;;  %1388 = vmatpush.msrb.mxu1 %v4906_v28  ;;  %v4910_v28 = vld [vmem:[%s7553_s1 + $0x308] sm:$0xff] }
  0xd6   : > { %646 = vmatmul.f32.gmra.mxu1 %v574_v29  ;;  %v4920_v29 = vld [vmem:[%s7553_s1 + $0x358] sm:$0xff] }
  0xda   : > { %853 = vmatmul.f32.gmra.mxu2 %v5809_v34 }
  0xdb   : > { %500 = vmatmul.f32.gmra.mxu0 %v427_v31 }
  0xdc   : > { %883 = vmatmul.f32.gmra.mxu3 %v783_v32  ;;  %v4886_v32 = vld [vmem:[%s7553_s1 + $0x248] sm:$0xff] }
  0xde   : > { %649 = vmatmul.f32.gmra.mxu1 %v575_v33  ;;  %v4919_v33 = vld [vmem:[%s7553_s1 + $0x350] sm:$0xff] }
  0xe2   : > { %856 = vmatmul.f32.gmra.mxu2 %v5819_v38 }
  0xe3   : > { %503 = vmatmul.f32.gmra.mxu0 %v428_v35 }
  0xe4   : > { %1012 = vmatmul.f32.vlgmr.msra.gmra.mxu3 %v5813_v36 }
  0xe6   : > { %652 = vmatmul.f32.gmra.mxu1 %v576_v37  ;;  %v439_v37 = vld [vmem:[%s5420_s10 + $0xa8] sm:$0xff] }
  0xea   : > { %859 = vmatmul.f32.gmra.mxu2 %v5829_v42 }
  0xeb   : > { %506 = vmatmul.f32.gmra.mxu0 %v429_v39  ;;  %v4885_v39 = vld [vmem:[%s7553_s1 + $0x240] sm:$0xff] }
  0xec   : > { %1015 = vmatmul.f32.gmra.mxu3 %v5823_v40 }
  0xee   : > { %655 = vmatmul.f32.gmra.mxu1 %v577_v41  ;;  %v4903_v41 = vld [vmem:[%s7553_s1 + $0x2d0] sm:$0xff] }
  0xf2   : > { %862 = vmatmul.f32.gmra.mxu2 %v5836_v45 }
  0xf3   : > { %509 = vmatmul.f32.gmra.mxu0 %v430_v43 }
  0xf4   : > { %1018 = vmatmul.f32.gmra.mxu3 %v5689_v50  ;;  %v580_v50 = vld [vmem:[%s5420_s10 + $0x71] sm:$0xff] }
  0xf6   : > { %658 = vmatmul.f32.gmra.mxu1 %v578_v44  ;;  %v4918_v44 = vld [vmem:[%s7553_s1 + $0x348] sm:$0xff] }
  0xfa   : > { %865 = vmatmul.f32.gmra.mxu2 %v5843_v48 }
  0xfb   : > { %512 = vmatmul.f32.gmra.mxu0 %v431_v46  ;;  %v4884_v46 = vld [vmem:[%s7553_s1 + $0x238] sm:$0xff] }
  0xfc   : > { %1021 = vmatmul.f32.gmra.mxu3 %v5703_v54  ;;  %v5857_v54 = vld [vmem:[%s5420_s10 + $0x92] sm:$0xff] }
  0xfe   : > { %661 = vmatmul.f32.gmra.mxu1 %v579_v47  ;;  %v4940_v47 = vld [vmem:[%s7553_s1 + $0x3f8] sm:$0xff] }
  0xff   : > { %1776 = vmatpush.msrb.mxu3 %v4940_v47 }
 0x102   : > { %868 = vmatmul.f32.gmra.mxu2 %v5850_v51 }
 0x103   : > { %515 = vmatmul.f32.gmra.mxu0 %v432_v49  ;;  %v4883_v49 = vld [vmem:[%s7553_s1 + $0x230] sm:$0xff] }
 0x104   : > { %1024 = vmatmul.f32.gmra.mxu3 %v5713_v58 }
 0x106   : > { %664 = vmatmul.f32.gmra.mxu1 %v580_v50  ;;  %v4902_v50 = vld [vmem:[%s7553_s1 + $0x2c8] sm:$0xff] }
 0x10a   : > { %871 = vmatmul.f32.gmra.mxu2 %v5857_v54 }
 0x10b   : > { %518 = vmatmul.f32.gmra.mxu0 %v433_v52  ;;  %v4901_v52 = vld [vmem:[%s7553_s1 + $0x2c0] sm:$0xff] }
 0x10c   : > { %1027 = vmatmul.f32.gmra.mxu3 %v5729_v1 }
 0x10e   : > { %667 = vmatmul.f32.gmra.mxu1 %v581_v53 }
 0x110   : > { %v474_v55 = vpop.f32.mrf.mxu0 }
 0x112   : > { %874 = vmatmul.f32.gmra.mxu2 %v5865_v60 }
 0x113   : > { %v623_v57 = vpop.f32.mrf.mxu1  ;;  %521 = vmatmul.f32.gmra.mxu0 %v434_v56  ;;  %v4916_v56 = vld [vmem:[%s7553_s1 + $0x338] sm:$0xff] }
 0x114   : > { %1030 = vmatmul.f32.gmra.mxu3 %v5745_v8  ;;  %v715_v58 = vadd.f32 %v623_v57, %v474_v55  ;;  %v437_v8 = vld [vmem:[%s5420_s10 + $0x98] sm:$0xff] }
 0x115   : > { %v4882_v55 = vld [vmem:[%s7553_s1 + $0x228] sm:$0xff]  ;;  %v4900_v57 = vld [vmem:[%s7553_s1 + $0x2b8] sm:$0xff] }
 0x116   : > { %738 = vst [vmem:[#allocation4 + $0xb0] sm:$0xff] %v715_v58 }
 0x117   : > { %v5862_v59 = vpop.f32.mrf.mxu3 }
 0x118   : > { %v477_v61 = vpop.f32.mrf.mxu0 }
 0x11b   : > { %v626_v63 = vpop.f32.mrf.mxu1  ;;  %524 = vmatmul.f32.gmra.mxu0 %v435_v62  ;;  %v4881_v62 = vld [vmem:[%s7553_s1 + $0x220] sm:$0xff] }
 0x11c   : > { %1033 = vmatmul.f32.gmra.mxu3 %v5764_v16  ;;  %v716_v0 = vadd.f32 %v626_v63, %v477_v61  ;;  %v4890_v16 = vld [vmem:[%s7553_s1 + $0x268] sm:$0xff]  ;;  %v440_v61 = vld [vmem:[%s5420_s10 + $0xb0] sm:$0xf] }
 0x11d   : > { %1193 = vmatpush.msra.mxu0 %v4890_v16  ;;  %v5949_v43 = vpop.f32.mrf.mxu2  ;;  %v4899_v63 = vld [vmem:[%s7553_s1 + $0x2b0] sm:$0xff]  ;;  %v4877_v16 = vld [vmem:[%s7553_s1 + $0x200] sm:$0xff] }
 0x11e   : > { %739 = vst [vmem:[#allocation4] sm:$0xff] %v716_v0  ;;  %v4915_v0 = vld [vmem:[%s7553_s1 + $0x330] sm:$0xff] }
 0x11f   : > { %v5870_v1 = vpop.f32.mrf.mxu3  ;;  %1194 = vmatpush.msra.mxu0 %v4889_v22  ;;  %v4894_v22 = vld [vmem:[%s7553_s1 + $0x288] sm:$0xff] }
 0x120   : > { %v480_v2 = vpop.f32.mrf.mxu0 }
 0x121   : > { %1195 = vmatpush.msra.mxu0 %v4888_v25 }
 0x123   : > { %v629_v4 = vpop.f32.mrf.mxu1  ;;  %527 = vmatmul.f32.gmra.mxu0 %v436_v3  ;;  %v4879_v3 = vld [vmem:[%s7553_s1 + $0x210] sm:$0xff] }
 0x124   : > { %1036 = vmatmul.f32.gmra.mxu3 %v5786_v24  ;;  %v717_v5 = vadd.f32 %v629_v4, %v480_v2  ;;  %v4921_v24 = vld [vmem:[%s7553_s1 + $0x360] sm:$0xff]  ;;  %1196 = vmatpush.msra.mxu0 %v4887_v26  ;;  %v4880_v2 = vld [vmem:[%s7553_s1 + $0x218] sm:$0xff]  ;;  %v4898_v4 = vld [vmem:[%s7553_s1 + $0x2a8] sm:$0xff] }
 0x125   : > { %1584 = vmatpush.msrb.mxu2 %v4921_v24  ;;  %v1346_v26 = vld [vmem:[%s5420_s10 + $0x14] sm:$0xff] }
 0x126   : > { %740 = vst [vmem:[#allocation4 + $0x10] sm:$0xff] %v717_v5  ;;  %1197 = vmatpush.msra.mxu0 %v4886_v32  ;;  %v6006_v5 = vpop.f32.mrf.mxu2  ;;  %v4938_v32 = vld [vmem:[%s7553_s1 + $0x3e8] sm:$0xff] }
 0x127   : > { %v5874_v6 = vpop.f32.mrf.mxu3  ;;  %1585 = vmatpush.msrb.mxu2 %v4920_v29 }
 0x128   : > { %v483_v7 = vpop.f32.mrf.mxu0  ;;  %1198 = vmatpush.msra.mxu0 %v4885_v39  ;;  %v4955_v39 = vld [vmem:[%s7553_s1 + $0x470] sm:$0xff] }
 0x129   : > { %1586 = vmatpush.msrb.mxu2 %v4919_v33  ;;  %v4909_v33 = vld [vmem:[%s7553_s1 + $0x300] sm:$0xff] }
 0x12a   : > { %1199 = vmatpush.msra.mxu0 %v4884_v46 }
 0x12b   : > { %v632_v9 = vpop.f32.mrf.mxu1  ;;  %530 = vmatmul.f32.gmra.mxu0 %v437_v8  ;;  %1587 = vmatpush.msrb.mxu2 %v4918_v44 }
 0x12c   : > { %1039 = vmatmul.f32.gmra.mxu3 %v5802_v30  ;;  %v718_v10 = vadd.f32 %v632_v9, %v483_v7  ;;  %v4905_v30 = vld [vmem:[%s7553_s1 + $0x2e0] sm:$0xff]  ;;  %1200 = vmatpush.msra.mxu0 %v4883_v49  ;;  %v4878_v9 = vld [vmem:[%s7553_s1 + $0x208] sm:$0xff] }
 0x12d   : > { %1389 = vmatpush.msrb.mxu1 %v4905_v30  ;;  %v4897_v7 = vld [vmem:[%s7553_s1 + $0x2a0] sm:$0xff] }
 0x12e   : > { %741 = vst [vmem:[#allocation4 + $0x48] sm:$0xff] %v718_v10  ;;  %1201 = vmatpush.msra.mxu0 %v4882_v55  ;;  %v4939_v10 = vld [vmem:[%s7553_s1 + $0x3f0] sm:$0xff]  ;;  %v6055_v25 = vpop.f32.mrf.mxu2 }
 0x12f   : > { %v5890_v15 = vpop.f32.mrf.mxu3  ;;  %1777 = vmatpush.msrb.mxu3 %v4939_v10  ;;  %v762_v30 = vld [vmem:[%s5420_s10 + $0xa] sm:$0xff]  ;;  %v1152_v10 = vld [vmem:[%s5420_s10 + $0x1b] sm:$0xff] }
 0x130   : > { %v5901_v20 = vpop.f32.mrf.mxu0  ;;  %1202 = vmatpush.msra.mxu0 %v4881_v62  ;;  %v1542_v49 = vld [vmem:[%s5420_s10 + $0x2c] sm:$0xff] }
 0x131   : > { %1778 = vmatpush.msrb.mxu3 %v4938_v32 }
 0x132   : > { %1203 = vmatpush.msra.mxu0 %v4880_v2 }
 0x133   : > { %533 = vmatmul.f32.gmra.mxu0 %v438_v21  ;;  %v4956_v21 = vld [vmem:[%s7553_s1 + $0x478] sm:$0xff]  ;;  %v6078_v44 = vpop.f32.mrf.mxu1 }
 0x134   : > { %1042 = vmatmul.f32.gmra.mxu3 %v5809_v34  ;;  %v4904_v34 = vld [vmem:[%s7553_s1 + $0x2d8] sm:$0xff]  ;;  %1204 = vmatpush.msra.mxu0 %v4879_v3 }
 0x135   : > { %1390 = vmatpush.msrb.mxu1 %v4904_v34  ;;  %v1541_v34 = vld [vmem:[%s5420_s10 + $0x24] sm:$0xff] }
 0x136   : > { %1205 = vmatpush.msra.mxu0 %v4878_v9  ;;  %v6082_v47 = vpop.f32.mrf.mxu2  ;;  %v4932_v3 = vld [vmem:[%s7553_s1 + $0x3b8] sm:$0xff] }
 0x137   : > { %v5929_v31 = vpop.f32.mrf.mxu3  ;;  %1391 = vmatpush.msrb.mxu1 %v4903_v41  ;;  %v1347_v41 = vld [vmem:[%s5420_s10 + $0x1c] sm:$0xff] }
 0x138   : > { %v5940_v35 = vpop.f32.mrf.mxu0  ;;  %1206 = vmatpush.msra.mxu0 %v4877_v16  ;;  %v4928_v16 = vld [vmem:[%s7553_s1 + $0x398] sm:$0xff] }
 0x139   : > { %1392 = vmatpush.msrb.mxu1 %v4902_v50  ;;  %v4937_v50 = vld [vmem:[%s7553_s1 + $0x3e0] sm:$0xff] }
 0x13a   : > { %1779 = vmatpush.msrb.mxu3 %v4937_v50  ;;  %v719_v50 = vadd.f32 %v6078_v44, %v5901_v20  ;;  %v977_v20 = vld [vmem:[%s5420_s10 + $0xba] sm:$0xff] }
 0x13b   : > { %536 = vmatmul.f32.gmra.mxu0 %v439_v37  ;;  %1393 = vmatpush.msrb.mxu1 %v4901_v52  ;;  %v4954_v52 = vld [vmem:[%s7553_s1 + $0x468] sm:$0xff]  ;;  %v6097_v55 = vpop.f32.mrf.mxu1 }
 0x13c   : > { %1045 = vmatmul.f32.gmra.mxu3 %v5819_v38  ;;  %v4917_v38 = vld [vmem:[%s7553_s1 + $0x340] sm:$0xff] }
 0x13d   : > { %1588 = vmatpush.msrb.mxu2 %v4917_v38  ;;  %1394 = vmatpush.msrb.mxu1 %v4900_v57  ;;  %v1155_v44 = vld [vmem:[%s5420_s10 + $0x33] sm:$0xff] }
 0x13f   : > { %v5973_v53 = vpop.f32.mrf.mxu3  ;;  %1589 = vmatpush.msrb.mxu2 %v4916_v56  ;;  %1395 = vmatpush.msrb.mxu1 %v4899_v63  ;;  %v4936_v56 = vld [vmem:[%s7553_s1 + $0x3d8] sm:$0xff] }
 0x140   : > { %v5984_v58 = vpop.f32.mrf.mxu0  ;;  %1780 = vmatpush.msrb.mxu3 %v4936_v56  ;;  %v1151_v63 = vld [vmem:[%s5420_s10 + $0x13] sm:$0xff] }
 0x141   : > { %1590 = vmatpush.msrb.mxu2 %v4915_v0  ;;  %1396 = vmatpush.msrb.mxu1 %v4898_v4  ;;  %v1544_v0 = vld [vmem:[%s5420_s10 + $0x3c] sm:$0xff] }
 0x143   : > { %539 = vmatmul.f32.gmra.mxu0 %v440_v61  ;;  %1397 = vmatpush.msrb.mxu1 %v4897_v7  ;;  %v4935_v61 = vld [vmem:[%s7553_s1 + $0x3d0] sm:$0xff]  ;;  %v6122_v2 = vpop.f32.mrf.mxu1 }
 0x144   : > { %1048 = vmatmul.f32.gmra.mxu3 %v5829_v42  ;;  %v4914_v42 = vld [vmem:[%s7553_s1 + $0x328] sm:$0xff]  ;;  %v4931_v7 = vld [vmem:[%s7553_s1 + $0x3b0] sm:$0xff] }
 0x145   : > { %1591 = vmatpush.msrb.mxu2 %v4914_v42  ;;  %1398 = vmatpush.msrb.mxu1 %v4896_v12  ;;  %v4929_v12 = vld [vmem:[%s7553_s1 + $0x3a0] sm:$0xff] }
 0x146   : > { %1781 = vmatpush.msrb.mxu3 %v4935_v61 }
 0x147   : > { %v6014_v8 = vpop.f32.mrf.mxu3  ;;  %1592 = vmatpush.msrb.mxu2 %v4913_v11  ;;  %1399 = vmatpush.msrb.mxu1 %v4895_v17  ;;  %v4930_v11 = vld [vmem:[%s7553_s1 + $0x3a8] sm:$0xff] }
 0x148   : > { %v6028_v13 = vpop.f32.mrf.mxu0 }
 0x149   : > { %1593 = vmatpush.msrb.mxu2 %v4912_v18  ;;  %1400 = vmatpush.msrb.mxu1 %v4894_v22  ;;  %v4927_v22 = vld [vmem:[%s7553_s1 + $0x390] sm:$0xff] }
 0x14b   : > { %817 = vmatmul.f32.vlgmr.msrb.gmra.mxu0 %v761_v14  ;;  %1594 = vmatpush.msrb.mxu2 %v4911_v23  ;;  %v1545_v14 = vld [vmem:[%s5420_s10 + $0x44] sm:$0xff]  ;;  %v6152_v17 = vpop.f32.mrf.mxu1 }
 0x14c   : > { %1051 = vmatmul.f32.gmra.mxu3 %v5836_v45  ;;  %1971 = vmatpush.msrb.mxu0 %v4956_v21  ;;  %v4893_v45 = vld [vmem:[%s7553_s1 + $0x280] sm:$0xff] }
 0x14d   : > { %1401 = vmatpush.msrb.mxu1 %v4893_v45  ;;  %1595 = vmatpush.msrb.mxu2 %v4910_v28  ;;  %v1153_v23 = vld [vmem:[%s5420_s10 + $0x23] sm:$0xff] }
 0x14e   : > { %1402 = vmatmul.f32.vlgmr.msrb.gmra.mxu1 %v1346_v26  ;;  %1972 = vmatpush.msrb.mxu0 %v4955_v39  ;;  %v4926_v45 = vld [vmem:[%s7553_s1 + $0x388] sm:$0xff]  ;;  %v4952_v26 = vld [vmem:[%s7553_s1 + $0x458] sm:$0xff]  ;;  %v4925_v28 = vld [vmem:[%s7553_s1 + $0x380] sm:$0xff] }
 0x14f   : > { %v6053_v24 = vpop.f32.mrf.mxu3  ;;  %1596 = vmatpush.msrb.mxu2 %v4909_v33 }
 0x150   : > { %v6061_v29 = vpop.f32.mrf.mxu0  ;;  %1597 = vmatmul.f32.vlgmr.msrb.gmra.mxu2 %v1541_v34  ;;  %1973 = vmatpush.msrb.mxu0 %v4954_v52  ;;  %v4951_v52 = vld [vmem:[%s7553_s1 + $0x450] sm:$0xff] }
 0x153   : > { %820 = vmatmul.f32.gmra.mxu0 %v762_v30  ;;  %v1546_v30 = vld [vmem:[%s5420_s10 + $0x4c] sm:$0xff]  ;;  %v6177_v33 = vpop.f32.mrf.mxu1 }
 0x154   : > { %1054 = vmatmul.f32.gmra.mxu3 %v5843_v48 }
 0x156   : > { %1405 = vmatmul.f32.gmra.mxu1 %v1347_v41  ;;  %v976_v41 = vld [vmem:[%s5420_s10 + $0xb2] sm:$0xff] }
 0x157   : > { %v6072_v37 = vpop.f32.mrf.mxu3 }
 0x158   : > { %v6080_v46 = vpop.f32.mrf.mxu0  ;;  %1600 = vmatmul.f32.gmra.mxu2 %v1542_v49 }
 0x15b   : > { %823 = vmatmul.f32.gmra.mxu0 %v5813_v36  ;;  %v6099_v36 = vpop.f32.mrf.mxu2 }
 0x15c   : > { %1057 = vmatmul.f32.gmra.mxu3 %v5850_v51  ;;  %v1543_v51 = vld [vmem:[%s5420_s10 + $0x34] sm:$0xff] }
 0x15e   : > { %1408 = vmatmul.f32.gmra.mxu1 %v1541_v34 }
 0x15f   : > { %v6087_v48 = vpop.f32.mrf.mxu3 }
 0x160   : > { %v6092_v38 = vpop.f32.mrf.mxu0  ;;  %1603 = vmatmul.f32.gmra.mxu2 %v1543_v51 }
 0x163   : > { %826 = vmatmul.f32.gmra.mxu0 %v5823_v40  ;;  %v4934_v40 = vld [vmem:[%s7553_s1 + $0x3c8] sm:$0xff]  ;;  %v6128_v4 = vpop.f32.mrf.mxu2 }
 0x164   : > { %1060 = vmatmul.f32.gmra.mxu3 %v5857_v54  ;;  %v4933_v54 = vld [vmem:[%s7553_s1 + $0x3c0] sm:$0xff] }
 0x165   : > { %1782 = vmatpush.msrb.mxu3 %v4934_v40  ;;  %v720_v40 = vadd.f32 %v6097_v55, %v5940_v35  ;;  %v721_v35 = vadd.f32 %v6122_v2, %v5984_v58  ;;  %v1549_v55 = vld [vmem:[%s5420_s10 + $0x64] sm:$0xff] }
 0x166   : > { %1411 = vmatmul.f32.gmra.mxu1 %v1542_v49  ;;  %v1154_v49 = vld [vmem:[%s5420_s10 + $0x2b] sm:$0xff]  ;;  %v1157_v2 = vld [vmem:[%s5420_s10 + $0x43] sm:$0xff] }
 0x167   : > { %v6107_v57 = vpop.f32.mrf.mxu3  ;;  %1783 = vmatpush.msrb.mxu3 %v4933_v54  ;;  %v650_v54 = vpop.f32.mrf.mxu1 }
 0x168   : > { %v6112_v62 = vpop.f32.mrf.mxu0  ;;  %1606 = vmatmul.f32.gmra.mxu2 %v1544_v0 }
 0x169   : > { %1784 = vmatpush.msrb.mxu3 %v4932_v3  ;;  %v1548_v3 = vld [vmem:[%s5420_s10 + $0x5c] sm:$0xff] }
 0x16b   : > { %1207 = vmatmul.f32.vlgmr.msra.gmra.mxu0 %v1151_v63  ;;  %1785 = vmatpush.msrb.mxu3 %v4931_v7  ;;  %v6154_v18 = vpop.f32.mrf.mxu2 }
 0x16c   : > { %1063 = vmatmul.f32.gmra.mxu3 %v5865_v60  ;;  %v4953_v60 = vld [vmem:[%s7553_s1 + $0x460] sm:$0xff] }
 0x16d   : > { %1974 = vmatpush.msrb.mxu0 %v4953_v60  ;;  %1786 = vmatpush.msrb.mxu3 %v4930_v11  ;;  %v978_v11 = vld [vmem:[%s5420_s10 + $0xc2] sm:$0xf] }
 0x16e   : > { %1414 = vmatmul.f32.gmra.mxu1 %v1543_v51  ;;  %v914_v51 = vadd.f32 %v5949_v43, %v719_v50  ;;  %v915_v43 = vadd.f32 %v6006_v5, %v720_v40  ;;  %v4950_v5 = vld [vmem:[%s7553_s1 + $0x448] sm:$0xff] }
 0x16f   : > { %v6130_v42 = vpop.f32.mrf.mxu3  ;;  %1787 = vmatpush.msrb.mxu3 %v4929_v12  ;;  %1975 = vmatpush.msrb.mxu0 %v4952_v26  ;;  %v1156_v12 = vld [vmem:[%s5420_s10 + $0x3b] sm:$0xff]  ;;  %v1736_v26 = vld [vmem:[%s5420_s10 + $0x25] sm:$0xff] }
 0x170   : > { %v6138_v9 = vpop.f32.mrf.mxu0  ;;  %1609 = vmatmul.f32.gmra.mxu2 %v1545_v14 }
 0x171   : > { %1788 = vmatpush.msrb.mxu3 %v4928_v16  ;;  %1976 = vmatpush.msrb.mxu0 %v4951_v52 }
 0x173   : > { %1210 = vmatmul.f32.gmra.mxu0 %v1152_v10  ;;  %1789 = vmatpush.msrb.mxu3 %v4927_v22  ;;  %v6179_v34 = vpop.f32.mrf.mxu2  ;;  %v916_v22 = vadd.f32 %v6055_v25, %v721_v35  ;;  %v4949_v25 = vld [vmem:[%s7553_s1 + $0x440] sm:$0xff] }
 0x174   : > { %1066 = vmatmul.f32.gmra.mxu3 %v5771_v19  ;;  %1977 = vmatpush.msrb.mxu0 %v4950_v5 }
 0x175   : > { %1790 = vmatpush.msrb.mxu3 %v4926_v45 }
 0x176   : > { %1417 = vmatmul.f32.gmra.mxu1 %v1544_v0  ;;  %1978 = vmatpush.msrb.mxu0 %v4949_v25 }
 0x177   : > { %v6156_v21 = vpop.f32.mrf.mxu3  ;;  %1791 = vmatpush.msrb.mxu3 %v4925_v28  ;;  %v722_v28 = vadd.f32 %v6152_v17, %v6028_v13  ;;  %v1158_v17 = vld [vmem:[%s5420_s10 + $0x4b] sm:$0xff] }
 0x178   : > { %v6161_v19 = vpop.f32.mrf.mxu0  ;;  %1612 = vmatmul.f32.gmra.mxu2 %v1546_v30 }
 0x17b   : > { %1213 = vmatmul.f32.gmra.mxu0 %v1153_v23  ;;  %v6200_v0 = vpop.f32.mrf.mxu2 }
 0x17c   : > { %1069 = vmatmul.f32.gmra.mxu3 %v5793_v27  ;;  %v1547_v27 = vld [vmem:[%s5420_s10 + $0x54] sm:$0xff] }
 0x17e   : > { %1420 = vmatmul.f32.gmra.mxu1 %v1545_v14  ;;  %v653_v14 = vpop.f32.mrf.mxu1 }
 0x17f   : > { %v6175_v32 = vpop.f32.mrf.mxu3 }
 0x180   : > { %v6181_v39 = vpop.f32.mrf.mxu0  ;;  %1615 = vmatmul.f32.gmra.mxu2 %v1547_v27 }
 0x183   : > { %1216 = vmatmul.f32.gmra.mxu0 %v1154_v49  ;;  %v6216_v16 = vpop.f32.mrf.mxu2 }
 0x184   : > { %1072 = vmatmul.f32.gmra.mxu3 %v976_v41  ;;  %v917_v41 = vadd.f32 %v6082_v47, %v722_v28  ;;  %v4948_v28 = vld [vmem:[%s7553_s1 + $0x438] sm:$0xff] }
 0x185   : > { %1979 = vmatpush.msrb.mxu0 %v4948_v28  ;;  %v1163_v28 = vld [vmem:[%s5420_s10 + $0x73] sm:$0xff] }
 0x186   : > { %1423 = vmatmul.f32.gmra.mxu1 %v1546_v30  ;;  %v1550_v30 = vld [vmem:[%s5420_s10 + $0x6c] sm:$0xff]  ;;  %v656_v49 = vpop.f32.mrf.mxu1 }
 0x187   : > { %v1025_v56 = vpop.f32.mrf.mxu3 }
 0x188   : > { %v6192_v61 = vadd.f32 %v1025_v56, %v914_v51  ;;  %v6194_v63 = vpop.f32.mrf.mxu0  ;;  %1618 = vmatmul.f32.gmra.mxu2 %v1548_v3  ;;  %v1737_v51 = vld [vmem:[%s5420_s10 + $0x2d] sm:$0xff]  ;;  %v723_v56 = vadd.f32 %v6177_v33, %v6061_v29  ;;  %v1738_v29 = vld [vmem:[%s5420_s10 + $0x35] sm:$0xff]  ;;  %v724_v33 = vadd.f32 %v650_v54, %v6080_v46 }
 0x18a   : > { %v918_v47 = vadd.f32 %v6099_v36, %v723_v56  ;;  %v919_v36 = vadd.f32 %v6128_v4, %v724_v33 }
 0x18b   : > { %1219 = vmatmul.f32.gmra.mxu0 %v1155_v44  ;;  %v6232_v50 = vpop.f32.mrf.mxu2 }
 0x18c   : > { %1075 = vmatmul.f32.gmra.mxu3 %v977_v20  ;;  %v1551_v20 = vld [vmem:[%s5420_s10 + $0x74] sm:$0xff] }
 0x18e   : > { %1426 = vmatmul.f32.gmra.mxu1 %v1547_v27  ;;  %v659_v40 = vpop.f32.mrf.mxu1 }
 0x18f   : > { %v1028_v7 = vpop.f32.mrf.mxu3  ;;  %v727_v33 = vadd.f32 %v659_v40, %v6138_v9 }
 0x190   : > { %v6204_v60 = vadd.f32 %v1028_v7, %v915_v43  ;;  %v6206_v10 = vpop.f32.mrf.mxu0  ;;  %1621 = vmatmul.f32.gmra.mxu2 %v1549_v55 }
 0x193   : > { %1222 = vmatmul.f32.gmra.mxu0 %v1156_v12  ;;  %v6246_v43 = vpop.f32.mrf.mxu2  ;;  %v1552_v12 = vld [vmem:[%s5420_s10 + $0x7c] sm:$0xff] }
 0x194   : > { %1078 = vmatmul.f32.gmra.mxu3 %v978_v11  ;;  %v1159_v11 = vld [vmem:[%s5420_s10 + $0x53] sm:$0xff] }
 0x196   : > { %1429 = vmatmul.f32.gmra.mxu1 %v1548_v3  ;;  %v662_v46 = vpop.f32.mrf.mxu1 }
 0x197   : > { %v1031_v23 = vpop.f32.mrf.mxu3  ;;  %v728_v9 = vadd.f32 %v662_v46, %v6161_v19 }
 0x198   : > { %v6219_v45 = vadd.f32 %v1031_v23, %v916_v22  ;;  %v6221_v58 = vpop.f32.mrf.mxu0  ;;  %1624 = vmatmul.f32.gmra.mxu2 %v1550_v30  ;;  %v1160_v22 = vld [vmem:[%s5420_s10 + $0x5b] sm:$0xff] }
 0x199   : > { %v1739_v23 = vld [vmem:[%s5420_s10 + $0x3d] sm:$0xff] }
 0x19b   : > { %1225 = vmatmul.f32.gmra.mxu0 %v1157_v2  ;;  %v725_v2 = vadd.f32 %v653_v14, %v6092_v38  ;;  %v6262_v54 = vpop.f32.mrf.mxu2 }
 0x19c   : > { %1792 = vmatmul.f32.vlgmr.msrb.gmra.mxu3 %v1736_v26  ;;  %v1553_v26 = vld [vmem:[%s5420_s10 + $0x84] sm:$0xff] }
 0x19d   : > { %v920_v4 = vadd.f32 %v6154_v18, %v725_v2  ;;  %v726_v18 = vadd.f32 %v656_v49, %v6112_v62  ;;  %v1162_v62 = vld [vmem:[%s5420_s10 + $0x6b] sm:$0xff] }
 0x19e   : > { %1432 = vmatmul.f32.gmra.mxu1 %v1549_v55  ;;  %v1741_v49 = vld [vmem:[%s5420_s10 + $0x4d] sm:$0xff] }
 0x19f   : > { %v1034_v27 = vpop.f32.mrf.mxu3 }
 0x1a0   : > { %v6234_v52 = vadd.f32 %v1034_v27, %v917_v41  ;;  %v6236_v13 = vpop.f32.mrf.mxu0  ;;  %1627 = vmatmul.f32.gmra.mxu2 %v1551_v20  ;;  %v1161_v41 = vld [vmem:[%s5420_s10 + $0x63] sm:$0xff] }
 0x1a1   : > { %v1740_v27 = vld [vmem:[%s5420_s10 + $0x45] sm:$0xff] }
 0x1a3   : > { %1228 = vmatmul.f32.gmra.mxu0 %v1158_v17  ;;  %v1554_v17 = vld [vmem:[%s5420_s10 + $0x8c] sm:$0xff]  ;;  %v6280_v56 = vpop.f32.mrf.mxu2 }
 0x1a4   : > { %1795 = vmatmul.f32.gmra.mxu3 %v1737_v51  ;;  %v665_v51 = vpop.f32.mrf.mxu1 }
 0x1a6   : > { %1435 = vmatmul.f32.gmra.mxu1 %v1550_v30  ;;  %v4947_v30 = vld [vmem:[%s7553_s1 + $0x430] sm:$0xff] }
 0x1a7   : > { %v1037_v44 = vpop.f32.mrf.mxu3  ;;  %1980 = vmatpush.msrb.mxu0 %v4947_v30  ;;  %v1742_v30 = vld [vmem:[%s5420_s10 + $0x55] sm:$0xff] }
 0x1a8   : > { %v6244_v3 = vadd.f32 %v1037_v44, %v918_v47  ;;  %v6248_v7 = vpop.f32.mrf.mxu0  ;;  %1630 = vmatmul.f32.gmra.mxu2 %v1552_v12 }
 0x1ab   : > { %1231 = vmatmul.f32.gmra.mxu0 %v1159_v11  ;;  %v4946_v11 = vld [vmem:[%s7553_s1 + $0x428] sm:$0xff] }
 0x1ac   : > { %1798 = vmatmul.f32.gmra.mxu3 %v1738_v29  ;;  %1981 = vmatpush.msrb.mxu0 %v4946_v11  ;;  %v1557_v11 = vld [vmem:[%s5420_s10 + $0xa4] sm:$0xff] }
 0x1ae   : > { %1438 = vmatmul.f32.gmra.mxu1 %v1551_v20  ;;  %v921_v20 = vadd.f32 %v6179_v34, %v726_v18  ;;  %v922_v34 = vadd.f32 %v6200_v0, %v727_v33  ;;  %v4945_v0 = vld [vmem:[%s7553_s1 + $0x420] sm:$0xff] }
 0x1af   : > { %v1040_v35 = vpop.f32.mrf.mxu3  ;;  %1982 = vmatpush.msrb.mxu0 %v4945_v0  ;;  %v1164_v18 = vld [vmem:[%s5420_s10 + $0x7b] sm:$0xff]  ;;  %v1166_v0 = vld [vmem:[%s5420_s10 + $0x8b] sm:$0xff] }
 0x1b0   : > { %v6255_v55 = vadd.f32 %v1040_v35, %v919_v36  ;;  %v6257_v5 = vpop.f32.mrf.mxu0  ;;  %1633 = vmatmul.f32.gmra.mxu2 %v1553_v26  ;;  %v668_v36 = vpop.f32.mrf.mxu1 }
 0x1b1   : > { %v6293_v35 = vpop.f32.mrf.mxu2 }
 0x1b3   : > { %1234 = vmatmul.f32.gmra.mxu0 %v1160_v22 }
 0x1b4   : > { %1801 = vmatmul.f32.gmra.mxu3 %v1739_v23 }
 0x1b6   : > { %1441 = vmatmul.f32.gmra.mxu1 %v1552_v12  ;;  %v1555_v12 = vld [vmem:[%s5420_s10 + $0x94] sm:$0xff] }
 0x1b7   : > { %v1043_v38 = vpop.f32.mrf.mxu3 }
 0x1b8   : > { %v6272_v14 = vadd.f32 %v1043_v38, %v920_v4  ;;  %v6274_v25 = vpop.f32.mrf.mxu0  ;;  %1636 = vmatmul.f32.gmra.mxu2 %v1554_v17  ;;  %v923_v38 = vadd.f32 %v6216_v16, %v728_v9  ;;  %v4944_v16 = vld [vmem:[%s7553_s1 + $0x418] sm:$0xff] }
 0x1b9   : > { %1983 = vmatpush.msrb.mxu0 %v4944_v16  ;;  %v1746_v16 = vld [vmem:[%s5420_s10 + $0x75] sm:$0xff] }
 0x1bb   : > { %1237 = vmatmul.f32.gmra.mxu0 %v1161_v41 }
 0x1bc   : > { %1804 = vmatmul.f32.gmra.mxu3 %v1740_v27 }
 0x1be   : > { %1444 = vmatmul.f32.gmra.mxu1 %v1553_v26  ;;  %v1556_v26 = vld [vmem:[%s5420_s10 + $0x9c] sm:$0xff] }
 0x1bf   : > { %v1046_v47 = vpop.f32.mrf.mxu3 }
 0x1c0   : > { %v6283_v44 = vadd.f32 %v1046_v47, %v921_v20  ;;  %v540_v29 = vpop.f32.mrf.mxu0  ;;  %1639 = vmatmul.f32.gmra.mxu2 %v1555_v12  ;;  %v1743_v20 = vld [vmem:[%s5420_s10 + $0x5d] sm:$0xff] }
 0x1c1   : > { %565 = vst [vmem:[#allocation4 + $0x8] sm:$0xf] %v540_v29 }
 0x1c3   : > { %1240 = vmatmul.f32.gmra.mxu0 %v1162_v62 }
 0x1c4   : > { %1807 = vmatmul.f32.gmra.mxu3 %v1741_v49 }
 0x1c6   : > { %1447 = vmatmul.f32.gmra.mxu1 %v1554_v17  ;;  %v729_v17 = vadd.f32 %v665_v51, %v6181_v39 }
 0x1c7   : > { %v1049_v22 = vpop.f32.mrf.mxu3 }
 0x1c8   : > { %v6295_v23 = vadd.f32 %v1049_v22, %v922_v34  ;;  %v714_v2 = vld [vmem:[#allocation4 + $0x8] sm:$0xf]  ;;  %v818_v4 = vpop.f32.mrf.mxu0  ;;  %1642 = vmatmul.f32.gmra.mxu2 %v1556_v26  ;;  %v924_v62 = vadd.f32 %v6232_v50, %v729_v17  ;;  %v730_v22 = vadd.f32 %v668_v36, %v6194_v63  ;;  %v4943_v36 = vld [vmem:[%s7553_s1 + $0x410] sm:$0xff] }
 0x1c9   : > { %v737_v40 = vadd.f32 %v714_v2, %v6014_v8  ;;  %v6308_v8 = vpop.f32.mrf.mxu2  ;;  %v1558_v2 = vld [vmem:[%s5420_s10 + $0xac] sm:$0xff]  ;;  %1984 = vmatpush.msrb.mxu0 %v4943_v36 }
 0x1ca   : > { %v925_v50 = vadd.f32 %v6246_v43, %v730_v22  ;;  %v1559_v43 = vld [vmem:[%s5420_s10 + $0xb4] sm:$0xff] }
 0x1cb   : > { %760 = vst [vmem:[#allocation4 + $0x8] sm:$0xf] %v737_v40  ;;  %1243 = vmatmul.f32.gmra.mxu0 %v1163_v28  ;;  %v1403_v19 = vpop.f32.mrf.mxu1  ;;  %v4942_v22 = vld [vmem:[%s7553_s1 + $0x408] sm:$0xff] }
 0x1cc   : > { %1810 = vmatmul.f32.gmra.mxu3 %v1742_v30  ;;  %1985 = vmatpush.msrb.mxu0 %v4942_v22  ;;  %v1562_v22 = vld [vmem:[%s5420_s10 + $0xcc] sm:$0xff] }
 0x1ce   : > { %1450 = vmatmul.f32.gmra.mxu1 %v1555_v12  ;;  %v1744_v12 = vld [vmem:[%s5420_s10 + $0x65] sm:$0xff] }
 0x1cf   : > { %v1052_v41 = vpop.f32.mrf.mxu3 }
 0x1d0   : > { %v6306_v46 = vadd.f32 %v1052_v41, %v923_v38  ;;  %v821_v27 = vpop.f32.mrf.mxu0  ;;  %1645 = vmatmul.f32.gmra.mxu2 %v1557_v11  ;;  %v1745_v38 = vld [vmem:[%s5420_s10 + $0x6d] sm:$0xff] }
 0x1d2   : > { %v909_v47 = vld [vmem:[#allocation4 + $0x8] sm:$0xf] }
 0x1d3   : > { %v932_v29 = vadd.f32 %v909_v47, %v6087_v48  ;;  %1246 = vmatmul.f32.gmra.mxu0 %v1164_v18  ;;  %v1406_v51 = vpop.f32.mrf.mxu1  ;;  %v1165_v48 = vld [vmem:[%s5420_s10 + $0x83] sm:$0xff]  ;;  %v1598_v34 = vpop.f32.mrf.mxu2 }
 0x1d4   : > { %1813 = vmatmul.f32.gmra.mxu3 %v1743_v20 }
 0x1d5   : > { %955 = vst [vmem:[#allocation4 + $0x8] sm:$0xf] %v932_v29  ;;  %v1167_v29 = vld [vmem:[%s5420_s10 + $0x93] sm:$0xff] }
 0x1d6   : > { %1453 = vmatmul.f32.gmra.mxu1 %v1556_v26  ;;  %v887_v26 = vld [vmem:[#allocation4 + $0xb0] sm:$0xff] }
 0x1d7   : > { %v1055_v39 = vpop.f32.mrf.mxu3  ;;  %v910_v41 = vadd.f32 %v887_v26, %v818_v4  ;;  %v889_v26 = vld [vmem:[#allocation4 + $0x10] sm:$0xff] }
 0x1d8   : > { %v6319_v49 = vadd.f32 %v1055_v39, %v924_v62  ;;  %v824_v33 = vpop.f32.mrf.mxu0  ;;  %1648 = vmatmul.f32.gmra.mxu2 %v1558_v2 }
 0x1d9   : > { %v1105_v17 = vadd.f32 %v6107_v57, %v910_v41  ;;  %v1561_v41 = vld [vmem:[%s5420_s10 + $0xc4] sm:$0xff] }
 0x1db   : > { %1249 = vmatmul.f32.gmra.mxu0 %v1165_v48  ;;  %v6326_v30 = vpop.f32.mrf.mxu1  ;;  %v1601_v63 = vpop.f32.mrf.mxu2  ;;  %v1560_v48 = vld [vmem:[%s5420_s10 + $0xbc] sm:$0xff] }
 0x1dc   : > { %1816 = vmatmul.f32.gmra.mxu3 %v1744_v12 }
 0x1de   : > { %1456 = vmatmul.f32.gmra.mxu1 %v1557_v11  ;;  %v888_v11 = vld [vmem:[#allocation4] sm:$0xff] }
 0x1df   : > { %v1058_v28 = vpop.f32.mrf.mxu3  ;;  %v911_v4 = vadd.f32 %v888_v11, %v821_v27  ;;  %v1747_v27 = vld [vmem:[%s5420_s10 + $0x7d] sm:$0xff] }
 0x1e0   : > { %v6328_v9 = vadd.f32 %v1058_v28, %v925_v50  ;;  %v6330_v40 = vpop.f32.mrf.mxu0  ;;  %1651 = vmatmul.f32.gmra.mxu2 %v1559_v43  ;;  %v1169_v11 = vld [vmem:[%s5420_s10 + $0xa3] sm:$0xff] }
 0x1e3   : > { %1252 = vmatmul.f32.gmra.mxu0 %v1166_v0  ;;  %v6340_v20 = vpop.f32.mrf.mxu1  ;;  %v1604_v62 = vpop.f32.mrf.mxu2 }
 0x1e4   : > { %1819 = vmatmul.f32.gmra.mxu3 %v1745_v38  ;;  %v1168_v38 = vld [vmem:[%s5420_s10 + $0x9b] sm:$0xff] }
 0x1e6   : > { %1459 = vmatmul.f32.gmra.mxu1 %v1558_v2  ;;  %v1106_v2 = vadd.f32 %v6130_v42, %v911_v4  ;;  %v1748_v4 = vld [vmem:[%s5420_s10 + $0x85] sm:$0xff] }
 0x1e7   : > { %v6338_v18 = vpop.f32.mrf.mxu3 }
 0x1e8   : > { %v1208_v47 = vpop.f32.mrf.mxu0  ;;  %1654 = vmatmul.f32.gmra.mxu2 %v1560_v48 }
 0x1e9   : > { %v1300_v39 = vadd.f32 %v1208_v47, %v1105_v17  ;;  %v912_v17 = vadd.f32 %v889_v26, %v824_v33 }
 0x1eb   : > { %1255 = vmatmul.f32.gmra.mxu0 %v1167_v29  ;;  %v1495_v12 = vadd.f32 %v1403_v19, %v1300_v39  ;;  %v1415_v28 = vpop.f32.mrf.mxu1  ;;  %v1607_v36 = vpop.f32.mrf.mxu2  ;;  %v1107_v42 = vadd.f32 %v6156_v21, %v912_v17 }
 0x1ec   : > { %1822 = vmatmul.f32.gmra.mxu3 %v1746_v16 }
 0x1ed   : > { %v6349_v57 = vadd.f32 %v1598_v34, %v1495_v12 }
 0x1ee   : > { %1462 = vmatmul.f32.gmra.mxu1 %v1559_v43  ;;  %v734_v43 = vadd.f32 %v5890_v15, %v6248_v7 }
 0x1ef   : > { %v6351_v50 = vpop.f32.mrf.mxu3 }
 0x1f0   : > { %v1211_v0 = vpop.f32.mrf.mxu0  ;;  %1657 = vmatmul.f32.gmra.mxu2 %v1561_v41  ;;  %v929_v15 = vadd.f32 %v6308_v8, %v734_v43 }
 0x1f1   : > { %v1301_v19 = vadd.f32 %v1211_v0, %v1106_v2 }
 0x1f3   : > { %1258 = vmatmul.f32.gmra.mxu0 %v1168_v38  ;;  %v1496_v34 = vadd.f32 %v1406_v51, %v1301_v19  ;;  %v1418_v16 = vpop.f32.mrf.mxu1  ;;  %v1610_v12 = vpop.f32.mrf.mxu2  ;;  %v4941_v51 = vld [vmem:[%s7553_s1 + $0x400] sm:$0xff] }
 0x1f4   : > { %1825 = vmatmul.f32.gmra.mxu3 %v1747_v27  ;;  %1986 = vmatpush.msrb.mxu0 %v4941_v51  ;;  %v1170_v19 = vld [vmem:[%s5420_s10 + $0xab] sm:$0xff] }
 0x1f5   : > { %v6357_v47 = vadd.f32 %v1601_v63, %v1496_v34  ;;  %v890_v63 = vld [vmem:[#allocation4 + $0x48] sm:$0xff] }
 0x1f6   : > { %1465 = vmatmul.f32.gmra.mxu1 %v1560_v48  ;;  %v913_v21 = vadd.f32 %v890_v63, %v6330_v40  ;;  %v1749_v40 = vld [vmem:[%s5420_s10 + $0x8d] sm:$0xff] }
 0x1f7   : > { %v6359_v29 = vpop.f32.mrf.mxu3 }
 0x1f8   : > { %v1214_v39 = vpop.f32.mrf.mxu0  ;;  %1660 = vmatmul.f32.gmra.mxu2 %v1562_v22  ;;  %v1108_v48 = vadd.f32 %v6175_v32, %v913_v21  ;;  %v1172_v22 = vld [vmem:[%s5420_s10 + $0xbb] sm:$0xff] }
 0x1f9   : > { %v1302_v33 = vadd.f32 %v1214_v39, %v1107_v42  ;;  %v1171_v42 = vld [vmem:[%s5420_s10 + $0xb3] sm:$0xff]  ;;  %v1751_v21 = vld [vmem:[%s5420_s10 + $0x9d] sm:$0xff] }
 0x1fa   : > { %v1750_v39 = vld [vmem:[%s5420_s10 + $0x95] sm:$0xff] }
 0x1fb   : > { %1261 = vmatmul.f32.gmra.mxu0 %v1169_v11  ;;  %v1497_v2 = vadd.f32 %v6326_v30, %v1302_v33  ;;  %v1421_v41 = vpop.f32.mrf.mxu1  ;;  %v1613_v30 = vpop.f32.mrf.mxu2 }
 0x1fc   : > { %1828 = vmatmul.f32.gmra.mxu3 %v1748_v4  ;;  %v1563_v4 = vld [vmem:[%s5420_s10 + $0xd4] sm:$0xf] }
 0x1fd   : > { %v6373_v7 = vadd.f32 %v1604_v62, %v1497_v2  ;;  %v1368_v62 = vld [vmem:[%s5420_s10 + $0xc4] sm:$0xf] }
 0x1fe   : > { %1468 = vmatmul.f32.gmra.mxu1 %v1368_v62 }
 0x1ff   : > { %v1070_v0 = vpop.f32.mrf.mxu3 }
 0x200   : > { %v6375_v38 = vadd.f32 %v1070_v0, %v929_v15  ;;  %v1217_v27 = vpop.f32.mrf.mxu0  ;;  %1663 = vmatmul.f32.gmra.mxu2 %v1563_v4 }
 0x201   : > { %v1303_v26 = vadd.f32 %v1217_v27, %v1108_v48  ;;  %v1104_v48 = vld [vmem:[#allocation4 + $0x8] sm:$0xf] }
 0x203   : > { %1264 = vmatmul.f32.gmra.mxu0 %v1170_v19  ;;  %v1498_v8 = vadd.f32 %v6340_v20, %v1303_v26  ;;  %v1424_v33 = vpop.f32.mrf.mxu1  ;;  %v1616_v20 = vpop.f32.mrf.mxu2  ;;  %v1752_v26 = vld [vmem:[%s5420_s10 + $0xa5] sm:$0xff] }
 0x204   : > { %1831 = vmatmul.f32.gmra.mxu3 %v1749_v40  ;;  %v1173_v40 = vld [vmem:[%s5420_s10 + $0xc3] sm:$0xf] }
 0x205   : > { %v6382_v17 = vadd.f32 %v1607_v36, %v1498_v8 }
 0x207   : > { %v6384_v34 = vpop.f32.mrf.mxu3 }
 0x208   : > { %v1220_v32 = vpop.f32.mrf.mxu0 }
 0x209   : > { %v1304_v11 = vadd.f32 %v1220_v32, %v6192_v61 }
 0x20b   : > { %1267 = vmatmul.f32.gmra.mxu0 %v1171_v42  ;;  %v1499_v43 = vadd.f32 %v1415_v28, %v1304_v11  ;;  %v1427_v0 = vpop.f32.mrf.mxu1  ;;  %v1931_v11 = vld [vmem:[%s5420_s10 + $0x26] sm:$0xff] }
 0x20c   : > { %1834 = vmatmul.f32.gmra.mxu3 %v1750_v39  ;;  %v1753_v39 = vld [vmem:[%s5420_s10 + $0xad] sm:$0xff] }
 0x20d   : > { %v6390_v51 = vadd.f32 %v1610_v12, %v1499_v43  ;;  %v1619_v12 = vpop.f32.mrf.mxu2 }
 0x20f   : > { %v6392_v36 = vpop.f32.mrf.mxu3 }
 0x210   : > { %v1223_v63 = vpop.f32.mrf.mxu0 }
 0x211   : > { %v1305_v2 = vadd.f32 %v1223_v63, %v6204_v60 }
 0x213   : > { %1270 = vmatmul.f32.gmra.mxu0 %v1172_v22  ;;  %v1500_v61 = vadd.f32 %v1418_v16, %v1305_v2  ;;  %v6405_v32 = vpop.f32.mrf.mxu1  ;;  %v1754_v22 = vld [vmem:[%s5420_s10 + $0xb5] sm:$0xff] }
 0x214   : > { %1837 = vmatmul.f32.gmra.mxu3 %v1751_v21  ;;  %v1932_v21 = vld [vmem:[%s5420_s10 + $0x2e] sm:$0xff] }
 0x215   : > { %v6397_v15 = vadd.f32 %v1613_v30, %v1500_v61  ;;  %v1622_v4 = vpop.f32.mrf.mxu2 }
 0x217   : > { %v1079_v28 = vpop.f32.mrf.mxu3 }
 0x218   : > { %v1127_v27 = vadd.f32 %v1104_v48, %v1079_v28  ;;  %v1226_v19 = vpop.f32.mrf.mxu0 }
 0x219   : > { %v1306_v8 = vadd.f32 %v1226_v19, %v6219_v45  ;;  %v1933_v19 = vld [vmem:[%s5420_s10 + $0x36] sm:$0xff] }
 0x21a   : > { %1150 = vst [vmem:[#allocation4 + $0x8] sm:$0xf] %v1127_v27  ;;  %v1755_v27 = vld [vmem:[%s5420_s10 + $0xbd] sm:$0xff] }
 0x21b   : > { %1273 = vmatmul.f32.gmra.mxu0 %v1173_v40  ;;  %v1501_v60 = vadd.f32 %v1421_v41, %v1306_v8  ;;  %v6416_v61 = vpop.f32.mrf.mxu1 }
 0x21c   : > { %1840 = vmatmul.f32.gmra.mxu3 %v1752_v26 }
 0x21d   : > { %v1696_v62 = vadd.f32 %v1616_v20, %v1501_v60  ;;  %v1625_v28 = vpop.f32.mrf.mxu2  ;;  %v1756_v60 = vld [vmem:[%s5420_s10 + $0xc5] sm:$0xff] }
 0x21f   : > { %v1793_v16 = vpop.f32.mrf.mxu3 }
 0x220   : > { %v6403_v30 = vadd.f32 %v1793_v16, %v6349_v57  ;;  %v1229_v42 = vpop.f32.mrf.mxu0  ;;  %v1934_v16 = vld [vmem:[%s5420_s10 + $0x3e] sm:$0xff] }
 0x221   : > { %v1307_v43 = vadd.f32 %v1229_v42, %v6234_v52 }
 0x223   : > { %1987 = vmatmul.f32.vlgmr.msrb.gmra.mxu0 %v1931_v11  ;;  %v1502_v45 = vadd.f32 %v1424_v33, %v1307_v43  ;;  %v1757_v43 = vld [vmem:[%s5420_s10 + $0xcd] sm:$0xff] }
 0x224   : > { %1843 = vmatmul.f32.gmra.mxu3 %v1753_v39 }
 0x225   : > { %v1697_v63 = vadd.f32 %v1619_v12, %v1502_v45  ;;  %v1628_v40 = vpop.f32.mrf.mxu2 }
 0x227   : > { %v1796_v41 = vpop.f32.mrf.mxu3 }
 0x228   : > { %v6411_v20 = vadd.f32 %v1796_v41, %v6357_v47  ;;  %v1232_v57 = vpop.f32.mrf.mxu0 }
 0x229   : > { %v1308_v2 = vadd.f32 %v1232_v57, %v6244_v3  ;;  %v6423_v3 = vpop.f32.mrf.mxu1 }
 0x22b   : > { %1990 = vmatmul.f32.gmra.mxu0 %v1932_v21  ;;  %v1503_v52 = vadd.f32 %v1427_v0, %v1308_v2  ;;  %v1758_v21 = vld [vmem:[%s5420_s10 + $0xd5] sm:$0xf] }
 0x22c   : > { %1846 = vmatmul.f32.gmra.mxu3 %v1754_v22  ;;  %v1936_v2 = vld [vmem:[%s5420_s10 + $0x4e] sm:$0xff] }
 0x22d   : > { %v1698_v33 = vadd.f32 %v1622_v4, %v1503_v52  ;;  %v6432_v39 = vpop.f32.mrf.mxu2 }
 0x22f   : > { %v1799_v48 = vpop.f32.mrf.mxu3 }
 0x230   : > { %v6419_v12 = vadd.f32 %v1799_v48, %v6373_v7  ;;  %v1235_v47 = vpop.f32.mrf.mxu0 }
 0x231   : > { %v6430_v7 = vpop.f32.mrf.mxu1 }
 0x233   : > { %1993 = vmatmul.f32.gmra.mxu0 %v1933_v19  ;;  %v1937_v19 = vld [vmem:[%s5420_s10 + $0x56] sm:$0xff] }
 0x234   : > { %1849 = vmatmul.f32.gmra.mxu3 %v1755_v27 }
 0x235   : > { %v6446_v52 = vpop.f32.mrf.mxu2 }
 0x237   : > { %v1802_v26 = vpop.f32.mrf.mxu3 }
 0x238   : > { %v6426_v8 = vadd.f32 %v1802_v26, %v6382_v17  ;;  %v1238_v0 = vpop.f32.mrf.mxu0  ;;  %v1935_v17 = vld [vmem:[%s5420_s10 + $0x46] sm:$0xff] }
 0x239   : > { %v6442_v57 = vpop.f32.mrf.mxu1 }
 0x23a   : > { %7565 = vst [vmem:[#allocation15_spill] sm:$0xff] %v6426_v8  ;;  %v5242_v8 = vmov 0  }
 0x23b   : > { %1996 = vmatmul.f32.gmra.mxu0 %v1934_v16 }
 0x23c   : > { %1852 = vmatmul.f32.gmra.mxu3 %v1756_v60 }
 0x23f   : > { %v1805_v42 = vpop.f32.mrf.mxu3 }
 0x240   : > { %v6435_v11 = vadd.f32 %v1805_v42, %v6390_v51  ;;  %v1241_v4 = vpop.f32.mrf.mxu0 }
 0x241   : > { %v6453_v26 = vpop.f32.mrf.mxu1 }
 0x242   : > { %7566 = vst [vmem:[#allocation16_spill] sm:$0xff] %v6435_v11 }
 0x243   : > { %1999 = vmatmul.f32.gmra.mxu0 %v1935_v17 }
 0x244   : > { %1855 = vmatmul.f32.gmra.mxu3 %v1757_v43  ;;  %v1938_v43 = vld [vmem:[%s5420_s10 + $0x5e] sm:$0xff] }
 0x247   : > { %v1808_v45 = vpop.f32.mrf.mxu3 }
 0x248   : > { %v6440_v41 = vadd.f32 %v1808_v45, %v6397_v15  ;;  %v1244_v22 = vpop.f32.mrf.mxu0  ;;  %v6455_v15 = vpop.f32.mrf.mxu2  ;;  %v1309_v45 = vadd.f32 %v1235_v47, %v6255_v55 }
 0x249   : > { %v6462_v17 = vpop.f32.mrf.mxu1 }
 0x24a   : > { %7567 = vst [vmem:[#allocation17_spill] sm:$0xff] %v6440_v41 }
 0x24b   : > { %2002 = vmatmul.f32.gmra.mxu0 %v1936_v2 }
 0x24c   : > { %1858 = vmatmul.f32.gmra.mxu3 %v1758_v21 }
 0x24f   : > { %v1811_v51 = vpop.f32.mrf.mxu3 }
 0x250   : > { %v6448_v48 = vadd.f32 %v1811_v51, %v1696_v62  ;;  %v6450_v27 = vpop.f32.mrf.mxu0  ;;  %v6464_v62 = vpop.f32.mrf.mxu2 }
 0x252   : > { %7568 = vst [vmem:[#allocation18_spill] sm:$0xff] %v6448_v48 }
 0x253   : > { %2005 = vmatmul.f32.gmra.mxu0 %v1937_v19  ;;  %v1939_v19 = vld [vmem:[%s5420_s10 + $0x66] sm:$0xff] }
 0x257   : > { %v1814_v60 = vpop.f32.mrf.mxu3 }
 0x258   : > { %v6457_v16 = vadd.f32 %v1814_v60, %v1697_v63  ;;  %v6459_v42 = vpop.f32.mrf.mxu0  ;;  %v1504_v63 = vadd.f32 %v6405_v32, %v1309_v45  ;;  %v1310_v60 = vadd.f32 %v1238_v0, %v6272_v14  ;;  %v6476_v41 = vpop.f32.mrf.mxu2  ;;  %v1311_v32 = vadd.f32 %v1241_v4, %v6283_v44 }
 0x25a   : > { %7569 = vst [vmem:[#allocation19_spill] sm:$0xff] %v6457_v16  ;;  %v1699_v16 = vadd.f32 %v1625_v28, %v1504_v63  ;;  %v1505_v47 = vadd.f32 %v6416_v61, %v1310_v60 }
 0x25b   : > { %2008 = vmatmul.f32.gmra.mxu0 %v1938_v43  ;;  %v6474_v43 = vpop.f32.mrf.mxu1 }
 0x25c   : > { %v1700_v45 = vadd.f32 %v1628_v40, %v1505_v47  ;;  %v1312_v47 = vadd.f32 %v1244_v22, %v6295_v23  ;;  %v1942_v23 = vld [vmem:[%s5420_s10 + $0x7e] sm:$0xff] }
 0x25f   : > { %v1817_v21 = vpop.f32.mrf.mxu3 }
 0x260   : > { %v6467_v2 = vadd.f32 %v1817_v21, %v1698_v33  ;;  %v6469_v51 = vpop.f32.mrf.mxu0  ;;  %v1940_v33 = vld [vmem:[%s5420_s10 + $0x6e] sm:$0xff]  ;;  %v2126_v21 = vlaneseq  ;;  %v6492_v61 = vpop.f32.mrf.mxu2 }
 0x262   : > { %7570 = vst [vmem:[#allocation20_spill] sm:$0xff] %v6467_v2  ;;  %v6483_v14 = vshrl.u32 %v2126_v21, 7  ;;  %v1941_v2 = vld [vmem:[%s5420_s10 + $0x76] sm:$0xff] }
 0x263   : > { %2011 = vmatmul.f32.gmra.mxu0 %v1939_v19  ;;  %v6485_v19 = vpop.f32.mrf.mxu1 }
 0x267   : > { %v1820_v48 = vpop.f32.mrf.mxu3 }
 0x268   : > { %v1894_v11 = vadd.f32 %v1820_v48, %v1699_v16  ;;  %v6478_v55 = vpop.f32.mrf.mxu0  ;;  %v2153_v48 = vand.u32 65535, %v6483_v14  ;;  %v1506_v16 = vadd.f32 %v6423_v3, %v1311_v32 }
 0x26a   : > { %1917 = vst [vmem:[#allocation4 + $0x90] sm:$0xff] %v1894_v11  ;;  %v2154_v11 = vshrl.u32 %v6483_v14, 16  ;;  %v2157_v44 = vmul.u32 58254, %v2153_v48  ;;  %v2156_v40 = vmul.u32 14564, %v2153_v48 }
 0x26b   : > { %2014 = vmatmul.f32.gmra.mxu0 %v1940_v33  ;;  %v1701_v33 = vadd.f32 %v6432_v39, %v1506_v16 }
 0x26c   : > { %v2158_v4 = vmul.u32 14564, %v2154_v11  ;;  %v2160_v60 = vshll.u32 %v2157_v44, 16  ;;  %v2159_v21 = vmul.u32 58254, %v2154_v11 }
 0x26e   : > { %v2162_v3 = vshll.u32 %v2158_v4, 16  ;;  %vm2164_vm0 = vc.u32 %v2156_v40, %v2160_v60 }
 0x26f   : > { %v1823_v28 = vpop.f32.mrf.mxu3  ;;  %v2165_v39 = vsel %vm2164_vm0, 1, %v5242_v8 }
 0x270   : > { %v1895_v0 = vadd.f32 %v1823_v28, %v1700_v45  ;;  %v6489_v63 = vpop.f32.mrf.mxu0  ;;  %v2166_v45 = vadd.s32 %v2160_v60, %v2156_v40  ;;  %v6498_v28 = vadd.s32 8, %v6483_v14  ;;  %v2167_v22 = vadd.s32 %v2165_v39, %v2159_v21  ;;  %v6510_v60 = vpop.f32.mrf.mxu1 }
 0x271   : > { %v1507_v40 = vadd.f32 %v6430_v7, %v1312_v47  ;;  %v6518_v21 = vpop.f32.mrf.mxu2  ;;  %v2163_v39 = vshrl.u32 %v2158_v4, 16 }
 0x272   : > { %1918 = vst [vmem:[#allocation4 + $0x18] sm:$0xff] %v1895_v0  ;;  %v731_v0 = vadd.f32 %v5862_v59, %v6206_v10  ;;  %vm2168_vm1 = vc.u32 %v2166_v45, %v2162_v3  ;;  %v2182_v11 = vand.u32 65535, %v6498_v28  ;;  %v2161_v59 = vshrl.u32 %v2157_v44, 16 }
 0x273   : > { %2017 = vmatmul.f32.gmra.mxu0 %v1941_v2  ;;  %v732_v2 = vadd.f32 %v5870_v1, %v6221_v58  ;;  %v2169_v10 = vsel %vm2168_vm1, 1, %v5242_v8  ;;  %v2183_v1 = vshrl.u32 %v6498_v28, 16  ;;  %v733_v58 = vadd.f32 %v5874_v6, %v6236_v13 }
 0x274   : > { %v2171_v3 = vadd.s32 %v2169_v10, %v2167_v22  ;;  %v926_v7 = vadd.f32 %v6262_v54, %v731_v0  ;;  %v2185_v44 = vmul.u32 14564, %v2182_v11  ;;  %v6529_v54 = vadd.s32 16, %v6483_v14 }
 0x275   : > { %v927_v47 = vadd.f32 %v6280_v56, %v732_v2  ;;  %v6522_v45 = vmul.u32 14564, %v2183_v1  ;;  %v928_v0 = vadd.f32 %v6293_v35, %v733_v58 }
 0x276   : > { %v2172_v6 = vadd.s32 %v2171_v3, %v2161_v59  ;;  %v1943_v59 = vld [vmem:[%s5420_s10 + $0x86] sm:$0xff]  ;;  %v1121_v35 = vadd.f32 %v6338_v18, %v926_v7 }
 0x277   : > { %v1826_v32 = vpop.f32.mrf.mxu3  ;;  %v2191_v22 = vshll.u32 %v6522_v45, 16 }
 0x278   : > { %v1896_v48 = vadd.f32 %v1826_v32, %v1701_v33  ;;  %v6505_v16 = vpop.f32.mrf.mxu0  ;;  %v735_v33 = vadd.f32 %v5929_v31, %v6257_v5  ;;  %v2186_v32 = vmul.u32 58254, %v2182_v11  ;;  %v1702_v31 = vadd.f32 %v6446_v52, %v1507_v40  ;;  %v6550_v18 = vpop.f32.mrf.mxu1 }
 0x279   : > { %v2188_v5 = vmul.u32 58254, %v2183_v1  ;;  %v2211_v52 = vand.u32 65535, %v6529_v54  ;;  %v2173_v10 = vadd.s32 %v2172_v6, %v2163_v39  ;;  %v1316_v6 = vadd.f32 %v6478_v55, %v1121_v35 }
 0x27a   : > { %1919 = vst [vmem:[#allocation4 + $0x98] sm:$0xff] %v1896_v48  ;;  %v1313_v48 = vadd.f32 %v6450_v27, %v6306_v46  ;;  %v2189_v13 = vshll.u32 %v2186_v32, 16  ;;  %v930_v56 = vadd.f32 %v6053_v24, %v735_v33  ;;  %v736_v46 = vadd.f32 %v5973_v53, %v6274_v25 }
 0x27b   : > { %2020 = vmatmul.f32.gmra.mxu0 %v1942_v23  ;;  %v2190_v1 = vshrl.u32 %v2186_v32, 16  ;;  %v2212_v53 = vshrl.u32 %v6529_v54, 16  ;;  %v1314_v25 = vadd.f32 %v6459_v42, %v6319_v49  ;;  %v2215_v3 = vmul.u32 58254, %v2211_v52 }
 0x27c   : > { %vm2193_vm2 = vc.u32 %v2185_v44, %v2189_v13  ;;  %v2195_v23 = vadd.s32 %v2189_v13, %v2185_v44  ;;  %v1508_v11 = vadd.f32 %v6442_v57, %v1313_v48  ;;  %v1315_v57 = vadd.f32 %v6469_v51, %v6328_v9  ;;  %v6554_v13 = vpop.f32.mrf.mxu2 }
 0x27d   : > { %v2194_v4 = vsel %vm2193_vm2, 1, %v5242_v8  ;;  %v931_v44 = vadd.f32 %v6072_v37, %v736_v46  ;;  %v1122_v48 = vadd.f32 %v6351_v50, %v927_v47  ;;  %v2214_v32 = vmul.u32 14564, %v2211_v52 }
 0x27e   : > { %v2196_v24 = vadd.s32 %v2194_v4, %v2188_v5  ;;  %vm2197_vm3 = vc.u32 %v2195_v23, %v2191_v22  ;;  %v2216_v7 = vmul.u32 14564, %v2212_v53  ;;  %v1703_v39 = vadd.f32 %v6455_v15, %v1508_v11 }
 0x27f   : > { %v1829_v2 = vpop.f32.mrf.mxu3  ;;  %v2198_v58 = vsel %vm2197_vm3, 1, %v5242_v8  ;;  %v2174_v49 = vshrl.u32 %v2173_v10, 4  ;;  %v2218_v42 = vshll.u32 %v2215_v3, 16  ;;  %v2192_v9 = vshrl.u32 %v6522_v45, 16 }
 0x280   : > { %v1897_v27 = vadd.f32 %v1829_v2, %v1702_v31  ;;  %v6538_v40 = vpop.f32.mrf.mxu0  ;;  %v2200_v33 = vadd.s32 %v2198_v58, %v2196_v24  ;;  %v2217_v37 = vmul.u32 58254, %v2212_v53  ;;  %v6558_v50 = vadd.s32 24, %v6483_v14  ;;  %v6582_v53 = vpop.f32.mrf.mxu1 }
 0x281   : > { %v1123_v47 = vadd.f32 %v6359_v29, %v928_v0  ;;  %v1509_v31 = vadd.f32 %v6453_v26, %v1314_v25  ;;  %v1510_v15 = vadd.f32 %v6462_v17, %v1315_v57  ;;  %v2220_v55 = vshll.u32 %v2216_v7, 16  ;;  %v1944_v26 = vld [vmem:[%s5420_s10 + $0x8e] sm:$0xff] }
 0x282   : > { %1920 = vst [vmem:[#allocation4 + $0x38] sm:$0xff] %v1897_v27  ;;  %v2201_v51 = vadd.s32 %v2200_v33, %v2190_v1  ;;  %vm2222_vm4 = vc.u32 %v2214_v32, %v2218_v42  ;;  %v2224_v2 = vadd.s32 %v2218_v42, %v2214_v32  ;;  %v2240_v23 = vand.u32 65535, %v6558_v50 }
 0x283   : > { %2023 = vmatmul.f32.gmra.mxu0 %v1943_v59  ;;  %v6565_v45 = vadd.f32 %v6384_v34, %v930_v56  ;;  %v6568_v46 = vadd.f32 %v6392_v36, %v931_v44  ;;  %v1511_v27 = vadd.f32 %v6474_v43, %v1316_v6  ;;  %v2223_v17 = vsel %vm2222_vm4, 1, %v5242_v8 }
 0x284   : > { %v1317_v0 = vadd.f32 %v6489_v63, %v1122_v48  ;;  %v2175_v4 = vmul.u32 18, %v2174_v49  ;;  %v2202_v52 = vadd.s32 %v2201_v51, %v2192_v9  ;;  %v2225_v11 = vadd.s32 %v2223_v17, %v2217_v37  ;;  %v6595_v32 = vpop.f32.mrf.mxu2 }
 0x285   : > { %v2219_v59 = vshrl.u32 %v2215_v3, 16  ;;  %vm2226_vm5 = vc.u32 %v2224_v2, %v2220_v55  ;;  %v2241_v34 = vshrl.u32 %v6558_v50, 16  ;;  %v2244_v56 = vmul.u32 58254, %v2240_v23 }
 0x286   : > { %v1704_v36 = vadd.f32 %v6464_v62, %v1509_v31  ;;  %v1705_v43 = vadd.f32 %v6476_v41, %v1510_v15  ;;  %v2227_v10 = vsel %vm2226_vm5, 1, %v5242_v8  ;;  %v2243_v24 = vmul.u32 14564, %v2240_v23 }
 0x287   : > { %v1832_v5 = vpop.f32.mrf.mxu3  ;;  %v2221_v35 = vshrl.u32 %v2216_v7, 16  ;;  %v2229_v1 = vadd.s32 %v2227_v10, %v2225_v11  ;;  %v6580_v63 = vmul.u32 14564, %v2241_v34  ;;  %v2247_v58 = vshll.u32 %v2244_v56, 16 }
 0x288   : > { %v1898_v22 = vadd.f32 %v1832_v5, %v1703_v39  ;;  %v6571_v29 = vpop.f32.mrf.mxu0  ;;  %v6585_v25 = vsub.s32 %v6483_v14, %v2175_v4  ;;  %v2203_v57 = vshrl.u32 %v2202_v52, 4  ;;  %v2246_v33 = vmul.u32 58254, %v2241_v34  ;;  %v6630_v10 = vpop.f32.mrf.mxu1 }
 0x289   : > { %v6588_v62 = vadd.s32 32, %v6483_v14  ;;  %v1318_v41 = vadd.f32 %v6505_v16, %v1123_v47  ;;  %v1512_v3 = vadd.f32 %v6485_v19, %v1317_v0  ;;  %v6593_v44 = vadd.f32 %v6492_v61, %v1511_v27  ;;  %v1945_v16 = vld [vmem:[%s5420_s10 + $0x96] sm:$0xff] }
 0x28a   : > { %1921 = vst [vmem:[#allocation4 + $0x50] sm:$0xff] %v1898_v22  ;;  %v2230_v7 = vadd.s32 %v2229_v1, %v2219_v59  ;;  %v2249_v6 = vshll.u32 %v6580_v63, 16  ;;  %vm2251_vm6 = vc.u32 %v2243_v24, %v2247_v58  ;;  %v2253_v49 = vadd.s32 %v2247_v58, %v2243_v24  ;;  %v1946_v58 = vld [vmem:[%s5420_s10 + $0x9e] sm:$0xff] }
 0x28b   : > { %2026 = vmatmul.f32.gmra.mxu0 %v1944_v26  ;;  %v1319_v42 = vadd.f32 %v6538_v40, %v6375_v38  ;;  %v2252_v19 = vsel %vm2251_vm6, 1, %v5242_v8  ;;  %v2269_v61 = vand.u32 65535, %v6588_v62  ;;  %vm2817_vm7 = vcmp.ne.s32.totalorder %v6585_v25, 0 }
 0x28c   : > { %v2231_v51 = vadd.s32 %v2230_v7, %v2221_v35  ;;  %vm2840_vm8 = vcmp.lt.s32.totalorder %v6585_v25, 0  ;;  %v2204_v37 = vmul.u32 18, %v2203_v57  ;;  %v2254_v47 = vadd.s32 %v2252_v19, %v2246_v33  ;;  %v6634_v57 = vpop.f32.mrf.mxu2 }
 0x28d   : > { %v2248_v31 = vshrl.u32 %v2244_v56, 16  ;;  %vm2255_vm9 = vc.u32 %v2253_v49, %v2249_v6  ;;  %v2270_v15 = vshrl.u32 %v6588_v62, 16  ;;  %v2273_v38 = vmul.u32 58254, %v2269_v61  ;;  %vm6619_vm10 = vmand %vm2840_vm8, %vm2817_vm7 }
 0x28e   : > { %v2886_v40 = vadd.s32 18, %v6585_v25  ;;  %v2232_v5 = vshrl.u32 %v2231_v51, 4  ;;  %v2256_v55 = vsel %vm2255_vm9, 1, %v5242_v8  ;;  %v2272_v22 = vmul.u32 14564, %v2269_v61 }
 0x28f   : > { %v1835_v48 = vpop.f32.mrf.mxu3  ;;  %v2250_v2 = vshrl.u32 %v6580_v63, 16  ;;  %v2258_v23 = vadd.s32 %v2256_v55, %v2254_v47  ;;  %v2274_v27 = vmul.u32 14564, %v2270_v15  ;;  %v2276_v26 = vshll.u32 %v2273_v38, 16  ;;  %v1299_v63 = vld [vmem:[#allocation4 + $0x8] sm:$0xf] }
 0x290   : > { %v1899_v39 = vadd.f32 %v1835_v48, %v1704_v36  ;;  %v6600_v9 = vpop.f32.mrf.mxu0  ;;  %v1513_v17 = vadd.f32 %v6510_v60, %v1318_v41  ;;  %v6613_v0 = vadd.f32 %v6518_v21, %v1512_v3  ;;  %v2275_v52 = vmul.u32 58254, %v2270_v15 }
 0x291   : > { %v6624_v11 = vadd.s32 40, %v6483_v14  ;;  %v6627_v34 = vsub.s32 %v6498_v28, %v2204_v37  ;;  %v2259_v60 = vadd.s32 %v2258_v23, %v2248_v31  ;;  %v2278_v21 = vshll.u32 %v2274_v27, 16 }
 0x292   : > { %1922 = vst [vmem:[#allocation4 + $0x70] sm:$0xff] %v1899_v39  ;;  %vm2280_vm11 = vc.u32 %v2272_v22, %v2276_v26  ;;  %v1514_v56 = vadd.f32 %v6550_v18, %v1319_v42  ;;  %v2282_v35 = vadd.s32 %v2276_v26, %v2272_v22  ;;  %v2909_v28 = vsel %vm6619_vm10, %v2886_v40, %v6585_v25  ;;  %v6681_v22 = vld [vmem:[%s7554_s2] ss:$0 sm:$0xff]  ;;  %v1947_v26 = vld [vmem:[%s5420_s10 + $0xa6] sm:$0xff] }
 0x293   : > { %2029 = vmatmul.f32.gmra.mxu0 %v1945_v16  ;;  %v2281_v24 = vsel %vm2280_vm11, 1, %v5242_v8  ;;  %v2233_v33 = vmul.u32 18, %v2232_v5  ;;  %v2260_v41 = vadd.s32 %v2259_v60, %v2250_v2  ;;  %v2298_v3 = vand.u32 65535, %v6624_v11 }
 0x294   : > { %v2283_v48 = vadd.s32 %v2281_v24, %v2275_v52  ;;  %vm2284_vm12 = vc.u32 %v2282_v35, %v2278_v21  ;;  %vm2818_vm13 = vcmp.ne.s32.totalorder %v6627_v34, 0  ;;  %vm2841_vm14 = vcmp.lt.s32.totalorder %v6627_v34, 0  ;;  %v6693_v60 = vpop.f32.mrf.mxu2 }
 0x295   : > { %v2285_v7 = vsel %vm2284_vm12, 1, %v5242_v8  ;;  %v2299_v39 = vshrl.u32 %v6624_v11, 16  ;;  %v1320_v25 = vadd.f32 %v6571_v29, %v6565_v45  ;;  %v2261_v6 = vshrl.u32 %v2260_v41, 4  ;;  %vm6656_vm15 = vmand %vm2841_vm14, %vm2818_vm13 }
 0x296   : > { %v2279_v49 = vshrl.u32 %v2274_v27, 16  ;;  %v2287_v42 = vadd.s32 %v2285_v7, %v2283_v48  ;;  %v2887_v16 = vadd.s32 18, %v6627_v34  ;;  %v2301_v51 = vmul.u32 14564, %v2298_v3  ;;  %v1469_v27 = vpop.f32.mrf.mxu1 }
 0x297   : > { %v1838_v59 = vpop.f32.mrf.mxu3  ;;  %v6647_v19 = vmul.u32 58254, %v2298_v3  ;;  %v6649_v61 = vmul.u32 14564, %v2299_v39  ;;  %v6652_v37 = vadd.f32 %v6554_v13, %v1513_v17  ;;  %v6661_v45 = vsub.s32 %v6529_v54, %v2233_v33 }
 0x298   : > { %v1900_v36 = vadd.f32 %v1838_v59, %v1705_v43  ;;  %v1274_v1 = vpop.f32.mrf.mxu0  ;;  %v2277_v43 = vshrl.u32 %v2273_v38, 16  ;;  %v6664_v31 = vadd.s32 48, %v6483_v14  ;;  %v6667_v15 = vadd.f32 %v6595_v32, %v1514_v56 }
 0x299   : > { %v1322_v18 = vadd.f32 %v1299_v63, %v1274_v1  ;;  %vm6669_vm0 = vcmp.lt.s32.totalorder %v2909_v28, 16  ;;  %v2304_v40 = vmul.u32 58254, %v2299_v39  ;;  %v2305_v5 = vshll.u32 %v6647_v19, 16 }
 0x29a   : > { %1923 = vst [vmem:[#allocation4 + $0xa0] sm:$0xff] %v1900_v36  ;;  %v2288_v29 = vadd.s32 %v2287_v42, %v2277_v43  ;;  %v6675_v55 = vadd.f32 %v6582_v53, %v1320_v25  ;;  %v2262_v32 = vmul.u32 18, %v2261_v6  ;;  %v2910_v17 = vsel %vm6656_vm15, %v2887_v16, %v6627_v34 }
 0x29b   : > { %1345 = vst [vmem:[#allocation4 + $0x8] sm:$0xf] %v1322_v18  ;;  %2032 = vmatmul.f32.gmra.mxu0 %v1946_v58  ;;  %v2307_v4 = vshll.u32 %v6649_v61, 16  ;;  %vm2309_vm1 = vc.u32 %v2301_v51, %v2305_v5  ;;  %v2327_v53 = vand.u32 65535, %v6664_v31  ;;  %vm2819_vm2 = vcmp.ne.s32.totalorder %v6661_v45, 0 }
 0x29c   : > { %v2289_v2 = vadd.s32 %v2288_v29, %v2279_v49  ;;  %vm2842_vm3 = vcmp.lt.s32.totalorder %v6661_v45, 0  ;;  %v2310_v52 = vsel %vm2309_vm1, 1, %v5242_v8  ;;  %v6696_v21 = vadd.s32 18, %v6661_v45 }
 0x29d   : > { %v2311_v34 = vadd.s32 %v2305_v5, %v2301_v51  ;;  %v2312_v56 = vadd.s32 %v2310_v52, %v2304_v40  ;;  %v2328_v36 = vshrl.u32 %v6664_v31, 16  ;;  %v6701_v35 = vsub.s32 %v6558_v50, %v2262_v32  ;;  %vm6708_vm5 = vmand %vm2842_vm3, %vm2819_vm2 }
 0x29e   : > { %v2290_v1 = vshrl.u32 %v2289_v2, 4  ;;  %v2306_v63 = vshrl.u32 %v6647_v19, 16  ;;  %v2330_v58 = vmul.u32 14564, %v2327_v53  ;;  %v2331_v28 = vmul.u32 58254, %v2327_v53  ;;  %v1948_v19 = vld [vmem:[%s5420_s10 + $0xae] sm:$0xff] }
 0x29f   : > { %v1841_v38 = vpop.f32.mrf.mxu3  ;;  %vm2313_vm4 = vc.u32 %v2311_v34, %v2307_v4  ;;  %v2308_v50 = vshrl.u32 %v6649_v61, 16  ;;  %v6714_v18 = vmul.u32 14564, %v2328_v36  ;;  %v2333_v7 = vmul.u32 58254, %v2328_v36 }
 0x2a0   : > { %v1901_v54 = vadd.f32 %v1841_v38, %v6593_v44  ;;  %v1988_v23 = vpop.f32.mrf.mxu0  ;;  %v2314_v3 = vsel %vm2313_vm4, 1, %v5242_v8  ;;  %v2334_v39 = vshll.u32 %v2331_v28, 16  ;;  %v6717_v25 = vadd.s32 56, %v6483_v14  ;;  %v1664_v38 = vpop.f32.mrf.mxu2 }
 0x2a1   : > { %v2080_v44 = vadd.f32 %v1988_v23, %v6403_v30  ;;  %v2316_v48 = vadd.s32 %v2314_v3, %v2312_v56  ;;  %v1321_v6 = vadd.f32 %v6600_v9, %v6568_v46  ;;  %vm6724_vm6 = vcmp.lt.s32.totalorder %v2910_v17, 16 }
 0x2a2   : > { %1924 = vst [vmem:[#allocation4 + $0xa8] sm:$0xff] %v1901_v54  ;;  %v1494_v59 = vld [vmem:[#allocation4 + $0x8] sm:$0xf]  ;;  %v2911_v61 = vsel %vm6708_vm5, %v6696_v21, %v6661_v45  ;;  %v2336_v46 = vshll.u32 %v6714_v18, 16  ;;  %vm2338_vm7 = vc.u32 %v2330_v58, %v2334_v39  ;;  %vm2820_vm8 = vcmp.ne.s32.totalorder %v6701_v35, 0 }
 0x2a3   : > { %2103 = vst [vmem:[#allocation4 + $0xb0] sm:$0xff] %v2080_v44  ;;  %v2959_v24 = vadd.f32 %v6681_v22, %v2080_v44  ;;  %v1517_v30 = vadd.f32 %v1494_v59, %v1469_v27  ;;  %2035 = vmatmul.f32.gmra.mxu0 %v1947_v26  ;;  %v2317_v47 = vadd.s32 %v2316_v48, %v2306_v63  ;;  %v2291_v13 = vmul.u32 18, %v2290_v1 }
 0x2a4   : > { %v2340_v29 = vadd.s32 %v2334_v39, %v2330_v58  ;;  %v2356_v54 = vand.u32 65535, %v6717_v25  ;;  %vm2843_vm9 = vcmp.lt.s32.totalorder %v6701_v35, 0  ;;  %v2335_v32 = vshrl.u32 %v2331_v28, 16 }
 0x2a5   : > { %v2982_v33 = vmax.f32 %v2959_v24, 0.0  ;;  %1540 = vst [vmem:[#allocation4 + $0x8] sm:$0xf] %v1517_v30  ;;  %v2318_v40 = vadd.s32 %v2317_v47, %v2308_v50  ;;  %v2889_v2 = vadd.s32 18, %v6701_v35  ;;  %v2337_v23 = vshrl.u32 %v6714_v18, 16  ;;  %vm6746_vm11 = vmand %vm2843_vm9, %vm2820_vm8 }
 0x2a6   : > { %vm2342_vm10 = vc.u32 %v2340_v29, %v2336_v46  ;;  %v2357_v26 = vshrl.u32 %v6717_v25, 16  ;;  %v6751_v21 = vsub.s32 %v6588_v62, %v2291_v13  ;;  %v2359_v34 = vmul.u32 14564, %v2356_v54 }
 0x2a7   : > { %v1844_v43 = vpop.f32.mrf.mxu3  ;;  %v3074_v49 = vsel %vm6669_vm0, %v2982_v33, 0.0  ;;  %v2343_v27 = vsel %vm2342_vm10, 1, %v5242_v8  ;;  %v2319_v53 = vshrl.u32 %v2318_v40, 4  ;;  %v2360_v56 = vmul.u32 58254, %v2356_v54  ;;  %v1949_v33 = vld [vmem:[%s5420_s10 + $0xb6] sm:$0xff] }
 0x2a8   : > { %v1902_v42 = vadd.f32 %v1844_v43, %v6613_v0  ;;  %3097 = vst [vmem:[#allocation5 + $0x8] sm:$0xff] %v3074_v49  ;;  %v1991_v51 = vpop.f32.mrf.mxu0  ;;  %v2339_v0 = vsel %vm2338_vm7, 1, %v5242_v8  ;;  %v6753_v36 = vmul.u32 14564, %v2357_v26  ;;  %v6759_v63 = vadd.s32 64, %v6483_v14 }
 0x2a9   : > { %v2081_v9 = vadd.f32 %v1991_v51, %v6411_v20  ;;  %v2341_v5 = vadd.s32 %v2339_v0, %v2333_v7  ;;  %v6762_v58 = vadd.f32 %v6630_v10, %v1321_v6  ;;  %v6766_v62 = vadd.f32 %v6634_v57, %v6675_v55 }
 0x2aa   : > { %1925 = vst [vmem:[#allocation4 + $0x68] sm:$0xff] %v1902_v42  ;;  %v2362_v41 = vmul.u32 58254, %v2357_v26  ;;  %v2363_v50 = vshll.u32 %v2360_v56, 16  ;;  %v2320_v18 = vmul.u32 18, %v2319_v53  ;;  %vm6773_vm12 = vcmp.lt.s32.totalorder %v2911_v61, 16 }
 0x2ab   : > { %2104 = vst [vmem:[#allocation4] sm:$0xff] %v2081_v9  ;;  %v2960_v45 = vadd.f32 %v6681_v22, %v2081_v9  ;;  %2038 = vmatmul.f32.gmra.mxu0 %v1948_v19  ;;  %v2345_v44 = vadd.s32 %v2343_v27, %v2341_v5  ;;  %v2365_v57 = vshll.u32 %v6753_v36, 16  ;;  %v2385_v55 = vand.u32 65535, %v6759_v63  ;;  %v1950_v5 = vld [vmem:[%s5420_s10 + $0xbe] sm:$0xff] }
 0x2ac   : > { %v1689_v20 = vld [vmem:[#allocation4 + $0x8] sm:$0xf]  ;;  %vm2367_vm13 = vc.u32 %v2359_v34, %v2363_v50  ;;  %vm2821_vm14 = vcmp.ne.s32.totalorder %v6751_v21, 0  ;;  %vm2844_vm15 = vcmp.lt.s32.totalorder %v6751_v21, 0  ;;  %v6788_v7 = vadd.s32 18, %v6751_v21 }
 0x2ad   : > { %v2983_v17 = vmax.f32 %v2960_v45, 0.0  ;;  %v1712_v4 = vadd.f32 %v1689_v20, %v1664_v38  ;;  %v2346_v1 = vadd.s32 %v2345_v44, %v2335_v32  ;;  %v2369_v39 = vadd.s32 %v2363_v50, %v2359_v34  ;;  %vm6794_vm1 = vmand %vm2844_vm15, %vm2821_vm14 }
 0x2ae   : > { %v2386_v49 = vshrl.u32 %v6759_v63, 16  ;;  %v6792_v16 = vsub.s32 %v6624_v11, %v2320_v18  ;;  %v2364_v19 = vshrl.u32 %v2360_v56, 16  ;;  %v2388_v46 = vmul.u32 14564, %v2385_v55 }
 0x2af   : > { %v1847_v52 = vpop.f32.mrf.mxu3  ;;  %v3075_v24 = vsel %vm6724_vm6, %v2983_v17, 0.0  ;;  %1735 = vst [vmem:[#allocation4 + $0x8] sm:$0xf] %v1712_v4  ;;  %v2347_v43 = vadd.s32 %v2346_v1, %v2337_v23  ;;  %vm2371_vm2 = vc.u32 %v2369_v39, %v2365_v57  ;;  %v2389_v9 = vmul.u32 58254, %v2385_v55 }
 0x2b0   : > { %v1903_v30 = vadd.f32 %v1847_v52, %v6652_v37  ;;  %3098 = vst [vmem:[#allocation5 + $0x10] sm:$0xff] %v3075_v24  ;;  %v1994_v28 = vpop.f32.mrf.mxu0  ;;  %v2912_v37 = vsel %vm6746_vm11, %v2889_v2, %v6701_v35  ;;  %v2390_v0 = vmul.u32 14564, %v2386_v49  ;;  %v2366_v13 = vshrl.u32 %v6753_v36, 16  ;;  %v7589_v2 = vld [vmem:[#allocation15_spill] sm:$0xff] }
 0x2b1   : > { %v2082_v3 = vadd.f32 %v1994_v28, %v6419_v12  ;;  %v2368_v12 = vsel %vm2367_vm13, 1, %v5242_v8  ;;  %vm6783_vm0 = vcmp.lt.s32.totalorder %v2912_v37, 16  ;;  %v2348_v51 = vshrl.u32 %v2347_v43, 4 }
 0x2b2   : > { %1926 = vst [vmem:[#allocation4 + $0x30] sm:$0xff] %v1903_v30  ;;  %v2370_v6 = vadd.s32 %v2368_v12, %v2362_v41  ;;  %v2372_v11 = vsel %vm2371_vm2, 1, %v5242_v8  ;;  %v2391_v45 = vmul.u32 58254, %v2386_v49  ;;  %v2392_v32 = vshll.u32 %v2389_v9, 16 }
 0x2b3   : > { %2105 = vst [vmem:[#allocation4 + $0x10] sm:$0xff] %v2082_v3  ;;  %v2961_v48 = vadd.f32 %v6681_v22, %v2082_v3  ;;  %2041 = vmatmul.f32.gmra.mxu0 %v1949_v33  ;;  %v2394_v20 = vshll.u32 %v2390_v0, 16  ;;  %v2913_v27 = vsel %vm6794_vm1, %v6788_v7, %v6751_v21  ;;  %vm2822_vm3 = vcmp.ne.s32.totalorder %v6792_v16, 0 }
 0x2b4   : > { %v2374_v54 = vadd.s32 %v2372_v11, %v2370_v6  ;;  %vm2845_vm4 = vcmp.lt.s32.totalorder %v6792_v16, 0  ;;  %vm2396_vm5 = vc.u32 %v2388_v46, %v2392_v32  ;;  %v2398_v17 = vadd.s32 %v2392_v32, %v2388_v46  ;;  %v7592_v6 = vld [vmem:[#allocation16_spill] sm:$0xff] }
 0x2b5   : > { %v2984_v42 = vmax.f32 %v2961_v48, 0.0  ;;  %v2891_v53 = vadd.s32 18, %v6792_v16  ;;  %v2349_v44 = vmul.u32 18, %v2348_v51  ;;  %v2397_v52 = vsel %vm2396_vm5, 1, %v5242_v8  ;;  %vm6824_vm7 = vmand %vm2845_vm4, %vm2822_vm3  ;;  %v1951_v48 = vld [vmem:[%s5420_s10 + $0xc6] sm:$0xff] }
 0x2b6   : > { %v2375_v26 = vadd.s32 %v2374_v54, %v2364_v19  ;;  %v2393_v21 = vshrl.u32 %v2389_v9, 16  ;;  %v2399_v34 = vadd.s32 %v2397_v52, %v2391_v45  ;;  %vm2400_vm6 = vc.u32 %v2398_v17, %v2394_v20 }
 0x2b7   : > { %v1850_v61 = vpop.f32.mrf.mxu3  ;;  %v3076_v29 = vsel %vm6773_vm12, %v2984_v42, 0.0  ;;  %v2401_v36 = vsel %vm2400_vm6, 1, %v5242_v8  ;;  %v2395_v41 = vshrl.u32 %v2390_v0, 16  ;;  %v6829_v3 = vadd.s32 80, %v6483_v14 }
 0x2b8   : > { %v1904_v38 = vadd.f32 %v1850_v61, %v6667_v15  ;;  %3099 = vst [vmem:[#allocation5 + $0x18] sm:$0xff] %v3076_v29  ;;  %v1997_v40 = vpop.f32.mrf.mxu0  ;;  %v6811_v15 = vadd.s32 72, %v6483_v14  ;;  %v2376_v59 = vadd.s32 %v2375_v26, %v2366_v13  ;;  %v2403_v50 = vadd.s32 %v2401_v36, %v2399_v34 }
 0x2b9   : > { %v2083_v23 = vadd.f32 %v1997_v40, %v7589_v2  ;;  %v1711_v57 = vadd.f32 %v6693_v60, %v6762_v58  ;;  %v6838_v12 = vsub.s32 %v6664_v31, %v2349_v44  ;;  %vm6841_vm8 = vcmp.lt.s32.totalorder %v2913_v27, 16  ;;  %v7599_v44 = vld [vmem:[#allocation17_spill] sm:$0xff] }
 0x2ba   : > { %1927 = vst [vmem:[#allocation4 + $0x58] sm:$0xff] %v1904_v38  ;;  %v2414_v24 = vand.u32 65535, %v6811_v15  ;;  %v2415_v30 = vshrl.u32 %v6811_v15, 16  ;;  %v2377_v33 = vshrl.u32 %v2376_v59, 4  ;;  %v2404_v7 = vadd.s32 %v2403_v50, %v2393_v21 }
 0x2bb   : > { %2106 = vst [vmem:[#allocation4 + $0x48] sm:$0xff] %v2083_v23  ;;  %v2962_v4 = vadd.f32 %v6681_v22, %v2083_v23  ;;  %2044 = vmatmul.f32.gmra.mxu0 %v1950_v5  ;;  %v2443_v47 = vand.u32 65535, %v6829_v3  ;;  %vm2823_vm11 = vcmp.ne.s32.totalorder %v6838_v12, 0  ;;  %vm2846_vm12 = vcmp.lt.s32.totalorder %v6838_v12, 0 }
 0x2bc   : > { %v2417_v43 = vmul.u32 14564, %v2414_v24  ;;  %v2418_v10 = vmul.u32 58254, %v2414_v24  ;;  %v2419_v39 = vmul.u32 14564, %v2415_v30  ;;  %v2378_v58 = vmul.u32 18, %v2377_v33  ;;  %vm6867_vm14 = vmand %vm2846_vm12, %vm2823_vm11 }
 0x2bd   : > { %v2985_v56 = vmax.f32 %v2962_v4, 0.0  ;;  %v2405_v42 = vadd.s32 %v2404_v7, %v2395_v41  ;;  %v2420_v51 = vmul.u32 58254, %v2415_v30  ;;  %v2444_v9 = vshrl.u32 %v6829_v3, 16 }
 0x2be   : > { %v2421_v60 = vshll.u32 %v2418_v10, 16  ;;  %v2423_v19 = vshll.u32 %v2419_v39, 16  ;;  %v2892_v29 = vadd.s32 18, %v6838_v12  ;;  %v6860_v11 = vsub.s32 %v6717_v25, %v2378_v58  ;;  %v1952_v25 = vld [vmem:[%s5420_s10 + $0xce] sm:$0xff] }
 0x2bf   : > { %v1853_v1 = vpop.f32.mrf.mxu3  ;;  %v3077_v37 = vsel %vm6783_vm0, %v2985_v56, 0.0  ;;  %v2422_v40 = vshrl.u32 %v2418_v10, 16  ;;  %v2446_v2 = vmul.u32 14564, %v2443_v47  ;;  %v2447_v23 = vmul.u32 58254, %v2443_v47 }
 0x2c0   : > { %v1905_v18 = vadd.f32 %v1853_v1, %v6766_v62  ;;  %3100 = vst [vmem:[#allocation5 + $0x20] sm:$0xff] %v3077_v37  ;;  %v2000_v55 = vpop.f32.mrf.mxu0  ;;  %v2914_v62 = vsel %vm6824_vm7, %v2891_v53, %v6792_v16  ;;  %vm2425_vm9 = vc.u32 %v2417_v43, %v2421_v60  ;;  %v2427_v61 = vadd.s32 %v2421_v60, %v2417_v43  ;;  %v1953_v60 = vld [vmem:[%s5420_s10 + $0xd6] sm:$0xf] }
 0x2c1   : > { %v2084_v49 = vadd.f32 %v2000_v55, %v7592_v6  ;;  %vm6850_vm10 = vcmp.lt.s32.totalorder %v2914_v62, 16  ;;  %v2406_v16 = vshrl.u32 %v2405_v42, 4  ;;  %v2426_v38 = vsel %vm2425_vm9, 1, %v5242_v8  ;;  %v1884_v55 = vld [vmem:[#allocation4 + $0x8] sm:$0xf] }
 0x2c2   : > { %1928 = vst [vmem:[#allocation4 + $0x80] sm:$0xff] %v1905_v18  ;;  %vm2429_vm13 = vc.u32 %v2427_v61, %v2423_v19  ;;  %v2428_v5 = vadd.s32 %v2426_v38, %v2420_v51  ;;  %v2424_v17 = vshrl.u32 %v2419_v39, 16  ;;  %v2448_v53 = vmul.u32 14564, %v2444_v9 }
 0x2c3   : > { %v2963_v31 = vadd.f32 %v6681_v22, %v2084_v49  ;;  %2047 = vmatmul.f32.gmra.mxu0 %v1951_v48  ;;  %v2430_v54 = vsel %vm2429_vm13, 1, %v5242_v8  ;;  %v2407_v26 = vmul.u32 18, %v2406_v16  ;;  %v2449_v59 = vmul.u32 58254, %v2444_v9 }
 0x2c4   : > { %v2432_v4 = vadd.s32 %v2430_v54, %v2428_v5  ;;  %v2450_v21 = vshll.u32 %v2447_v23, 16  ;;  %v6874_v34 = vadd.s32 88, %v6483_v14  ;;  %v2915_v56 = vsel %vm6867_vm14, %v2892_v29, %v6838_v12 }
 0x2c5   : > { %v2986_v0 = vmax.f32 %v2963_v31, 0.0  ;;  %vm2824_vm15 = vcmp.ne.s32.totalorder %v6860_v11, 0  ;;  %vm2847_vm0 = vcmp.lt.s32.totalorder %v6860_v11, 0  ;;  %v6883_v30 = vadd.s32 18, %v6860_v11  ;;  %v7602_v31 = vld [vmem:[#allocation18_spill] sm:$0xff] }
 0x2c6   : > { %v2433_v36 = vadd.s32 %v2432_v4, %v2422_v40  ;;  %v2452_v1 = vshll.u32 %v2448_v53, 16  ;;  %vm2454_vm1 = vc.u32 %v2446_v2, %v2450_v21  ;;  %v6886_v28 = vsub.s32 %v6759_v63, %v2407_v26  ;;  %vm6900_vm3 = vmand %vm2847_vm0, %vm2824_vm15 }
 0x2c7   : > { %v1856_v13 = vpop.f32.mrf.mxu3  ;;  %v3078_v45 = vsel %vm6841_vm8, %v2986_v0, 0.0  ;;  %v2455_v41 = vsel %vm2454_vm1, 1, %v5242_v8  ;;  %v2456_v50 = vadd.s32 %v2450_v21, %v2446_v2  ;;  %v2451_v18 = vshrl.u32 %v2447_v23, 16 }
 0x2c8   : > { %v1906_v32 = vadd.f32 %v1856_v13, %v1711_v57  ;;  %3101 = vst [vmem:[#allocation5 + $0x28] sm:$0xff] %v3078_v45  ;;  %v2003_v27 = vpop.f32.mrf.mxu0  ;;  %v2434_v33 = vadd.s32 %v2433_v36, %v2424_v17  ;;  %v2457_v43 = vadd.s32 %v2455_v41, %v2449_v59  ;;  %v2472_v10 = vand.u32 65535, %v6874_v34  ;;  %v7607_v36 = vld [vmem:[#allocation19_spill] sm:$0xff] }
 0x2c9   : > { %v2085_v52 = vadd.f32 %v2003_v27, %v7599_v44  ;;  %vm2458_vm2 = vc.u32 %v2456_v50, %v2452_v1  ;;  %v2473_v12 = vshrl.u32 %v6874_v34, 16  ;;  %v6892_v7 = vadd.s32 96, %v6483_v14 }
 0x2ca   : > { %1929 = vst [vmem:[#allocation4 + $0x20] sm:$0xff] %v1906_v32  ;;  %v2435_v48 = vshrl.u32 %v2434_v33, 4  ;;  %v2453_v49 = vshrl.u32 %v2448_v53, 16  ;;  %v2459_v35 = vsel %vm2458_vm2, 1, %v5242_v8  ;;  %v2476_v51 = vmul.u32 58254, %v2472_v10 }
 0x2cb   : > { %v2964_v24 = vadd.f32 %v6681_v22, %v2085_v52  ;;  %2050 = vmatmul.f32.gmra.mxu0 %v1952_v25  ;;  %v2461_v42 = vadd.s32 %v2459_v35, %v2457_v43  ;;  %v2477_v19 = vmul.u32 14564, %v2473_v12  ;;  %vm6907_vm4 = vcmp.lt.s32.totalorder %v2915_v56, 16 }
 0x2cc   : > { %v2436_v58 = vmul.u32 18, %v2435_v48  ;;  %v2475_v46 = vmul.u32 14564, %v2472_v10  ;;  %v2501_v16 = vand.u32 65535, %v6892_v7  ;;  %v2916_v9 = vsel %vm6900_vm3, %v6883_v30, %v6860_v11 }
 0x2cd   : > { %v2987_v37 = vmax.f32 %v2964_v24, 0.0  ;;  %v2462_v0 = vadd.s32 %v2461_v42, %v2451_v18  ;;  %v2479_v29 = vshll.u32 %v2476_v51, 16  ;;  %v2502_v38 = vshrl.u32 %v6892_v7, 16 }
 0x2ce   : > { %vm2825_vm5 = vcmp.ne.s32.totalorder %v6886_v28, 0  ;;  %v2478_v40 = vmul.u32 58254, %v2473_v12  ;;  %v2481_v5 = vshll.u32 %v2477_v19, 16  ;;  %vm2848_vm6 = vcmp.lt.s32.totalorder %v6886_v28, 0 }
 0x2cf   : > { %v1859_v57 = vpop.f32.mrf.mxu3  ;;  %v3079_v63 = vsel %vm6850_vm10, %v2987_v37, 0.0  ;;  %v6921_v54 = vadd.s32 18, %v6886_v28  ;;  %v6924_v45 = vsub.s32 %v6811_v15, %v2436_v58  ;;  %v2463_v11 = vadd.s32 %v2462_v0, %v2453_v49  ;;  %vm6933_vm9 = vmand %vm2848_vm6, %vm2825_vm5 }
 0x2d0   : > { %v1907_v39 = vadd.f32 %v1884_v55, %v1859_v57  ;;  %3102 = vst [vmem:[#allocation5 + $0x30] sm:$0xff] %v3079_v63  ;;  %v2006_v62 = vpop.f32.mrf.mxu0  ;;  %vm2483_vm7 = vc.u32 %v2475_v46, %v2479_v29  ;;  %v2485_v20 = vadd.s32 %v2479_v29, %v2475_v46  ;;  %v2505_v2 = vmul.u32 58254, %v2501_v16 }
 0x2d1   : > { %v2086_v61 = vadd.f32 %v2006_v62, %v7602_v31  ;;  %v2464_v23 = vshrl.u32 %v2463_v11, 4  ;;  %v2484_v27 = vsel %vm2483_vm7, 1, %v5242_v8  ;;  %v2504_v25 = vmul.u32 14564, %v2501_v16 }
 0x2d2   : > { %1930 = vst [vmem:[#allocation4 + $0x8] sm:$0xf] %v1907_v39  ;;  %v2506_v26 = vmul.u32 14564, %v2502_v38  ;;  %v2480_v4 = vshrl.u32 %v2476_v51, 16  ;;  %v2486_v53 = vadd.s32 %v2484_v27, %v2478_v40  ;;  %vm2487_vm8 = vc.u32 %v2485_v20, %v2481_v5 }
 0x2d3   : > { %v2965_v13 = vadd.f32 %v6681_v22, %v2086_v61  ;;  %2053 = vmatmul.f32.gmra.mxu0 %v1953_v60  ;;  %v2465_v52 = vmul.u32 18, %v2464_v23  ;;  %v2488_v59 = vsel %vm2487_vm8, 1, %v5242_v8  ;;  %v2507_v21 = vmul.u32 58254, %v2502_v38  ;;  %v7610_v61 = vld [vmem:[#allocation20_spill] sm:$0xff] }
 0x2d4   : > { %v2508_v56 = vshll.u32 %v2505_v2, 16  ;;  %v2482_v30 = vshrl.u32 %v2477_v19, 16  ;;  %v2490_v1 = vadd.s32 %v2488_v59, %v2486_v53  ;;  %v2510_v33 = vshll.u32 %v2506_v26, 16 }
 0x2d5   : > { %v2988_v32 = vmax.f32 %v2965_v13, 0.0  ;;  %vm6939_vm10 = vcmp.lt.s32.totalorder %v2916_v9, 16  ;;  %v6944_v37 = vadd.s32 104, %v6483_v14  ;;  %v2917_v43 = vsel %vm6933_vm9, %v6921_v54, %v6886_v28 }
 0x2d6   : > { %vm2512_vm11 = vc.u32 %v2504_v25, %v2508_v56  ;;  %v2514_v50 = vadd.s32 %v2508_v56, %v2504_v25  ;;  %v2491_v10 = vadd.s32 %v2490_v1, %v2480_v4  ;;  %vm2826_vm12 = vcmp.ne.s32.totalorder %v6924_v45, 0  ;;  %v2066_v56 = vld [vmem:[#allocation4 + $0x90] sm:$0xff] }
 0x2d7   : > { %v3080_v17 = vsel %vm6907_vm4, %v2988_v32, 0.0  ;;  %v2513_v57 = vsel %vm2512_vm11, 1, %v5242_v8  ;;  %v6954_v55 = vsub.s32 %v6829_v3, %v2465_v52  ;;  %v2509_v48 = vshrl.u32 %v2505_v2, 16 }
 0x2d8   : > { %3103 = vst [vmem:[#allocation5 + $0x38] sm:$0xff] %v3080_v17  ;;  %v2009_v44 = vpop.f32.mrf.mxu0  ;;  %v2515_v12 = vadd.s32 %v2513_v57, %v2507_v21  ;;  %v2492_v39 = vadd.s32 %v2491_v10, %v2482_v30  ;;  %vm2516_vm13 = vc.u32 %v2514_v50, %v2510_v33  ;;  %v2530_v6 = vand.u32 65535, %v6944_v37 }
 0x2d9   : > { %v2087_v24 = vadd.f32 %v2009_v44, %v7607_v36  ;;  %vm2849_vm14 = vcmp.lt.s32.totalorder %v6924_v45, 0  ;;  %v2517_v49 = vsel %vm2516_vm13, 1, %v5242_v8  ;;  %v2531_v28 = vshrl.u32 %v6944_v37, 16 }
 0x2da   : > { %v6961_v35 = vadd.s32 112, %v6483_v14  ;;  %v2895_v62 = vadd.s32 18, %v6924_v45  ;;  %v2511_v60 = vshrl.u32 %v2506_v26, 16  ;;  %v2519_v58 = vadd.s32 %v2517_v49, %v2515_v12  ;;  %vm6973_vm0 = vmand %vm2849_vm14, %vm2826_vm12 }
 0x2db   : > { %v2966_v18 = vadd.f32 %v6681_v22, %v2087_v24  ;;  %vm2827_vm15 = vcmp.ne.s32.totalorder %v6954_v55, 0  ;;  %v2533_v51 = vmul.u32 14564, %v2530_v6  ;;  %v2534_v19 = vmul.u32 58254, %v2530_v6 }
 0x2dc   : > { %v2535_v31 = vmul.u32 14564, %v2531_v28  ;;  %v2493_v46 = vshrl.u32 %v2492_v39, 4  ;;  %v2520_v16 = vadd.s32 %v2519_v58, %v2509_v48  ;;  %v2559_v9 = vand.u32 65535, %v6961_v35 }
 0x2dd   : > { %v2989_v63 = vmax.f32 %v2966_v18, 0.0  ;;  %vm2850_vm1 = vcmp.lt.s32.totalorder %v6954_v55, 0  ;;  %v2537_v29 = vshll.u32 %v2534_v19, 16  ;;  %v2560_v13 = vshrl.u32 %v6961_v35, 16 }
 0x2de   : > { %v2539_v38 = vshll.u32 %v2535_v31, 16  ;;  %vm6980_vm2 = vcmp.lt.s32.totalorder %v2917_v43, 16  ;;  %v2521_v54 = vadd.s32 %v2520_v16, %v2511_v60  ;;  %v2536_v11 = vmul.u32 58254, %v2531_v28  ;;  %vm6990_vm4 = vmand %vm2850_vm1, %vm2827_vm15 }
 0x2df   : > { %v3081_v3 = vsel %vm6939_vm10, %v2989_v63, 0.0  ;;  %v2896_v32 = vadd.s32 18, %v6954_v55  ;;  %vm2541_vm3 = vc.u32 %v2533_v51, %v2537_v29  ;;  %v2543_v20 = vadd.s32 %v2537_v29, %v2533_v51 }
 0x2e0   : > { %3104 = vst [vmem:[#allocation5 + $0x40] sm:$0xff] %v3081_v3  ;;  %v2012_v42 = vpop.f32.mrf.mxu0  ;;  %v2563_v2 = vmul.u32 58254, %v2559_v9  ;;  %v2918_v27 = vsel %vm6973_vm0, %v2895_v62, %v6924_v45  ;;  %v2494_v26 = vmul.u32 18, %v2493_v46  ;;  %v2562_v17 = vmul.u32 14564, %v2559_v9 }
 0x2e1   : > { %v2088_v47 = vadd.f32 %v2012_v42, %v7610_v61  ;;  %v2522_v4 = vshrl.u32 %v2521_v54, 4  ;;  %v2542_v53 = vsel %vm2541_vm3, 1, %v5242_v8  ;;  %vm2545_vm5 = vc.u32 %v2543_v20, %v2539_v38 }
 0x2e2   : > { %v2564_v44 = vmul.u32 14564, %v2560_v13  ;;  %v2538_v52 = vshrl.u32 %v2534_v19, 16  ;;  %v2544_v59 = vadd.s32 %v2542_v53, %v2536_v11  ;;  %v2546_v45 = vsel %vm2545_vm5, 1, %v5242_v8 }
 0x2e3   : > { %v2967_v40 = vadd.f32 %v6681_v22, %v2088_v47  ;;  %v2919_v36 = vsel %vm6990_vm4, %v2896_v32, %v6954_v55  ;;  %v2523_v24 = vmul.u32 18, %v2522_v4  ;;  %v2565_v30 = vmul.u32 58254, %v2560_v13 }
 0x2e4   : > { %v2566_v1 = vshll.u32 %v2563_v2, 16  ;;  %v2540_v41 = vshrl.u32 %v2535_v31, 16  ;;  %v2548_v50 = vadd.s32 %v2546_v45, %v2544_v59  ;;  %v2568_v18 = vshll.u32 %v2564_v44, 16  ;;  %v2067_v31 = vld [vmem:[#allocation4 + $0x18] sm:$0xff] }
 0x2e5   : > { %v2990_v23 = vmax.f32 %v2967_v40, 0.0  ;;  %v7002_v43 = vsub.s32 %v6874_v34, %v2494_v26  ;;  %v7005_v57 = vadd.s32 120, %v6483_v14  ;;  %vm3014_vm7 = vcmp.lt.s32.totalorder %v2918_v27, 16 }
 0x2e6   : > { %vm2570_vm6 = vc.u32 %v2562_v17, %v2566_v1  ;;  %v2572_v10 = vadd.s32 %v2566_v1, %v2562_v17  ;;  %v2549_v55 = vadd.s32 %v2548_v50, %v2538_v52  ;;  %vm7009_vm8 = vcmp.lt.s32.totalorder %v2919_v36, 16  ;;  %v2068_v36 = vld [vmem:[#allocation4 + $0x98] sm:$0xff] }
 0x2e7   : > { %v3082_v15 = vsel %vm6980_vm2, %v2990_v23, 0.0  ;;  %v2571_v12 = vsel %vm2570_vm6, 1, %v5242_v8  ;;  %v7014_v39 = vsub.s32 %v6892_v7, %v2523_v24  ;;  %v2567_v34 = vshrl.u32 %v2563_v2, 16 }
 0x2e8   : > { %3105 = vst [vmem:[#allocation5 + $0x48] sm:$0xff] %v3082_v15  ;;  %v2015_v21 = vpop.f32.mrf.mxu0  ;;  %v2573_v6 = vadd.s32 %v2571_v12, %v2565_v30  ;;  %v2550_v28 = vadd.s32 %v2549_v55, %v2540_v41  ;;  %vm2574_vm9 = vc.u32 %v2572_v10, %v2568_v18  ;;  %v2588_v3 = vand.u32 65535, %v7005_v57 }
 0x2e9   : > { %v2089_v33 = vadd.f32 %v2066_v56, %v2015_v21  ;;  %vm2828_vm10 = vcmp.ne.s32.totalorder %v7002_v43, 0  ;;  %v2575_v62 = vsel %vm2574_vm9, 1, %v5242_v8  ;;  %v2589_v60 = vshrl.u32 %v7005_v57, 16 }
 0x2ea   : > { %v7021_v58 = vadd.s32 128, %v6483_v14  ;;  %vm2851_vm11 = vcmp.lt.s32.totalorder %v7002_v43, 0  ;;  %v2569_v7 = vshrl.u32 %v2564_v44, 16  ;;  %v2577_v51 = vadd.s32 %v2575_v62, %v2573_v6 }
 0x2eb   : > { %2112 = vst [vmem:[#allocation4 + $0x90] sm:$0xff] %v2089_v33  ;;  %v2968_v48 = vadd.f32 %v6681_v22, %v2089_v33  ;;  %vm2829_vm12 = vcmp.ne.s32.totalorder %v7014_v39, 0  ;;  %v2591_v61 = vmul.u32 14564, %v2588_v3  ;;  %v2592_v47 = vmul.u32 58254, %v2588_v3  ;;  %vm7037_vm14 = vmand %vm2851_vm11, %vm2828_vm10 }
 0x2ec   : > { %v7025_v46 = vmul.u32 14564, %v2589_v60  ;;  %v2551_v9 = vshrl.u32 %v2550_v28, 4  ;;  %v2578_v0 = vadd.s32 %v2577_v51, %v2567_v34  ;;  %v2617_v29 = vand.u32 65535, %v7021_v58 }
 0x2ed   : > { %v2991_v49 = vmax.f32 %v2968_v48, 0.0  ;;  %vm2852_vm13 = vcmp.lt.s32.totalorder %v7014_v39, 0  ;;  %v2595_v38 = vshll.u32 %v2592_v47, 16  ;;  %v2618_v40 = vshrl.u32 %v7021_v58, 16 }
 0x2ee   : > { %v2597_v13 = vshll.u32 %v7025_v46, 16  ;;  %v2897_v54 = vadd.s32 18, %v7002_v43  ;;  %v2579_v11 = vadd.s32 %v2578_v0, %v2569_v7  ;;  %v2594_v32 = vmul.u32 58254, %v2589_v60  ;;  %vm7046_vm0 = vmand %vm2852_vm13, %vm2829_vm12 }
 0x2ef   : > { %v3083_v42 = vsel %vm3014_vm7, %v2991_v49, 0.0  ;;  %v2898_v2 = vadd.s32 18, %v7014_v39  ;;  %vm2599_vm15 = vc.u32 %v2591_v61, %v2595_v38  ;;  %v2601_v23 = vadd.s32 %v2595_v38, %v2591_v61 }
 0x2f0   : > { %3106 = vst [vmem:[#allocation5 + $0x50] sm:$0xff] %v3083_v42  ;;  %v2018_v19 = vpop.f32.mrf.mxu0  ;;  %v2621_v27 = vmul.u32 58254, %v2617_v29  ;;  %v2552_v17 = vmul.u32 18, %v2551_v9  ;;  %v2620_v4 = vmul.u32 14564, %v2617_v29  ;;  %v2580_v53 = vshrl.u32 %v2579_v11, 4 }
 0x2f1   : > { %v2090_v16 = vadd.f32 %v2067_v31, %v2018_v19  ;;  %v2600_v44 = vsel %vm2599_vm15, 1, %v5242_v8  ;;  %vm2603_vm1 = vc.u32 %v2601_v23, %v2597_v13  ;;  %v7051_v15 = vmul.u32 14564, %v2618_v40 }
 0x2f2   : > { %v2596_v59 = vshrl.u32 %v2592_v47, 16  ;;  %v2602_v45 = vadd.s32 %v2600_v44, %v2594_v32  ;;  %v2604_v21 = vsel %vm2603_vm1, 1, %v5242_v8  ;;  %v2920_v24 = vsel %vm7037_vm14, %v2897_v54, %v7002_v43  ;;  %v2069_v47 = vld [vmem:[#allocation4 + $0x38] sm:$0xff] }
 0x2f3   : > { %2113 = vst [vmem:[#allocation4 + $0x18] sm:$0xff] %v2090_v16  ;;  %v2969_v5 = vadd.f32 %v6681_v22, %v2090_v16  ;;  %v2921_v30 = vsel %vm7046_vm0, %v2898_v2, %v7014_v39  ;;  %v2623_v1 = vmul.u32 58254, %v2618_v40  ;;  %v2624_v33 = vshll.u32 %v2621_v27, 16 }
 0x2f4   : > { %v7063_v50 = vsub.s32 %v6944_v37, %v2552_v17  ;;  %v2606_v18 = vadd.s32 %v2604_v21, %v2602_v45  ;;  %v2626_v10 = vshll.u32 %v7051_v15, 16  ;;  %v2581_v48 = vmul.u32 18, %v2580_v53  ;;  %v2070_v21 = vld [vmem:[#allocation4 + $0x50] sm:$0xff] }
 0x2f5   : > { %v2992_v25 = vmax.f32 %v2969_v5, 0.0  ;;  %vm2628_vm2 = vc.u32 %v2620_v4, %v2624_v33  ;;  %v2630_v55 = vadd.s32 %v2624_v33, %v2620_v4  ;;  %v7067_v12 = vadd.s32 136, %v6483_v14 }
 0x2f6   : > { %v2598_v63 = vshrl.u32 %v7025_v46, 16  ;;  %v2607_v39 = vadd.s32 %v2606_v18, %v2596_v59  ;;  %v2629_v34 = vsel %vm2628_vm2, 1, %v5242_v8  ;;  %vm3016_vm3 = vcmp.lt.s32.totalorder %v2920_v24, 16 }
 0x2f7   : > { %v3084_v52 = vsel %vm7009_vm8, %v2992_v25, 0.0  ;;  %vm7072_vm4 = vcmp.lt.s32.totalorder %v2921_v30, 16  ;;  %v2631_v6 = vadd.s32 %v2629_v34, %v2623_v1  ;;  %v2625_v28 = vshrl.u32 %v2621_v27, 16 }
 0x2f8   : > { %3107 = vst [vmem:[#allocation5 + $0x58] sm:$0xff] %v3084_v52  ;;  %v2021_v56 = vpop.f32.mrf.mxu0  ;;  %vm2632_vm5 = vc.u32 %v2630_v55, %v2626_v10  ;;  %v2646_v3 = vand.u32 65535, %v7067_v12  ;;  %v7078_v62 = vsub.s32 %v6961_v35, %v2581_v48  ;;  %v2647_v42 = vshrl.u32 %v7067_v12, 16 }
 0x2f9   : > { %v2091_v41 = vadd.f32 %v2068_v36, %v2021_v56  ;;  %v2633_v60 = vsel %vm2632_vm5, 1, %v5242_v8  ;;  %v7083_v7 = vadd.s32 144, %v6483_v14  ;;  %vm2830_vm6 = vcmp.ne.s32.totalorder %v7063_v50, 0 }
 0x2fa   : > { %v2608_v19 = vadd.s32 %v2607_v39, %v2598_v63  ;;  %v2635_v31 = vadd.s32 %v2633_v60, %v2631_v6  ;;  %vm2853_vm7 = vcmp.lt.s32.totalorder %v7063_v50, 0  ;;  %v2649_v46 = vmul.u32 14564, %v2646_v3 }
 0x2fb   : > { %2114 = vst [vmem:[#allocation4 + $0x98] sm:$0xff] %v2091_v41  ;;  %v2970_v43 = vadd.f32 %v6681_v22, %v2091_v41  ;;  %v7087_v35 = vmul.u32 58254, %v2646_v3  ;;  %v7089_v16 = vmul.u32 14564, %v2647_v42  ;;  %v2627_v0 = vshrl.u32 %v7051_v15, 16  ;;  %vm7106_vm11 = vmand %vm2853_vm7, %vm2830_vm6 }
 0x2fc   : > { %v2636_v29 = vadd.s32 %v2635_v31, %v2625_v28  ;;  %v2675_v38 = vand.u32 65535, %v7083_v7  ;;  %vm2831_vm8 = vcmp.ne.s32.totalorder %v7078_v62, 0  ;;  %v2676_v5 = vshrl.u32 %v7083_v7, 16 }
 0x2fd   : > { %v2993_v49 = vmax.f32 %v2970_v43, 0.0  ;;  %v2653_v13 = vshll.u32 %v7087_v35, 16  ;;  %v2655_v40 = vshll.u32 %v7089_v16, 16  ;;  %vm2854_vm9 = vcmp.lt.s32.totalorder %v7078_v62, 0 }
 0x2fe   : > { %v2609_v11 = vshrl.u32 %v2608_v19, 4  ;;  %v2652_v32 = vmul.u32 58254, %v2647_v42  ;;  %v2899_v20 = vadd.s32 18, %v7063_v50  ;;  %v7100_v23 = vmul.u32 58254, %v2675_v38  ;;  %vm7113_vm12 = vmand %vm2854_vm9, %vm2831_vm8 }
 0x2ff   : > { %v3085_v51 = vsel %vm3016_vm3, %v2993_v49, 0.0  ;;  %vm2657_vm10 = vc.u32 %v2649_v46, %v2653_v13  ;;  %v2659_v2 = vadd.s32 %v2653_v13, %v2649_v46  ;;  %v2637_v26 = vadd.s32 %v2636_v29, %v2627_v0 }
 0x300   : > { %3108 = vst [vmem:[#allocation5 + $0x60] sm:$0xff] %v3085_v51  ;;  %v2024_v61 = vpop.f32.mrf.mxu0  ;;  %v2658_v4 = vsel %vm2657_vm10, 1, %v5242_v8  ;;  %v2678_v53 = vmul.u32 14564, %v2675_v38  ;;  %v7118_v44 = vmul.u32 14564, %v2676_v5  ;;  %v2610_v52 = vmul.u32 18, %v2609_v11 }
 0x301   : > { %v2092_v9 = vadd.f32 %v2069_v47, %v2024_v61  ;;  %vm2661_vm13 = vc.u32 %v2659_v2, %v2655_v40  ;;  %v2660_v59 = vadd.s32 %v2658_v4, %v2652_v32  ;;  %v2922_v56 = vsel %vm7106_vm11, %v2899_v20, %v7063_v50  ;;  %v7138_v50 = vld [vmem:[%s7554_s2] ss:$0 sm:$0xff]  ;;  %v2071_v47 = vld [vmem:[#allocation4 + $0x70] sm:$0xff] }
 0x302   : > { %v2662_v36 = vsel %vm2661_vm13, 1, %v5242_v8  ;;  %v2681_v24 = vmul.u32 58254, %v2676_v5  ;;  %v2682_v30 = vshll.u32 %v7100_v23, 16  ;;  %v2654_v41 = vshrl.u32 %v7087_v35, 16 }
 0x303   : > { %2115 = vst [vmem:[#allocation4 + $0x38] sm:$0xff] %v2092_v9  ;;  %v2971_v54 = vadd.f32 %v6681_v22, %v2092_v9  ;;  %v2900_v22 = vadd.s32 18, %v7078_v62  ;;  %v2684_v18 = vshll.u32 %v7118_v44, 16  ;;  %v2638_v10 = vshrl.u32 %v2637_v26, 4 }
 0x304   : > { %vm2686_vm14 = vc.u32 %v2678_v53, %v2682_v30  ;;  %v2688_v48 = vadd.s32 %v2682_v30, %v2678_v53  ;;  %v7133_v55 = vadd.s32 152, %v6483_v14  ;;  %v7142_v63 = vsub.s32 %v7005_v57, %v2610_v52 }
 0x305   : > { %v2994_v27 = vmax.f32 %v2971_v54, 0.0  ;;  %v2923_v33 = vsel %vm7113_vm12, %v2900_v22, %v7078_v62  ;;  %v2664_v39 = vadd.s32 %v2662_v36, %v2660_v59  ;;  %v2687_v34 = vsel %vm2686_vm14, 1, %v5242_v8 }
 0x306   : > { %vm3018_vm15 = vcmp.lt.s32.totalorder %v2922_v56, 16  ;;  %vm7145_vm0 = vcmp.lt.s32.totalorder %v2923_v33, 16  ;;  %v2689_v6 = vadd.s32 %v2687_v34, %v2681_v24  ;;  %v2656_v28 = vshrl.u32 %v7089_v16, 16 }
 0x307   : > { %v3086_v15 = vsel %vm7072_vm4, %v2994_v27, 0.0  ;;  %vm2690_vm1 = vc.u32 %v2688_v48, %v2684_v18  ;;  %v2704_v3 = vand.u32 65535, %v7133_v55  ;;  %v2639_v62 = vmul.u32 18, %v2638_v10 }
 0x308   : > { %3109 = vst [vmem:[#allocation5 + $0x68] sm:$0xff] %v3086_v15  ;;  %v2027_v45 = vpop.f32.mrf.mxu0  ;;  %v2691_v60 = vsel %vm2690_vm1, 1, %v5242_v8  ;;  %v2705_v57 = vshrl.u32 %v7133_v55, 16  ;;  %v7154_v42 = vadd.s32 160, %v6483_v14  ;;  %vm2832_vm2 = vcmp.ne.s32.totalorder %v7142_v63, 0 }
 0x309   : > { %v2093_v1 = vadd.f32 %v2070_v21, %v2027_v45  ;;  %v2665_v19 = vadd.s32 %v2664_v39, %v2654_v41  ;;  %v2683_v31 = vshrl.u32 %v7100_v23, 16  ;;  %v2693_v46 = vadd.s32 %v2691_v60, %v2689_v6  ;;  %v2072_v45 = vld [vmem:[#allocation4 + $0xa0] sm:$0xff] }
 0x30a   : > { %v2707_v35 = vmul.u32 14564, %v2704_v3  ;;  %v2708_v16 = vmul.u32 58254, %v2704_v3  ;;  %v7158_v9 = vmul.u32 14564, %v2705_v57  ;;  %vm2855_vm3 = vcmp.lt.s32.totalorder %v7142_v63, 0 }
 0x30b   : > { %2116 = vst [vmem:[#allocation4 + $0x50] sm:$0xff] %v2093_v1  ;;  %v2972_v43 = vadd.f32 %v7138_v50, %v2093_v1  ;;  %v2901_v29 = vadd.s32 18, %v7142_v63  ;;  %v2733_v38 = vand.u32 65535, %v7154_v42  ;;  %v7164_v13 = vsub.s32 %v7021_v58, %v2639_v62  ;;  %vm7176_vm5 = vmand %vm2855_vm3, %vm2832_vm2 }
 0x30c   : > { %v2711_v40 = vshll.u32 %v2708_v16, 16  ;;  %v2713_v5 = vshll.u32 %v7158_v9, 16  ;;  %v2734_v54 = vshrl.u32 %v7154_v42, 16  ;;  %v2666_v32 = vadd.s32 %v2665_v19, %v2656_v28 }
 0x30d   : > { %v2995_v49 = vmax.f32 %v2972_v43, 0.0  ;;  %v2685_v20 = vshrl.u32 %v7118_v44, 16  ;;  %v2710_v2 = vmul.u32 58254, %v2705_v57  ;;  %v2694_v23 = vadd.s32 %v2693_v46, %v2683_v31 }
 0x30e   : > { %vm2715_vm4 = vc.u32 %v2707_v35, %v2711_v40  ;;  %v2717_v27 = vadd.s32 %v2711_v40, %v2707_v35  ;;  %v7170_v25 = vmul.u32 58254, %v2733_v38  ;;  %v2736_v17 = vmul.u32 14564, %v2733_v38 }
 0x30f   : > { %v3087_v51 = vsel %vm3018_vm15, %v2995_v49, 0.0  ;;  %v2716_v26 = vsel %vm2715_vm4, 1, %v5242_v8  ;;  %v7181_v4 = vmul.u32 14564, %v2734_v54  ;;  %v2667_v44 = vshrl.u32 %v2666_v32, 4 }
 0x310   : > { %3110 = vst [vmem:[#allocation5 + $0x70] sm:$0xff] %v3087_v51  ;;  %v2030_v61 = vpop.f32.mrf.mxu0  ;;  %vm2719_vm6 = vc.u32 %v2717_v27, %v2713_v5  ;;  %v2718_v15 = vadd.s32 %v2716_v26, %v2710_v2  ;;  %v2924_v21 = vsel %vm7176_vm5, %v2901_v29, %v7142_v63  ;;  %vm2833_vm7 = vcmp.ne.s32.totalorder %v7164_v13, 0 }
 0x311   : > { %v2094_v0 = vadd.f32 %v2071_v47, %v2030_v61  ;;  %v2720_v52 = vsel %vm2719_vm6, 1, %v5242_v8  ;;  %v2695_v56 = vadd.s32 %v2694_v23, %v2685_v20  ;;  %v2740_v36 = vshll.u32 %v7170_v25, 16  ;;  %v2073_v61 = vld [vmem:[#allocation4 + $0xa8] sm:$0xff] }
 0x312   : > { %v2712_v30 = vshrl.u32 %v2708_v16, 16  ;;  %v2722_v1 = vadd.s32 %v2720_v52, %v2718_v15  ;;  %v2742_v33 = vshll.u32 %v7181_v4, 16  ;;  %v2739_v41 = vmul.u32 58254, %v2734_v54  ;;  %v2074_v15 = vld [vmem:[#allocation4 + $0x68] sm:$0xff] }
 0x313   : > { %2117 = vst [vmem:[#allocation4 + $0x70] sm:$0xff] %v2094_v0  ;;  %v2973_v11 = vadd.f32 %v7138_v50, %v2094_v0  ;;  %vm2744_vm8 = vc.u32 %v2736_v17, %v2740_v36  ;;  %v2746_v18 = vadd.s32 %v2740_v36, %v2736_v17  ;;  %v7193_v10 = vadd.s32 168, %v6483_v14 }
 0x314   : > { %vm2856_vm9 = vcmp.lt.s32.totalorder %v7164_v13, 0  ;;  %v2668_v43 = vmul.u32 18, %v2667_v44  ;;  %v2745_v63 = vsel %vm2744_vm8, 1, %v5242_v8  ;;  %vm3020_vm10 = vcmp.lt.s32.totalorder %v2924_v21, 16 }
 0x315   : > { %v2996_v22 = vmax.f32 %v2973_v11, 0.0  ;;  %v2902_v39 = vadd.s32 18, %v7164_v13  ;;  %v2696_v34 = vshrl.u32 %v2695_v56, 4  ;;  %v2714_v37 = vshrl.u32 %v7158_v9, 16  ;;  %vm7203_vm12 = vmand %vm2856_vm9, %vm2833_vm7 }
 0x316   : > { %v2723_v49 = vadd.s32 %v2722_v1, %v2712_v30  ;;  %vm2748_vm11 = vc.u32 %v2746_v18, %v2742_v33  ;;  %v2762_v28 = vand.u32 65535, %v7193_v10  ;;  %v2747_v62 = vadd.s32 %v2745_v63, %v2739_v41 }
 0x317   : > { %v3088_v53 = vsel %vm7145_vm0, %v2996_v22, 0.0  ;;  %v2763_v60 = vshrl.u32 %v7193_v10, 16  ;;  %v2669_v51 = vsub.s32 %v7067_v12, %v2668_v43  ;;  %v2749_v19 = vsel %vm2748_vm11, 1, %v5242_v8 }
 0x318   : > { %3111 = vst [vmem:[#allocation5 + $0x78] sm:$0xff] %v3088_v53  ;;  %v2033_v59 = vpop.f32.mrf.mxu0  ;;  %v2765_v47 = vmul.u32 14564, %v2762_v28  ;;  %v2766_v46 = vmul.u32 58254, %v2762_v28  ;;  %v2925_v9 = vsel %vm7203_vm12, %v2902_v39, %v7164_v13  ;;  %v2697_v0 = vmul.u32 18, %v2696_v34  ;;  %v2075_v28 = vld [vmem:[#allocation4 + $0x30] sm:$0xff] }
 0x319   : > { %v2095_v24 = vadd.f32 %v2072_v45, %v2033_v59  ;;  %v7210_v35 = vmul.u32 14564, %v2763_v60  ;;  %v2724_v29 = vadd.s32 %v2723_v49, %v2714_v37  ;;  %v2741_v38 = vshrl.u32 %v7170_v25, 16 }
 0x31a   : > { %v2751_v40 = vadd.s32 %v2749_v19, %v2747_v62  ;;  %v2769_v12 = vshll.u32 %v2766_v46, 16  ;;  %vm2834_vm13 = vcmp.ne.s32.totalorder %v2669_v51, 0  ;;  %vm2857_vm14 = vcmp.lt.s32.totalorder %v2669_v51, 0 }
 0x31b   : > { %2118 = vst [vmem:[#allocation4 + $0xa0] sm:$0xff] %v2095_v24  ;;  %v2974_v48 = vadd.f32 %v7138_v50, %v2095_v24  ;;  %v2771_v5 = vshll.u32 %v7210_v35, 16  ;;  %v2768_v11 = vmul.u32 58254, %v2763_v60  ;;  %vm3021_vm15 = vcmp.lt.s32.totalorder %v2925_v9, 16  ;;  %vm7220_vm1 = vmand %vm2857_vm14, %vm2834_vm13 }
 0x31c   : > { %v2903_v32 = vadd.s32 18, %v2669_v51  ;;  %vm2773_vm0 = vc.u32 %v2765_v47, %v2769_v12  ;;  %v2775_v20 = vadd.s32 %v2769_v12, %v2765_v47  ;;  %v2698_v13 = vsub.s32 %v7083_v7, %v2697_v0 }
 0x31d   : > { %v2997_v6 = vmax.f32 %v2974_v48, 0.0  ;;  %v2725_v23 = vshrl.u32 %v2724_v29, 4  ;;  %v2743_v27 = vshrl.u32 %v7181_v4, 16  ;;  %v2752_v22 = vadd.s32 %v2751_v40, %v2741_v38  ;;  %v2076_v40 = vld [vmem:[#allocation4 + $0x58] sm:$0xff] }
 0x31e   : > { %v2774_v58 = vsel %vm2773_vm0, 1, %v5242_v8  ;;  %vm2777_vm2 = vc.u32 %v2775_v20, %v2771_v5  ;;  %v7226_v26 = vadd.s32 176, %v6483_v14  ;;  %v2926_v59 = vsel %vm7220_vm1, %v2903_v32, %v2669_v51 }
 0x31f   : > { %v3089_v57 = vsel %vm3020_vm10, %v2997_v6, 0.0  ;;  %v2776_v53 = vadd.s32 %v2774_v58, %v2768_v11  ;;  %v2778_v7 = vsel %vm2777_vm2, 1, %v5242_v8  ;;  %vm2835_vm3 = vcmp.ne.s32.totalorder %v2698_v13, 0 }
 0x320   : > { %3112 = vst [vmem:[#allocation5 + $0x80] sm:$0xff] %v3089_v57  ;;  %v2036_v31 = vpop.f32.mrf.mxu0  ;;  %v2791_v4 = vand.u32 65535, %v7226_v26  ;;  %v2792_v45 = vshrl.u32 %v7226_v26, 16  ;;  %vm2858_vm4 = vcmp.lt.s32.totalorder %v2698_v13, 0  ;;  %v2726_v21 = vmul.u32 18, %v2725_v23 }
 0x321   : > { %v2096_v16 = vadd.f32 %v2073_v61, %v2036_v31  ;;  %v2753_v14 = vadd.s32 %v2752_v22, %v2743_v27  ;;  %v2770_v24 = vshrl.u32 %v2766_v46, 16  ;;  %v2780_v30 = vadd.s32 %v2778_v7, %v2776_v53  ;;  %vm7236_vm6 = vmand %vm2858_vm4, %vm2835_vm3 }
 0x322   : > { %v7233_v56 = vmul.u32 58254, %v2791_v4  ;;  %vm3022_vm5 = vcmp.lt.s32.totalorder %v2926_v59, 16  ;;  %v2904_v1 = vadd.s32 18, %v2698_v13  ;;  %v2794_v18 = vmul.u32 14564, %v2791_v4 }
 0x323   : > { %2119 = vst [vmem:[#allocation4 + $0xa8] sm:$0xff] %v2096_v16  ;;  %v2975_v54 = vadd.f32 %v7138_v50, %v2096_v16  ;;  %v7240_v48 = vmul.u32 14564, %v2792_v45  ;;  %v2727_v63 = vsub.s32 %v7133_v55, %v2726_v21  ;;  %v2754_v39 = vshrl.u32 %v2753_v14, 4  ;;  %v2078_v14 = vld [vmem:[#allocation4 + $0x20] sm:$0xff] }
 0x324   : > { %v2798_v43 = vshll.u32 %v7233_v56, 16  ;;  %v2772_v37 = vshrl.u32 %v7210_v35, 16  ;;  %v2781_v6 = vadd.s32 %v2780_v30, %v2770_v24  ;;  %v2927_v3 = vsel %vm7236_vm6, %v2904_v1, %v2698_v13 }
 0x325   : > { %v2998_v2 = vmax.f32 %v2975_v54, 0.0  ;;  %v2800_v60 = vshll.u32 %v7240_v48, 16  ;;  %vm2836_vm8 = vcmp.ne.s32.totalorder %v2727_v63, 0  ;;  %v2755_v51 = vmul.u32 18, %v2754_v39 }
 0x326   : > { %vm2802_vm7 = vc.u32 %v2794_v18, %v2798_v43  ;;  %v2804_v57 = vadd.s32 %v2798_v43, %v2794_v18  ;;  %vm2859_vm9 = vcmp.lt.s32.totalorder %v2727_v63, 0  ;;  %v2782_v19 = vadd.s32 %v2781_v6, %v2772_v37 }
 0x327   : > { %v3090_v17 = vsel %vm3021_vm15, %v2998_v2, 0.0  ;;  %v2797_v31 = vmul.u32 58254, %v2792_v45  ;;  %vm3023_vm10 = vcmp.lt.s32.totalorder %v2927_v3, 16  ;;  %v2803_v61 = vsel %vm2802_vm7, 1, %v5242_v8  ;;  %vm7250_vm12 = vmand %vm2859_vm9, %vm2836_vm8 }
 0x328   : > { %3113 = vst [vmem:[#allocation5 + $0x88] sm:$0xff] %v3090_v17  ;;  %v2039_v44 = vpop.f32.mrf.mxu0  ;;  %v2905_v46 = vadd.s32 18, %v2727_v63  ;;  %vm2806_vm11 = vc.u32 %v2804_v57, %v2800_v60  ;;  %v2756_v16 = vsub.s32 %v7154_v42, %v2755_v51  ;;  %v2783_v0 = vshrl.u32 %v2782_v19, 4  ;;  %v2077_v17 = vld [vmem:[#allocation4 + $0x80] sm:$0xff] }
 0x329   : > { %v2097_v52 = vadd.f32 %v2074_v15, %v2039_v44  ;;  %v2805_v29 = vadd.s32 %v2803_v61, %v2797_v31  ;;  %v2807_v12 = vsel %vm2806_vm11, 1, %v5242_v8  ;;  %v2799_v42 = vshrl.u32 %v7233_v56, 16 }
 0x32a   : > { %v2928_v54 = vsel %vm7250_vm12, %v2905_v46, %v2727_v63  ;;  %vm2837_vm13 = vcmp.ne.s32.totalorder %v2756_v16, 0  ;;  %vm2860_vm14 = vcmp.lt.s32.totalorder %v2756_v16, 0  ;;  %v2784_v32 = vmul.u32 18, %v2783_v0 }
 0x32b   : > { %2120 = vst [vmem:[#allocation4 + $0x68] sm:$0xff] %v2097_v52  ;;  %v2976_v36 = vadd.f32 %v7138_v50, %v2097_v52  ;;  %v2809_v20 = vadd.s32 %v2807_v12, %v2805_v29  ;;  %vm3024_vm15 = vcmp.lt.s32.totalorder %v2928_v54, 16  ;;  %v2906_v13 = vadd.s32 18, %v2756_v16  ;;  %vm7260_vm0 = vmand %vm2860_vm14, %vm2837_vm13 }
 0x32c   : > { %v2785_v27 = vsub.s32 %v7193_v10, %v2784_v32  ;;  %v2801_v25 = vshrl.u32 %v7240_v48, 16  ;;  %v5243_v15 = vmov 0.0   ;;  %v2079_v48 = vld [vmem:[#allocation4 + $0x8] sm:$0xf] }
 0x32d   : > { %v2999_v33 = vmax.f32 %v2976_v36, 0.0  ;;  %v2810_v22 = vadd.s32 %v2809_v20, %v2799_v42  ;;  %v2929_v44 = vsel %vm7260_vm0, %v2906_v13, %v2756_v16  ;;  %3120 = vst [vmem:[#allocation5 + $0x7] sm:$0x1] %v5243_v15 }
 0x32e   : > { %vm2838_vm1 = vcmp.ne.s32.totalorder %v2785_v27, 0  ;;  %vm2861_vm2 = vcmp.lt.s32.totalorder %v2785_v27, 0  ;;  %vm3025_vm3 = vcmp.lt.s32.totalorder %v2929_v44, 16  ;;  %v2907_v52 = vadd.s32 18, %v2785_v27 }
 0x32f   : > { %v3091_v34 = vsel %vm3022_vm5, %v2999_v33, 0.0  ;;  %v2811_v4 = vadd.s32 %v2810_v22, %v2801_v25  ;;  %vm2884_vm4 = vmand %vm2861_vm2, %vm2838_vm1 }
 0x330   : > { %3114 = vst [vmem:[#allocation5 + $0x90] sm:$0xff] %v3091_v34  ;;  %v2042_v49 = vpop.f32.mrf.mxu0  ;;  %v2930_v36 = vsel %vm2884_vm4, %v2907_v52, %v2785_v27 }
 0x331   : > { %v2098_v62 = vadd.f32 %v2075_v28, %v2042_v49  ;;  %v2812_v45 = vshrl.u32 %v2811_v4, 4  ;;  %vm3026_vm5 = vcmp.lt.s32.totalorder %v2930_v36, 16 }
 0x333   : > { %2121 = vst [vmem:[#allocation4 + $0x30] sm:$0xff] %v2098_v62  ;;  %v2977_v55 = vadd.f32 %v7138_v50, %v2098_v62  ;;  %v2813_v30 = vmul.u32 18, %v2812_v45 }
 0x335   : > { %v3000_v47 = vmax.f32 %v2977_v55, 0.0  ;;  %v2814_v41 = vsub.s32 %v7226_v26, %v2813_v30 }
 0x337   : > { %v3092_v9 = vsel %vm3023_vm10, %v3000_v47, 0.0  ;;  %vm2839_vm6 = vcmp.ne.s32.totalorder %v2814_v41, 0  ;;  %vm2862_vm7 = vcmp.lt.s32.totalorder %v2814_v41, 0  ;;  %v2908_v63 = vadd.s32 18, %v2814_v41 }
 0x338   : > { %3115 = vst [vmem:[#allocation5 + $0x98] sm:$0xff] %v3092_v9  ;;  %v2045_v38 = vpop.f32.mrf.mxu0  ;;  %vm2885_vm8 = vmand %vm2862_vm7, %vm2839_vm6 }
 0x339   : > { %v2099_v5 = vadd.f32 %v2076_v40, %v2045_v38  ;;  %v2931_v39 = vsel %vm2885_vm8, %v2908_v63, %v2814_v41 }
 0x33a   : > { %vm3027_vm9 = vcmp.lt.s32.totalorder %v2931_v39, 16 }
 0x33b   : > { %2122 = vst [vmem:[#allocation4 + $0x58] sm:$0xff] %v2099_v5  ;;  %v2978_v11 = vadd.f32 %v7138_v50, %v2099_v5 }
 0x33d   : > { %v3001_v2 = vmax.f32 %v2978_v11, 0.0 }
 0x33f   : > { %v3093_v8 = vsel %vm3024_vm15, %v3001_v2, 0.0 }
 0x340   : > { %3116 = vst [vmem:[#allocation5 + $0xa0] sm:$0xff] %v3093_v8  ;;  %v2048_v58 = vpop.f32.mrf.mxu0 }
 0x341   : > { %v2100_v53 = vadd.f32 %v2077_v17, %v2048_v58 }
 0x343   : > { %2123 = vst [vmem:[#allocation4 + $0x80] sm:$0xff] %v2100_v53  ;;  %v2979_v7 = vadd.f32 %v7138_v50, %v2100_v53 }
 0x345   : > { %v3002_v10 = vmax.f32 %v2979_v7, 0.0 }
 0x347   : > { %v3094_v59 = vsel %vm3025_vm3, %v3002_v10, 0.0 }
 0x348   : > { %3117 = vst [vmem:[#allocation5 + $0xa8] sm:$0xff] %v3094_v59  ;;  %v2051_v21 = vpop.f32.mrf.mxu0 }
 0x349   : > { %v2101_v56 = vadd.f32 %v2078_v14, %v2051_v21 }
 0x34b   : > { %2124 = vst [vmem:[#allocation4 + $0x20] sm:$0xff] %v2101_v56  ;;  %v2980_v24 = vadd.f32 %v7138_v50, %v2101_v56 }
 0x34d   : > { %v3003_v1 = vmax.f32 %v2980_v24, 0.0 }
 0x34f   : > { %v3095_v33 = vsel %vm3026_vm5, %v3003_v1, 0.0 }
 0x350   : > { %3118 = vst [vmem:[#allocation5 + $0xb0] sm:$0xff] %v3095_v33  ;;  %v2054_v18 = vpop.f32.mrf.mxu0 }
 0x351   : > { %v2102_v43 = vadd.f32 %v2079_v48, %v2054_v18 }
 0x353   : > { %2125 = vst [vmem:[#allocation4 + $0x8] sm:$0xf] %v2102_v43 }
 0x35a   : > { %v2954_v34 = vld [vmem:[#allocation4 + $0x8] sm:$0xf] }
 0x35b   : > { %v2981_v37 = vadd.f32 %v7138_v50, %v2954_v34 }
 0x35c   : > { %3123 = sbr.rel (%p4795_p4) target bundleno = 869 (0x365), region = 96 }
 0x35d   : > { %v3004_v6 = vmax.f32 %v2981_v37, 0.0 }
 0x35f   : > { %v3096_v49 = vsel %vm3027_vm9, %v3004_v6, 0.0 }
 0x360   : > { %3119 = vst [vmem:[#allocation5 + $0xb8] sm:$0xf] %v3096_v49 }
 0x361   : > { %v5244_v26 = vmov 0.0  }
 0x362   : > { %3124 = vst [vmem:[#allocation5 + $0x8] sm:$0xff] %v5244_v26 }
 0x363   : > { %3125 = vst [vmem:[#allocation5 + $0x10] sm:$0xff] %v5244_v26 }
 0x364   : > { %3126 = vst [vmem:[#allocation5 + $0x18] sm:$0x3] %v5244_v26 }
 0x365 PF: > { %p4958_p6 = scmp.ne.s32.totalorder %s5221_s21, 1 }
 0x367   : > { %3130 = sbr.rel (%p4958_p6) target bundleno = 880 (0x370), region = 100 }
 0x36c   : > { %v5245_v28 = vmov 0.0  }
 0x36d   : > { %3131 = vst [vmem:[#allocation5 + $0xaa] sm:$0xff] %v5245_v28 }
 0x36e   : > { %3132 = vst [vmem:[#allocation5 + $0xb2] sm:$0xff] %v5245_v28 }
 0x36f   : > { %3133 = vst [vmem:[#allocation5 + $0xba] sm:$0x3] %v5245_v28 }
 0x370 PF: > { %v3167_v50 = vld [vmem:[#allocation6 + $0x78] sm:$0xff]  ;;  %v3166_v3 = vld [vmem:[#allocation6 + $0x70] sm:$0xff]  ;;  %v3165_v57 = vld [vmem:[#allocation6 + $0x68] sm:$0xff]  ;;  %s4657_s15 = smul.u32 18, %s5221_s21  ;;  %s4664_s27 = sshll.u32 %s5378_s12, 4  ;;  %s4665_s27 = int_to_ptr.vmem [resolvable:$true] %s4664_s27 }
 0x371   : > { %v3291_v62 = vld [vmem:[#allocation6 + $0xf8] sm:$0xff]  ;;  %3168 = vmatpush.msra.mxu1 %v3167_v50  ;;  %v3290_v60 = vld [vmem:[#allocation6 + $0xf0] sm:$0xff]  ;;  %v3289_v51 = vld [vmem:[#allocation6 + $0xe8] sm:$0xff]  ;;  %s5013_s11 = smul.u32 36, %s5225_s22  ;;  %s7643_s26 = sand.u32 1, %s5213_s19  }
 0x372   : > { %3292 = vmatpush.msra.mxu2 %v3291_v62  ;;  %v3164_v55 = vld [vmem:[#allocation6 + $0x60] sm:$0xff]  ;;  %v3451_v31 = vld [vmem:[#allocation6 + $0x178] sm:$0xff]  ;;  %v3450_v61 = vld [vmem:[#allocation6 + $0x170] sm:$0xff]  ;;  %s4650_s9 = scalar_lea.sflag [#allocation8], %s7643_s26 }
 0x373   : > { %3169 = vmatpush.msra.mxu1 %v3166_v3  ;;  %v3288_v19 = vld [vmem:[#allocation6 + $0xe0] sm:$0xff]  ;;  %v3163_v47 = vld [vmem:[#allocation6 + $0x58] sm:$0xff]  ;;  %3452 = vmatpush.msra.mxu3 %v3451_v31  ;;  %v3449_v35 = vld [vmem:[#allocation6 + $0x168] sm:$0xff]  ;;  %s4661_s30 = sadd.s32 %s5013_s11, %s4657_s15  ;;  %s5157_s11 = scalar_lea.hbm %s7557_s5, 576 }
 0x374   : > { %3293 = vmatpush.msra.mxu2 %v3290_v60  ;;  %v3287_v46 = vld [vmem:[#allocation6 + $0xd8] sm:$0xff]  ;;  %v3162_v16 = vld [vmem:[#allocation6 + $0x50] sm:$0xff]  ;;  %v3448_v0 = vld [vmem:[#allocation6 + $0x160] sm:$0xff]  ;;  %s4959_s21 = sshll.u32 %s4661_s30, 3 }
 0x375   : > { %3170 = vmatpush.msra.mxu1 %v3165_v57  ;;  %v3286_v9 = vld [vmem:[#allocation6 + $0xd0] sm:$0xff]  ;;  %3453 = vmatpush.msra.mxu3 %v3450_v61  ;;  %v3161_v29 = vld [vmem:[#allocation6 + $0x48] sm:$0xff]  ;;  %v3447_v40 = vld [vmem:[#allocation6 + $0x158] sm:$0xff]  ;;  %s4663_s17 = scalar_lea.hbm %s7557_s5, %s4959_s21 }
 0x376   : > { %3294 = vmatpush.msra.mxu2 %v3289_v51  ;;  %v3285_v38 = vld [vmem:[#allocation6 + $0xc8] sm:$0xff]  ;;  %v3160_v12 = vld [vmem:[#allocation6 + $0x40] sm:$0xff]  ;;  %v3446_v54 = vld [vmem:[#allocation6 + $0x150] sm:$0xff]  ;;  %s4666_s6 = sshll.u32 %s4663_s17, 4  ;;  %s4667_s6 = int_to_ptr.hbm [resolvable:$true] %s4666_s6 }
 0x377   : > { %3171 = vmatpush.msra.mxu1 %v3164_v55  ;;  %3454 = vmatpush.msra.mxu3 %v3449_v35  ;;  %v3284_v5 = vld [vmem:[#allocation6 + $0xc0] sm:$0xff]  ;;  %v3159_v11 = vld [vmem:[#allocation6 + $0x38] sm:$0xff]  ;;  %v3445_v42 = vld [vmem:[#allocation6 + $0x148] sm:$0xff]  ;;  %s5151_s3 = sshra.s32 %s4667_s6, 4  ;;  %s5152_s3 = int_to_ptr.hbm [resolvable:$true] %s5151_s3 }
 0x378   : > { %3295 = vmatpush.msra.mxu2 %v3288_v19  ;;  %v3283_v32 = vld [vmem:[#allocation6 + $0xb8] sm:$0xff]  ;;  %v3158_v20 = vld [vmem:[#allocation6 + $0x30] sm:$0xff]  ;;  %v3444_v13 = vld [vmem:[#allocation6 + $0x140] sm:$0xff]  ;;  %s5153_s13 = scalar_lea.hbm %s5152_s3, 144  ;;  %p5158_p11 = scmp.lt.s32.totalorder %s5152_s3, %s7557_s5 }
 0x379   : > { %3172 = vmatpush.msra.mxu1 %v3163_v47  ;;  %3455 = vmatpush.msra.mxu3 %v3448_v0  ;;  %v3282_v2 = vld [vmem:[#allocation6 + $0xb0] sm:$0xff]  ;;  %v3157_v23 = vld [vmem:[#allocation6 + $0x28] sm:$0xff]  ;;  %v3443_v27 = vld [vmem:[#allocation6 + $0x138] sm:$0xff]  ;;  %p5154_p7 = scmp.ne.s32.totalorder %s5152_s3, %s5153_s13  ;;  %p5159_p12 = scmp.lt.s32.totalorder %s5157_s11, %s5153_s13 }
 0x37a   : > { %3296 = vmatpush.msra.mxu2 %v3287_v46  ;;  %v3281_v8 = vld [vmem:[#allocation6 + $0xa8] sm:$0xff]  ;;  %v3156_v25 = vld [vmem:[#allocation6 + $0x20] sm:$0xff]  ;;  %v3442_v58 = vld [vmem:[#allocation6 + $0x130] sm:$0xff] }
 0x37b   : > { %3173 = vmatpush.msra.mxu1 %v3162_v16  ;;  %3456 = vmatpush.msra.mxu3 %v3447_v40  ;;  %v3280_v22 = vld [vmem:[#allocation6 + $0xa0] sm:$0xff]  ;;  %v3155_v17 = vld [vmem:[#allocation6 + $0x18] sm:$0xff]  ;;  %v3441_v44 = vld [vmem:[#allocation6 + $0x128] sm:$0xff]  ;;  %p5155_p9 = pnand %p5154_p7, %p5330_p3  ;;  %p5160_p13 = por %p5159_p12, %p5158_p11 }
 0x37c   : > { %3297 = vmatpush.msra.mxu2 %v3286_v9  ;;  %v3279_v53 = vld [vmem:[#allocation6 + $0x98] sm:$0xff]  ;;  %v3154_v15 = vld [vmem:[#allocation6 + $0x10] sm:$0xff]  ;;  %v3440_v4 = vld [vmem:[#allocation6 + $0x120] sm:$0xff] }
 0x37d   : > { %3174 = vmatpush.msra.mxu1 %v3161_v29  ;;  %3457 = vmatpush.msra.mxu3 %v3446_v54  ;;  %v3278_v7 = vld [vmem:[#allocation6 + $0x90] sm:$0xff]  ;;  %v3153_v10 = vld [vmem:[#allocation6 + $0x8] sm:$0xff]  ;;  %v3439_v59 = vld [vmem:[#allocation6 + $0x118] sm:$0xff]  ;;  %p5156_p10 = pneg %p5155_p9 }
 0x37e   : > { %3298 = vmatpush.msra.mxu2 %v3285_v38  ;;  %v3277_v52 = vld [vmem:[#allocation6 + $0x88] sm:$0xff]  ;;  %v3152_v45 = vld [vmem:[#allocation6] sm:$0xff]  ;;  %v3611_v36 = vld [vmem:[#allocation6 + $0x1f8] sm:$0xff] }
 0x37f   : > { %3175 = vmatpush.msra.mxu1 %v3160_v12  ;;  %3458 = vmatpush.msra.mxu3 %v3445_v42  ;;  %v3276_v21 = vld [vmem:[#allocation6 + $0x80] sm:$0xff]  ;;  %v3771_v24 = vld [vmem:[#allocation6 + $0x278] sm:$0xff]  ;;  %v3438_v30 = vld [vmem:[#allocation6 + $0x110] sm:$0xff]  ;;  %p5161_p0 = pnand %p5160_p13, %p5156_p10 }
 0x380   : > { %3299 = vmatpush.msra.mxu2 %v3284_v5  ;;  %v3134_v14 = vld [vmem:[#allocation5 + $0x7] sm:$0xff]  ;;  %v3610_v1 = vld [vmem:[#allocation6 + $0x1f0] sm:$0xff]  ;;  %v3437_v41 = vld [vmem:[#allocation6 + $0x108] sm:$0xff] }
 0x381   : > { %3176 = vmatpush.msra.mxu1 %v3159_v11  ;;  %3459 = vmatpush.msra.mxu3 %v3444_v13  ;;  %v3257_v56 = vld [vmem:[#allocation5 + $0x8] sm:$0xff]  ;;  %v3770_v33 = vld [vmem:[#allocation6 + $0x270] sm:$0xff]  ;;  %v3609_v18 = vld [vmem:[#allocation6 + $0x1e8] sm:$0xff] }
 0x382   : > { %3300 = vmatpush.msra.mxu2 %v3283_v32  ;;  %v3769_v48 = vld [vmem:[#allocation6 + $0x268] sm:$0xff]  ;;  %v3436_v43 = vld [vmem:[#allocation6 + $0x100] sm:$0xff]  ;;  %v3607_v49 = vld [vmem:[#allocation6 + $0x1d8] sm:$0xff] }
 0x383   : > { %3177 = vmatpush.msra.mxu1 %v3158_v20  ;;  %3460 = vmatpush.msra.mxu3 %v3443_v27  ;;  %v3417_v63 = vld [vmem:[#allocation5 + $0x9] sm:$0xff]  ;;  %v3767_v26 = vld [vmem:[#allocation6 + $0x258] sm:$0xff]  ;;  %v3606_v28 = vld [vmem:[#allocation6 + $0x1d0] sm:$0xff] }
 0x384   : > { %3301 = vmatpush.msra.mxu2 %v3282_v2  ;;  %v3608_v39 = vld [vmem:[#allocation6 + $0x1e0] sm:$0xff]  ;;  %v3258_v37 = vld [vmem:[#allocation5 + $0x10] sm:$0xff]  ;;  %v3259_v62 = vld [vmem:[#allocation5 + $0x18] sm:$0xff] }
 0x385   : > { %3178 = vmatpush.msra.mxu1 %v3157_v23  ;;  %3461 = vmatpush.msra.mxu3 %v3442_v58  ;;  %v3135_v34 = vld [vmem:[#allocation5 + $0xf] sm:$0xff]  ;;  %v3136_v3 = vld [vmem:[#allocation5 + $0x17] sm:$0xff]  ;;  %v3137_v55 = vld [vmem:[#allocation5 + $0x1f] sm:$0xff] }
 0x386   : > { %3302 = vmatpush.msra.mxu2 %v3281_v8  ;;  %v3768_v6 = vld [vmem:[#allocation6 + $0x260] sm:$0xff]  ;;  %v3418_v50 = vld [vmem:[#allocation5 + $0x11] sm:$0xff]  ;;  %v7275_v51 = vld [vmem:[#allocation5 + $0x19] sm:$0xff] }
 0x387   : > { %3179 = vmatpush.msra.mxu1 %v3156_v25  ;;  %3462 = vmatpush.msra.mxu3 %v3441_v44  ;;  %v3766_v60 = vld [vmem:[#allocation6 + $0x250] sm:$0xff]  ;;  %v3605_v57 = vld [vmem:[#allocation6 + $0x1c8] sm:$0xff]  ;;  %v3260_v19 = vld [vmem:[#allocation5 + $0x20] sm:$0xff] }
 0x388   : > { %3303 = vmatpush.msra.mxu2 %v3280_v22  ;;  %v3765_v31 = vld [vmem:[#allocation6 + $0x248] sm:$0xff]  ;;  %v3604_v61 = vld [vmem:[#allocation6 + $0x1c0] sm:$0xff]  ;;  %v3603_v38 = vld [vmem:[#allocation6 + $0x1b8] sm:$0xff] }
 0x389   : > { %3180 = vmatpush.msra.mxu1 %v3155_v17  ;;  %3463 = vmatpush.msra.mxu3 %v3440_v4  ;;  %v7278_v47 = vld [vmem:[#allocation5 + $0x21] sm:$0xff]  ;;  %v7281_v9 = vld [vmem:[#allocation5 + $0x29] sm:$0xff]  ;;  %v7284_v12 = vld [vmem:[#allocation5 + $0x31] sm:$0xff] }
 0x38a   : > { %3304 = vmatpush.msra.mxu2 %v3279_v53  ;;  %v3138_v46 = vld [vmem:[#allocation5 + $0x27] sm:$0xff]  ;;  %v3139_v0 = vld [vmem:[#allocation5 + $0x2f] sm:$0xff]  ;;  %v3140_v5 = vld [vmem:[#allocation5 + $0x37] sm:$0xff] }
 0x38b   : > { %3181 = vmatpush.msra.mxu1 %v3154_v15  ;;  %3464 = vmatpush.msra.mxu3 %v3439_v59  ;;  %v3261_v35 = vld [vmem:[#allocation5 + $0x28] sm:$0xff]  ;;  %v3262_v29 = vld [vmem:[#allocation5 + $0x30] sm:$0xff]  ;;  %v3763_v40 = vld [vmem:[#allocation6 + $0x238] sm:$0xff] }
 0x38c   : > { %3305 = vmatpush.msra.mxu2 %v3278_v7  ;;  %v3764_v16 = vld [vmem:[#allocation6 + $0x240] sm:$0xff]  ;;  %v3263_v54 = vld [vmem:[#allocation5 + $0x38] sm:$0xff]  ;;  %v3264_v2 = vld [vmem:[#allocation5 + $0x40] sm:$0xff] }
 0x38d   : > { %3182 = vmatpush.msra.mxu1 %v3153_v10  ;;  %3465 = vmatpush.msra.mxu3 %v3438_v30  ;;  %v3602_v11 = vld [vmem:[#allocation6 + $0x1b0] sm:$0xff]  ;;  %v3601_v13 = vld [vmem:[#allocation6 + $0x1a8] sm:$0xff]  ;;  %v7290_v8 = vld [vmem:[#allocation5 + $0x41] sm:$0xff] }
 0x38e   : > { %3306 = vmatpush.msra.mxu2 %v3277_v52  ;;  %v3762_v32 = vld [vmem:[#allocation6 + $0x230] sm:$0xff]  ;;  %v3761_v23 = vld [vmem:[#allocation6 + $0x228] sm:$0xff]  ;;  %v3142_v27 = vld [vmem:[#allocation5 + $0x47] sm:$0xff] }
 0x38f   : > { %3183 = vmatpush.msra.mxu1 %v3152_v45  ;;  %3466 = vmatpush.msra.mxu3 %v3437_v41  ;;  %v7287_v42 = vld [vmem:[#allocation5 + $0x39] sm:$0xff]  ;;  %v3265_v25 = vld [vmem:[#allocation5 + $0x48] sm:$0xff]  ;;  %v3266_v44 = vld [vmem:[#allocation5 + $0x50] sm:$0xff] }
 0x390   : > { %3307 = vmatpush.msra.mxu2 %v3276_v21  ;;  %3184 = vmatmul.f32.vlgmr.msra.gmra.mxu1 %v3134_v14  ;;  %v3141_v20 = vld [vmem:[#allocation5 + $0x3f] sm:$0xff]  ;;  %v3600_v22 = vld [vmem:[#allocation6 + $0x1a0] sm:$0xff]  ;;  %v7296_v7 = vld [vmem:[#allocation5 + $0x51] sm:$0xff] }
 0x391   : > { %3308 = vmatmul.f32.vlgmr.msra.gmra.mxu2 %v3257_v56  ;;  %3612 = vmatpush.msrb.mxu1 %v3611_v36  ;;  %v3760_v58 = vld [vmem:[#allocation6 + $0x220] sm:$0xff]  ;;  %v3599_v15 = vld [vmem:[#allocation6 + $0x198] sm:$0xff]  ;;  %v3144_v4 = vld [vmem:[#allocation5 + $0x57] sm:$0xff] }
 0x392   : > { %3772 = vmatpush.msrb.mxu2 %v3771_v24  ;;  %3467 = vmatpush.msra.mxu3 %v3436_v43  ;;  %v7293_v17 = vld [vmem:[#allocation5 + $0x49] sm:$0xff]  ;;  %v3267_v10 = vld [vmem:[#allocation5 + $0x58] sm:$0xff]  ;;  %v3759_v52 = vld [vmem:[#allocation6 + $0x218] sm:$0xff] }
 0x393   : > { %3613 = vmatpush.msrb.mxu1 %v3610_v1  ;;  %3468 = vmatmul.f32.vlgmr.msra.gmra.mxu3 %v3417_v63  ;;  %v3143_v53 = vld [vmem:[#allocation5 + $0x4f] sm:$0xff]  ;;  %v3598_v59 = vld [vmem:[#allocation6 + $0x190] sm:$0xff]  ;;  %v3931_v45 = vld [vmem:[#allocation6 + $0x2f8] sm:$0xff] }
 0x394   : > { %3773 = vmatpush.msrb.mxu2 %v3770_v33  ;;  %3932 = vmatpush.msrb.mxu3 %v3931_v45  ;;  %v7299_v21 = vld [vmem:[#allocation5 + $0x59] sm:$0xff]  ;;  %v3929_v30 = vld [vmem:[#allocation6 + $0x2e8] sm:$0xff]  ;;  %v3146_v1 = vld [vmem:[#allocation5 + $0x67] sm:$0xff] }
 0x395   : > { %3614 = vmatpush.msrb.mxu1 %v3609_v18  ;;  %v3145_v14 = vld [vmem:[#allocation5 + $0x5f] sm:$0xff]  ;;  %v3269_v41 = vld [vmem:[#allocation5 + $0x68] sm:$0xff]  ;;  %v3597_v18 = vld [vmem:[#allocation6 + $0x188] sm:$0xff] }
 0x396   : > { %3774 = vmatpush.msrb.mxu2 %v3769_v48  ;;  %v3268_v56 = vld [vmem:[#allocation5 + $0x60] sm:$0xff]  ;;  %v3758_v36 = vld [vmem:[#allocation6 + $0x210] sm:$0xff]  ;;  %v3928_v48 = vld [vmem:[#allocation6 + $0x2e0] sm:$0xff] }
 0x397   : > { %3615 = vmatpush.msrb.mxu1 %v3608_v39  ;;  %v3930_v24 = vld [vmem:[#allocation6 + $0x2f0] sm:$0xff]  ;;  %v7302_v33 = vld [vmem:[#allocation5 + $0x61] sm:$0xff]  ;;  %v3757_v39 = vld [vmem:[#allocation6 + $0x208] sm:$0xff] }
 0x398   : > { %3187 = vmatmul.f32.gmra.mxu1 %v3135_v34  ;;  %3775 = vmatpush.msrb.mxu2 %v3768_v6  ;;  %v3927_v43 = vld [vmem:[#allocation6 + $0x2d8] sm:$0xff]  ;;  %v3926_v34 = vld [vmem:[#allocation6 + $0x2d0] sm:$0xff]  ;;  %v3925_v6 = vld [vmem:[#allocation6 + $0x2c8] sm:$0xff] }
 0x399   : > { %3311 = vmatmul.f32.gmra.mxu2 %v3258_v37  ;;  %3616 = vmatpush.msrb.mxu1 %v3607_v49  ;;  %v4091_v63 = vld [vmem:[#allocation6 + $0x378] sm:$0xff]  ;;  %v4090_v37 = vld [vmem:[#allocation6 + $0x370] sm:$0xff]  ;;  %v4089_v49 = vld [vmem:[#allocation6 + $0x368] sm:$0xff] }
 0x39a   : > { %3776 = vmatpush.msrb.mxu2 %v3767_v26  ;;  %3933 = vmatpush.msrb.mxu3 %v3930_v24  ;;  %v7305_v26 = vld [vmem:[#allocation5 + $0x69] sm:$0xff]  ;;  %v4079_v45 = vld [vmem:[#allocation6 + $0x318] sm:$0xff] }
 0x39b   : > { %3617 = vmatpush.msrb.mxu1 %v3606_v28  ;;  %3471 = vmatmul.f32.gmra.mxu3 %v3418_v50  ;;  %v3147_v28 = vld [vmem:[#allocation5 + $0x6f] sm:$0xff] }
 0x39c   : > { %3777 = vmatpush.msrb.mxu2 %v3766_v60  ;;  %3934 = vmatpush.msrb.mxu3 %v3929_v30  ;;  %v3270_v50 = vld [vmem:[#allocation5 + $0x70] sm:$0xff]  ;;  %v4088_v60 = vld [vmem:[#allocation6 + $0x360] sm:$0xff] }
 0x39d   : > { %3618 = vmatpush.msrb.mxu1 %v3605_v57  ;;  %4092 = vmatpush.msra.mxu0 %v4091_v63  ;;  %v3756_v57 = vld [vmem:[#allocation6 + $0x200] sm:$0xff]  ;;  %v4409_v63 = vld [vmem:[#allocation6 + $0x468] sm:$0xff] }
 0x39e   : > { %3778 = vmatpush.msrb.mxu2 %v3765_v31  ;;  %3935 = vmatpush.msrb.mxu3 %v3928_v48  ;;  %v3922_v31 = vld [vmem:[#allocation6 + $0x2b0] sm:$0xff]  ;;  %v3151_v48 = vld [vmem:[#allocation5 + $0x8f] sm:$0xff] }
 0x39f   : > { %3619 = vmatpush.msrb.mxu1 %v3604_v61  ;;  %4093 = vmatpush.msra.mxu0 %v4090_v37  ;;  %v4086_v61 = vld [vmem:[#allocation6 + $0x350] sm:$0xff] }
 0x3a0   : > { %3190 = vmatmul.f32.gmra.mxu1 %v3136_v3  ;;  %3779 = vmatpush.msrb.mxu2 %v3764_v16  ;;  %v3596_v3 = vld [vmem:[#allocation6 + $0x180] sm:$0xff]  ;;  %v3271_v16 = vld [vmem:[#allocation5 + $0x78] sm:$0xff] }
 0x3a1   : > { %3314 = vmatmul.f32.gmra.mxu2 %v3259_v62  ;;  %3620 = vmatpush.msrb.mxu1 %v3603_v38  ;;  %v3924_v62 = vld [vmem:[#allocation6 + $0x2c0] sm:$0xff]  ;;  %v4251_v38 = vld [vmem:[#allocation6 + $0x3f8] sm:$0xff] }
 0x3a2   : > { %3780 = vmatpush.msrb.mxu2 %v3763_v40  ;;  %3936 = vmatpush.msrb.mxu3 %v3927_v43  ;;  %v4411_v40 = vld [vmem:[#allocation6 + $0x478] sm:$0xff]  ;;  %v3274_v43 = vld [vmem:[#allocation5 + $0x90] sm:$0xff] }
 0x3a3   : > { %3474 = vmatmul.f32.gmra.mxu3 %v7275_v51  ;;  %3621 = vmatpush.msrb.mxu1 %v3602_v11  ;;  %v3919_v11 = vld [vmem:[#allocation6 + $0x298] sm:$0xff] }
 0x3a4   : > { %3781 = vmatpush.msrb.mxu2 %v3762_v32  ;;  %3937 = vmatpush.msrb.mxu3 %v3926_v34  ;;  %v4083_v32 = vld [vmem:[#allocation6 + $0x338] sm:$0xff]  ;;  %v4248_v34 = vld [vmem:[#allocation6 + $0x3e0] sm:$0xff] }
 0x3a5   : > { %3622 = vmatpush.msrb.mxu1 %v3601_v13  ;;  %4094 = vmatpush.msra.mxu0 %v4089_v49  ;;  %v3272_v13 = vld [vmem:[#allocation5 + $0x80] sm:$0xff] }
 0x3a6   : > { %3782 = vmatpush.msrb.mxu2 %v3761_v23  ;;  %3938 = vmatpush.msrb.mxu3 %v3925_v6  ;;  %v3918_v23 = vld [vmem:[#allocation6 + $0x290] sm:$0xff] }
 0x3a7   : > { %3623 = vmatpush.msrb.mxu1 %v3600_v22  ;;  %4095 = vmatpush.msra.mxu0 %v4088_v60  ;;  %v3917_v22 = vld [vmem:[#allocation6 + $0x288] sm:$0xff]  ;;  %v4408_v60 = vld [vmem:[#allocation6 + $0x460] sm:$0xff] }
 0x3a8   : > { %3193 = vmatmul.f32.gmra.mxu1 %v3137_v55  ;;  %3783 = vmatpush.msrb.mxu2 %v3760_v58  ;;  %v3923_v55 = vld [vmem:[#allocation6 + $0x2b8] sm:$0xff]  ;;  %v4081_v58 = vld [vmem:[#allocation6 + $0x328] sm:$0xff] }
 0x3a9   : > { %3317 = vmatmul.f32.gmra.mxu2 %v3260_v19  ;;  %3624 = vmatpush.msrb.mxu1 %v3599_v15  ;;  %v4087_v19 = vld [vmem:[#allocation6 + $0x358] sm:$0xff] }
 0x3aa   : > { %3784 = vmatpush.msrb.mxu2 %v3759_v52  ;;  %3939 = vmatpush.msrb.mxu3 %v3924_v62  ;;  %v7314_v15 = vld [vmem:[#allocation5 + $0x81] sm:$0xff] }
 0x3ab   : > { %3477 = vmatmul.f32.gmra.mxu3 %v7278_v47  ;;  %3625 = vmatpush.msrb.mxu1 %v3598_v59  ;;  %v3273_v52 = vld [vmem:[#allocation5 + $0x88] sm:$0xff]  ;;  %v4410_v59 = vld [vmem:[#allocation6 + $0x470] sm:$0xff] }
 0x3ac   : > { %3785 = vmatpush.msrb.mxu2 %v3758_v36  ;;  %3940 = vmatpush.msrb.mxu3 %v3923_v55  ;;  %v4077_v36 = vld [vmem:[#allocation6 + $0x308] sm:$0xff]  ;;  %v3737_v62 = vld [vmem:[#allocation5 + $0x1a] sm:$0xff] }
 0x3ad   : > { %3626 = vmatpush.msrb.mxu1 %v3597_v18  ;;  %4096 = vmatpush.msra.mxu0 %v4087_v19  ;;  %v4247_v55 = vld [vmem:[#allocation6 + $0x3d8] sm:$0xff] }
 0x3ae   : > { %3786 = vmatpush.msrb.mxu2 %v3757_v39  ;;  %3941 = vmatpush.msrb.mxu3 %v3922_v31  ;;  %v3899_v39 = vld [vmem:[#allocation5 + $0x2b] sm:$0xff] }
 0x3af   : > { %3627 = vmatpush.msrb.mxu1 %v3596_v3  ;;  %4097 = vmatpush.msra.mxu0 %v4086_v61 }
 0x3b0   : > { %3196 = vmatmul.f32.gmra.mxu1 %v3138_v46  ;;  %3787 = vmatpush.msrb.mxu2 %v3756_v57  ;;  %v7308_v46 = vld [vmem:[#allocation5 + $0x71] sm:$0xff] }
 0x3b1   : > { %3320 = vmatmul.f32.gmra.mxu2 %v3261_v35  ;;  %v3148_v35 = vld [vmem:[#allocation5 + $0x77] sm:$0xff]  ;;  %4252 = vmatpush.msra.mxu1 %v4251_v38 }
 0x3b2   : > { %4412 = vmatpush.msra.mxu2 %v4411_v40  ;;  %v3900_v57 = vld [vmem:[#allocation5 + $0x33] sm:$0xff]  ;;  %v3901_v38 = vld [vmem:[#allocation5 + $0x3b] sm:$0xff] }
 0x3b3   : > { %3480 = vmatmul.f32.gmra.mxu3 %v7281_v9  ;;  %v4407_v40 = vld [vmem:[#allocation6 + $0x458] sm:$0xff] }
 0x3b4   : > { %4413 = vmatpush.msra.mxu2 %v4410_v59  ;;  %v4405_v59 = vld [vmem:[#allocation6 + $0x448] sm:$0xff] }
 0x3b6   : > { %4414 = vmatpush.msra.mxu2 %v4409_v63 }
 0x3b8   : > { %3199 = vmatmul.f32.gmra.mxu1 %v3139_v0  ;;  %v3921_v0 = vld [vmem:[#allocation6 + $0x2a8] sm:$0xff]  ;;  %4415 = vmatpush.msra.mxu2 %v4408_v60 }
 0x3b9   : > { %3323 = vmatmul.f32.gmra.mxu2 %v3262_v29  ;;  %v4085_v29 = vld [vmem:[#allocation6 + $0x348] sm:$0xff]  ;;  %3942 = vmatpush.msrb.mxu3 %v3921_v0 }
 0x3ba   : > { %4098 = vmatpush.msra.mxu0 %v4085_v29  ;;  %v3738_v29 = vld [vmem:[#allocation5 + $0x22] sm:$0xff]  ;;  %4416 = vmatpush.msra.mxu2 %v4407_v40  ;;  %v4402_v40 = vld [vmem:[#allocation6 + $0x430] sm:$0xff] }
 0x3bb   : > { %3483 = vmatmul.f32.gmra.mxu3 %v7284_v12 }
 0x3c0   : > { %3202 = vmatmul.f32.gmra.mxu1 %v3140_v5  ;;  %v3920_v5 = vld [vmem:[#allocation6 + $0x2a0] sm:$0xff] }
 0x3c1   : > { %3326 = vmatmul.f32.gmra.mxu2 %v3263_v54  ;;  %v4084_v54 = vld [vmem:[#allocation6 + $0x340] sm:$0xff]  ;;  %3943 = vmatpush.msrb.mxu3 %v3920_v5 }
 0x3c2   : > { %4099 = vmatpush.msra.mxu0 %v4084_v54 }
 0x3c3   : > { %3486 = vmatmul.f32.gmra.mxu3 %v7287_v42 }
 0x3c4   : > { %3944 = vmatpush.msrb.mxu3 %v3919_v11  ;;  %4100 = vmatpush.msra.mxu0 %v4083_v32  ;;  %v3898_v32 = vld [vmem:[#allocation5 + $0x23] sm:$0xff] }
 0x3c6   : > { %3945 = vmatpush.msrb.mxu3 %v3918_v23  ;;  %v4246_v23 = vld [vmem:[#allocation6 + $0x3d0] sm:$0xff] }
 0x3c8   : > { %3205 = vmatmul.f32.gmra.mxu1 %v3141_v20  ;;  %v7311_v20 = vld [vmem:[#allocation5 + $0x79] sm:$0xff]  ;;  %3946 = vmatpush.msrb.mxu3 %v3917_v22 }
 0x3c9   : > { %3329 = vmatmul.f32.gmra.mxu2 %v3264_v2  ;;  %v3149_v2 = vld [vmem:[#allocation5 + $0x7f] sm:$0xff] }
 0x3cb   : > { %3489 = vmatmul.f32.gmra.mxu3 %v7290_v8 }
 0x3d0   : > { %3208 = vmatmul.f32.gmra.mxu1 %v3142_v27  ;;  %v4082_v27 = vld [vmem:[#allocation6 + $0x330] sm:$0xff] }
 0x3d1   : > { %3332 = vmatmul.f32.gmra.mxu2 %v3265_v25  ;;  %v4250_v25 = vld [vmem:[#allocation6 + $0x3f0] sm:$0xff]  ;;  %4101 = vmatpush.msra.mxu0 %v4082_v27  ;;  %v3902_v27 = vld [vmem:[#allocation5 + $0x43] sm:$0xff] }
 0x3d2   : > { %4253 = vmatpush.msra.mxu1 %v4250_v25 }
 0x3d3   : > { %3492 = vmatmul.f32.gmra.mxu3 %v7293_v17  ;;  %4102 = vmatpush.msra.mxu0 %v4081_v58 }
 0x3d8   : > { %3211 = vmatmul.f32.gmra.mxu1 %v3143_v53  ;;  %v3916_v53 = vld [vmem:[#allocation6 + $0x280] sm:$0xff] }
 0x3d9   : > { %3335 = vmatmul.f32.gmra.mxu2 %v3266_v44  ;;  %v4080_v44 = vld [vmem:[#allocation6 + $0x320] sm:$0xff]  ;;  %3947 = vmatpush.msrb.mxu3 %v3916_v53 }
 0x3da   : > { %4103 = vmatpush.msra.mxu0 %v4080_v44 }
 0x3db   : > { %3495 = vmatmul.f32.gmra.mxu3 %v7296_v7 }
 0x3dc   : > { %4104 = vmatpush.msra.mxu0 %v4079_v45 }
 0x3e0   : > { %3214 = vmatmul.f32.gmra.mxu1 %v3144_v4 }
 0x3e1   : > { %3338 = vmatmul.f32.gmra.mxu2 %v3267_v10  ;;  %v3150_v10 = vld [vmem:[#allocation5 + $0x87] sm:$0xff] }
 0x3e3   : > { %3498 = vmatmul.f32.gmra.mxu3 %v7299_v21 }
 0x3e8   : > { %3217 = vmatmul.f32.gmra.mxu1 %v3145_v14  ;;  %v4249_v14 = vld [vmem:[#allocation6 + $0x3e8] sm:$0xff] }
 0x3e9   : > { %3341 = vmatmul.f32.gmra.mxu2 %v3268_v56  ;;  %v4078_v56 = vld [vmem:[#allocation6 + $0x310] sm:$0xff]  ;;  %4254 = vmatpush.msra.mxu1 %v4249_v14 }
 0x3ea   : > { %4105 = vmatpush.msra.mxu0 %v4078_v56 }
 0x3eb   : > { %3501 = vmatmul.f32.gmra.mxu3 %v7302_v33  ;;  %4255 = vmatpush.msra.mxu1 %v4248_v34  ;;  %v3742_v34 = vld [vmem:[#allocation5 + $0x42] sm:$0xff] }
 0x3ec   : > { %4106 = vmatpush.msra.mxu0 %v4077_v36 }
 0x3ed   : > { %4256 = vmatpush.msra.mxu1 %v4247_v55  ;;  %v3743_v55 = vld [vmem:[#allocation5 + $0x4a] sm:$0xff] }
 0x3ef   : > { %4257 = vmatpush.msra.mxu1 %v4246_v23  ;;  %v3745_v23 = vld [vmem:[#allocation5 + $0x5a] sm:$0xff] }
 0x3f0   : > { %3220 = vmatmul.f32.gmra.mxu1 %v3146_v1  ;;  %v7317_v1 = vld [vmem:[#allocation5 + $0x89] sm:$0xff] }
 0x3f1   : > { %3344 = vmatmul.f32.gmra.mxu2 %v3269_v41  ;;  %v4076_v41 = vld [vmem:[#allocation6 + $0x300] sm:$0xff] }
 0x3f2   : > { %4107 = vmatpush.msra.mxu0 %v4076_v41  ;;  %v3904_v41 = vld [vmem:[#allocation5 + $0x53] sm:$0xff] }
 0x3f3   : > { %3504 = vmatmul.f32.gmra.mxu3 %v7305_v26  ;;  %4108 = vmatmul.f32.vlgmr.msra.gmra.mxu0 %v3899_v39 }
 0x3f8   : > { %3223 = vmatmul.f32.gmra.mxu1 %v3147_v28 }
 0x3f9   : > { %3347 = vmatmul.f32.gmra.mxu2 %v3270_v50  ;;  %v7322_v50 = vld [vmem:[#allocation5 + $0x91] sm:$0xff] }
 0x3fb   : > { %3507 = vmatmul.f32.gmra.mxu3 %v7308_v46  ;;  %4111 = vmatmul.f32.gmra.mxu0 %v3900_v57 }
 0x400   : > { %3226 = vmatmul.f32.gmra.mxu1 %v3148_v35 }
 0x401   : > { %3350 = vmatmul.f32.gmra.mxu2 %v3271_v16  ;;  %v3897_v16 = vld [vmem:[#allocation5 + $0x1b] sm:$0xff] }
 0x403   : > { %3510 = vmatmul.f32.gmra.mxu3 %v7311_v20  ;;  %4114 = vmatmul.f32.gmra.mxu0 %v3901_v38 }
 0x408   : > { %3229 = vmatmul.f32.gmra.mxu1 %v3149_v2 }
 0x409   : > { %3353 = vmatmul.f32.gmra.mxu2 %v3272_v13  ;;  %v3739_v13 = vld [vmem:[#allocation5 + $0x2a] sm:$0xff] }
 0x40b   : > { %3513 = vmatmul.f32.gmra.mxu3 %v7314_v15  ;;  %4117 = vmatmul.f32.gmra.mxu0 %v3902_v27 }
 0x40d   : > { %v3185_v4 = vpop.f32.mrf.mxu1 }
 0x410   : > { %3232 = vmatmul.f32.gmra.mxu1 %v3150_v10  ;;  %v4245_v10 = vld [vmem:[#allocation6 + $0x3c8] sm:$0xff] }
 0x411   : > { %3356 = vmatmul.f32.gmra.mxu2 %v3273_v52  ;;  %4258 = vmatpush.msra.mxu1 %v4245_v10  ;;  %v3903_v52 = vld [vmem:[#allocation5 + $0x4b] sm:$0xff]  ;;  %v3746_v10 = vld [vmem:[#allocation5 + $0x62] sm:$0xff] }
 0x413   : > { %3516 = vmatmul.f32.gmra.mxu3 %v7317_v1  ;;  %4120 = vmatmul.f32.gmra.mxu0 %v3903_v52 }
 0x414   : > { %v3309_v24 = vpop.f32.mrf.mxu2 }
 0x415   : > { %v3381_v30 = vadd.f32 %v3309_v24, %v3185_v4  ;;  %v3188_v18 = vpop.f32.mrf.mxu1  ;;  %v3740_v4 = vld [vmem:[#allocation5 + $0x32] sm:$0xff]  ;;  %v3741_v24 = vld [vmem:[#allocation5 + $0x3a] sm:$0xff] }
 0x416   : > { %v3469_v37 = vpop.f32.mrf.mxu3 }
 0x417   : > { %v7320_v49 = vadd.f32 %v3469_v37, %v3381_v30  ;;  %v4244_v30 = vld [vmem:[#allocation6 + $0x3c0] sm:$0xff]  ;;  %v3905_v37 = vld [vmem:[#allocation5 + $0x5b] sm:$0xff] }
 0x418   : > { %3235 = vmatmul.f32.gmra.mxu1 %v3151_v48 }
 0x419   : > { %3359 = vmatmul.f32.gmra.mxu2 %v3274_v43  ;;  %4259 = vmatpush.msra.mxu1 %v4244_v30  ;;  %v3747_v30 = vld [vmem:[#allocation5 + $0x6a] sm:$0xff] }
 0x41b   : > { %3519 = vmatmul.f32.gmra.mxu3 %v7322_v50  ;;  %4123 = vmatmul.f32.gmra.mxu0 %v3904_v41 }
 0x41c   : > { %v3312_v6 = vpop.f32.mrf.mxu2 }
 0x41d   : > { %v3382_v28 = vadd.f32 %v3312_v6, %v3188_v18  ;;  %v3191_v3 = vpop.f32.mrf.mxu1  ;;  %v4404_v18 = vld [vmem:[#allocation6 + $0x440] sm:$0xff]  ;;  %v4243_v6 = vld [vmem:[#allocation6 + $0x3b8] sm:$0xff] }
 0x41e   : > { %v3472_v19 = vpop.f32.mrf.mxu3  ;;  %4260 = vmatpush.msra.mxu1 %v4243_v6  ;;  %v3911_v6 = vld [vmem:[#allocation5 + $0x8b] sm:$0xff] }
 0x41f   : > { %v7326_v61 = vadd.f32 %v3472_v19, %v3382_v28  ;;  %v4403_v28 = vld [vmem:[#allocation6 + $0x438] sm:$0xff] }
 0x420   : > { %3628 = vmatmul.f32.vlgmr.msrb.gmra.mxu1 %v7275_v51  ;;  %v3906_v19 = vld [vmem:[#allocation5 + $0x63] sm:$0xff] }
 0x421   : > { %3788 = vmatmul.f32.vlgmr.msrb.gmra.mxu2 %v3737_v62 }
 0x423   : > { %3948 = vmatmul.f32.vlgmr.msrb.gmra.mxu3 %v3897_v16  ;;  %4126 = vmatmul.f32.gmra.mxu0 %v3905_v37 }
 0x424   : > { %v3315_v31 = vpop.f32.mrf.mxu2 }
 0x425   : > { %v3383_v35 = vadd.f32 %v3315_v31, %v3191_v3  ;;  %v3194_v0 = vpop.f32.mrf.mxu1  ;;  %v4242_v31 = vld [vmem:[#allocation6 + $0x3b0] sm:$0xff] }
 0x426   : > { %v3475_v51 = vpop.f32.mrf.mxu3  ;;  %4261 = vmatpush.msra.mxu1 %v4242_v31  ;;  %v3912_v31 = vld [vmem:[#allocation5 + $0x93] sm:$0xff] }
 0x427   : > { %v7329_v54 = vadd.f32 %v3475_v51, %v3383_v35  ;;  %v3907_v51 = vld [vmem:[#allocation5 + $0x6b] sm:$0xff] }
 0x428   : > { %3631 = vmatmul.f32.gmra.mxu1 %v7278_v47  ;;  %v4406_v47 = vld [vmem:[#allocation6 + $0x450] sm:$0xff] }
 0x429   : > { %3791 = vmatmul.f32.gmra.mxu2 %v3738_v29 }
 0x42a   : > { %4417 = vmatpush.msra.mxu2 %v4406_v47  ;;  %v3908_v47 = vld [vmem:[#allocation5 + $0x73] sm:$0xff] }
 0x42b   : > { %3951 = vmatmul.f32.gmra.mxu3 %v3898_v32  ;;  %4129 = vmatmul.f32.gmra.mxu0 %v3906_v19 }
 0x42c   : > { %v3318_v5 = vpop.f32.mrf.mxu2  ;;  %4418 = vmatpush.msra.mxu2 %v4405_v59  ;;  %v3909_v59 = vld [vmem:[#allocation5 + $0x7b] sm:$0xff] }
 0x42d   : > { %v3384_v11 = vadd.f32 %v3318_v5, %v3194_v0  ;;  %v3197_v2 = vpop.f32.mrf.mxu1  ;;  %v4241_v5 = vld [vmem:[#allocation6 + $0x3a8] sm:$0xff] }
 0x42e   : > { %v3478_v25 = vpop.f32.mrf.mxu3  ;;  %4419 = vmatpush.msra.mxu2 %v4404_v18  ;;  %4262 = vmatpush.msra.mxu1 %v4241_v5  ;;  %v4399_v18 = vld [vmem:[#allocation6 + $0x418] sm:$0xff] }
 0x42f   : > { %v7332_v58 = vadd.f32 %v3478_v25, %v3384_v11  ;;  %v4240_v25 = vld [vmem:[#allocation6 + $0x3a0] sm:$0xff]  ;;  %v3913_v5 = vld [vmem:[#allocation5 + $0x9b] sm:$0xff] }
 0x430   : > { %3634 = vmatmul.f32.gmra.mxu1 %v7281_v9  ;;  %4420 = vmatpush.msra.mxu2 %v4403_v28  ;;  %v4398_v28 = vld [vmem:[#allocation6 + $0x410] sm:$0xff] }
 0x431   : > { %3794 = vmatmul.f32.gmra.mxu2 %v3739_v13  ;;  %4263 = vmatpush.msra.mxu1 %v4240_v25 }
 0x432   : > { %4421 = vmatpush.msra.mxu2 %v4402_v40  ;;  %v3750_v40 = vld [vmem:[#allocation5 + $0x82] sm:$0xff] }
 0x433   : > { %3954 = vmatmul.f32.gmra.mxu3 %v3899_v39  ;;  %4132 = vmatmul.f32.gmra.mxu0 %v3907_v51 }
 0x434   : > { %v3321_v22 = vpop.f32.mrf.mxu2 }
 0x435   : > { %v3385_v53 = vadd.f32 %v3321_v22, %v3197_v2  ;;  %v3200_v44 = vpop.f32.mrf.mxu1 }
 0x436   : > { %v3481_v9 = vpop.f32.mrf.mxu3 }
 0x437   : > { %v7335_v14 = vadd.f32 %v3481_v9, %v3385_v53  ;;  %v4239_v9 = vld [vmem:[#allocation6 + $0x398] sm:$0xff] }
 0x438   : > { %3637 = vmatmul.f32.gmra.mxu1 %v7284_v12 }
 0x439   : > { %3797 = vmatmul.f32.gmra.mxu2 %v3740_v4  ;;  %4264 = vmatpush.msra.mxu1 %v4239_v9 }
 0x43b   : > { %3957 = vmatmul.f32.gmra.mxu3 %v3900_v57  ;;  %4135 = vmatmul.f32.gmra.mxu0 %v3908_v47 }
 0x43c   : > { %v3324_v45 = vpop.f32.mrf.mxu2 }
 0x43d   : > { %v3386_v56 = vadd.f32 %v3324_v45, %v3200_v44  ;;  %v3203_v36 = vpop.f32.mrf.mxu1 }
 0x43e   : > { %v3484_v12 = vpop.f32.mrf.mxu3 }
 0x43f   : > { %v7338_v43 = vadd.f32 %v3484_v12, %v3386_v56 }
 0x440   : > { %3640 = vmatmul.f32.gmra.mxu1 %v7287_v42 }
 0x441   : > { %3800 = vmatmul.f32.gmra.mxu2 %v3741_v24 }
 0x443   : > { %3960 = vmatmul.f32.gmra.mxu3 %v3901_v38  ;;  %v3744_v38 = vld [vmem:[#allocation5 + $0x52] sm:$0xff]  ;;  %4138 = vmatmul.f32.gmra.mxu0 %v3909_v59 }
 0x444   : > { %v3327_v48 = vpop.f32.mrf.mxu2 }
 0x445   : > { %v3387_v63 = vadd.f32 %v3327_v48, %v3203_v36  ;;  %v3206_v39 = vpop.f32.mrf.mxu1 }
 0x446   : > { %v3487_v42 = vpop.f32.mrf.mxu3 }
 0x447   : > { %v7341_v62 = vadd.f32 %v3487_v42, %v3387_v63 }
 0x448   : > { %3643 = vmatmul.f32.gmra.mxu1 %v7290_v8 }
 0x449   : > { %3803 = vmatmul.f32.gmra.mxu2 %v3742_v34  ;;  %v3748_v34 = vld [vmem:[#allocation5 + $0x72] sm:$0xff] }
 0x44b   : > { %3963 = vmatmul.f32.gmra.mxu3 %v3902_v27  ;;  %v4401_v27 = vld [vmem:[#allocation6 + $0x428] sm:$0xff] }
 0x44c   : > { %v3330_v3 = vpop.f32.mrf.mxu2  ;;  %4422 = vmatpush.msra.mxu2 %v4401_v27  ;;  %v3751_v27 = vld [vmem:[#allocation5 + $0x8a] sm:$0xff] }
 0x44d   : > { %v3388_v60 = vadd.f32 %v3330_v3, %v3206_v39  ;;  %v3209_v57 = vpop.f32.mrf.mxu1 }
 0x44e   : > { %v3490_v8 = vpop.f32.mrf.mxu3 }
 0x44f   : > { %v7344_v16 = vadd.f32 %v3490_v8, %v3388_v60  ;;  %v4397_v8 = vld [vmem:[#allocation6 + $0x408] sm:$0xff] }
 0x450   : > { %3646 = vmatmul.f32.gmra.mxu1 %v7293_v17 }
 0x451   : > { %3806 = vmatmul.f32.gmra.mxu2 %v3743_v55  ;;  %v3749_v55 = vld [vmem:[#allocation5 + $0x7a] sm:$0xff] }
 0x453   : > { %3966 = vmatmul.f32.gmra.mxu3 %v3903_v52  ;;  %v4400_v52 = vld [vmem:[#allocation6 + $0x420] sm:$0xff] }
 0x454   : > { %v3333_v35 = vpop.f32.mrf.mxu2  ;;  %4423 = vmatpush.msra.mxu2 %v4400_v52 }
 0x455   : > { %v3389_v0 = vadd.f32 %v3333_v35, %v3209_v57  ;;  %v3212_v29 = vpop.f32.mrf.mxu1 }
 0x456   : > { %v3493_v17 = vpop.f32.mrf.mxu3  ;;  %4424 = vmatpush.msra.mxu2 %v4399_v18 }
 0x457   : > { %v7347_v32 = vadd.f32 %v3493_v17, %v3389_v0  ;;  %v4396_v17 = vld [vmem:[#allocation6 + $0x400] sm:$0xff] }
 0x458   : > { %3649 = vmatmul.f32.gmra.mxu1 %v7296_v7  ;;  %4425 = vmatpush.msra.mxu2 %v4398_v28 }
 0x459   : > { %3809 = vmatmul.f32.gmra.mxu2 %v3744_v38 }
 0x45a   : > { %4426 = vmatpush.msra.mxu2 %v4397_v8 }
 0x45b   : > { %3969 = vmatmul.f32.gmra.mxu3 %v3904_v41  ;;  %v3910_v41 = vld [vmem:[#allocation5 + $0x83] sm:$0xff] }
 0x45c   : > { %v3336_v11 = vpop.f32.mrf.mxu2  ;;  %4141 = vmatmul.f32.gmra.mxu0 %v3910_v41  ;;  %4427 = vmatpush.msra.mxu2 %v4396_v17  ;;  %v4220_v17 = vld [vmem:[#allocation5 + $0x44] sm:$0xff] }
 0x45d   : > { %v3390_v2 = vadd.f32 %v3336_v11, %v3212_v29  ;;  %v3215_v13 = vpop.f32.mrf.mxu1 }
 0x45e   : > { %v3496_v7 = vpop.f32.mrf.mxu3 }
 0x45f   : > { %v7350_v53 = vadd.f32 %v3496_v7, %v3390_v2 }
 0x460   : > { %3652 = vmatmul.f32.gmra.mxu1 %v7299_v21 }
 0x461   : > { %3812 = vmatmul.f32.gmra.mxu2 %v3745_v23 }
 0x463   : > { %3972 = vmatmul.f32.gmra.mxu3 %v3905_v37  ;;  %v4238_v37 = vld [vmem:[#allocation6 + $0x390] sm:$0xff] }
 0x464   : > { %v3339_v22 = vpop.f32.mrf.mxu2  ;;  %4265 = vmatpush.msra.mxu1 %v4238_v37  ;;  %4144 = vmatmul.f32.gmra.mxu0 %v3911_v6 }
 0x465   : > { %v3391_v44 = vadd.f32 %v3339_v22, %v3215_v13  ;;  %v3218_v4 = vpop.f32.mrf.mxu1 }
 0x466   : > { %v3499_v21 = vpop.f32.mrf.mxu3 }
 0x467   : > { %v7353_v56 = vadd.f32 %v3499_v21, %v3391_v44 }
 0x468   : > { %3655 = vmatmul.f32.gmra.mxu1 %v7302_v33 }
 0x469   : > { %3815 = vmatmul.f32.gmra.mxu2 %v3746_v10  ;;  %v4073_v10 = vld [vmem:[#allocation5 + $0xab] sm:$0xff] }
 0x46b   : > { %3975 = vmatmul.f32.gmra.mxu3 %v3906_v19  ;;  %v4237_v19 = vld [vmem:[#allocation6 + $0x388] sm:$0xff] }
 0x46c   : > { %v3342_v45 = vpop.f32.mrf.mxu2  ;;  %4266 = vmatpush.msra.mxu1 %v4237_v19  ;;  %4147 = vmatmul.f32.gmra.mxu0 %v3912_v31  ;;  %v4218_v19 = vld [vmem:[#allocation5 + $0x34] sm:$0xff] }
 0x46d   : > { %v3392_v36 = vadd.f32 %v3342_v45, %v3218_v4  ;;  %v3221_v24 = vpop.f32.mrf.mxu1  ;;  %v3752_v4 = vld [vmem:[#allocation5 + $0x92] sm:$0xff] }
 0x46e   : > { %v3502_v12 = vpop.f32.mrf.mxu3  ;;  %v3593_v45 = vld [vmem:[#allocation5 + $0x99] sm:$0xff] }
 0x46f   : > { %v7356_v48 = vadd.f32 %v3502_v12, %v3392_v36  ;;  %v3753_v36 = vld [vmem:[#allocation5 + $0x9a] sm:$0xff] }
 0x470   : > { %3658 = vmatmul.f32.gmra.mxu1 %v7305_v26 }
 0x471   : > { %3818 = vmatmul.f32.gmra.mxu2 %v3747_v30 }
 0x473   : > { %3978 = vmatmul.f32.gmra.mxu3 %v3907_v51  ;;  %v4236_v51 = vld [vmem:[#allocation6 + $0x380] sm:$0xff] }
 0x474   : > { %v3345_v33 = vpop.f32.mrf.mxu2  ;;  %4267 = vmatpush.msra.mxu1 %v4236_v51  ;;  %4150 = vmatmul.f32.gmra.mxu0 %v3913_v5 }
 0x475   : > { %v3393_v63 = vadd.f32 %v3345_v33, %v3221_v24  ;;  %v3224_v39 = vpop.f32.mrf.mxu1  ;;  %v4074_v24 = vld [vmem:[#allocation5 + $0xb3] sm:$0xff] }
 0x476   : > { %v3505_v26 = vpop.f32.mrf.mxu3 }
 0x477   : > { %v7359_v3 = vadd.f32 %v3505_v26, %v3393_v63  ;;  %v3594_v63 = vld [vmem:[#allocation5 + $0xa1] sm:$0xff]  ;;  %v4377_v26 = vld [vmem:[#allocation5 + $0x2d] sm:$0xff] }
 0x478   : > { %3661 = vmatmul.f32.gmra.mxu1 %v7308_v46 }
 0x479   : > { %3821 = vmatmul.f32.gmra.mxu2 %v3748_v34 }
 0x47b   : > { %3981 = vmatmul.f32.gmra.mxu3 %v3908_v47  ;;  %v3914_v47 = vld [vmem:[#allocation5 + $0xa3] sm:$0xff] }
 0x47c   : > { %v3348_v42 = vpop.f32.mrf.mxu2  ;;  %4153 = vmatmul.f32.gmra.mxu0 %v3914_v47 }
 0x47d   : > { %v3394_v60 = vadd.f32 %v3348_v42, %v3224_v39  ;;  %v3227_v57 = vpop.f32.mrf.mxu1  ;;  %v3754_v39 = vld [vmem:[#allocation5 + $0xa2] sm:$0xff] }
 0x47e   : > { %v3508_v46 = vpop.f32.mrf.mxu3 }
 0x47f   : > { %v7362_v0 = vadd.f32 %v3508_v46, %v3394_v60 }
 0x480   : > { %3664 = vmatmul.f32.gmra.mxu1 %v7311_v20 }
 0x481   : > { %3824 = vmatmul.f32.gmra.mxu2 %v3749_v55 }
 0x483   : > { %3984 = vmatmul.f32.gmra.mxu3 %v3909_v59 }
 0x484   : > { %v3351_v35 = vpop.f32.mrf.mxu2  ;;  %4156 = vmatmul.f32.gmra.mxu0 %v4073_v10 }
 0x485   : > { %v3395_v29 = vadd.f32 %v3351_v35, %v3227_v57  ;;  %v3230_v38 = vpop.f32.mrf.mxu1 }
 0x486   : > { %v3511_v20 = vpop.f32.mrf.mxu3 }
 0x487   : > { %v7365_v2 = vadd.f32 %v3511_v20, %v3395_v29  ;;  %v4219_v29 = vld [vmem:[#allocation5 + $0x3c] sm:$0xff]  ;;  %v4380_v20 = vld [vmem:[#allocation5 + $0x45] sm:$0xff] }
 0x488   : > { %3667 = vmatmul.f32.gmra.mxu1 %v7314_v15 }
 0x489   : > { %3827 = vmatmul.f32.gmra.mxu2 %v3750_v40 }
 0x48b   : > { %3987 = vmatmul.f32.gmra.mxu3 %v3910_v41 }
 0x48c   : > { %v3354_v11 = vpop.f32.mrf.mxu2  ;;  %4159 = vmatmul.f32.gmra.mxu0 %v4074_v24 }
 0x48d   : > { %v3396_v13 = vadd.f32 %v3354_v11, %v3230_v38  ;;  %v3233_v23 = vpop.f32.mrf.mxu1  ;;  %v4379_v38 = vld [vmem:[#allocation5 + $0x3d] sm:$0xff] }
 0x48e   : > { %v3514_v25 = vpop.f32.mrf.mxu3 }
 0x48f   : > { %v7368_v15 = vadd.f32 %v3514_v25, %v3396_v13 }
 0x490   : > { %3670 = vmatmul.f32.gmra.mxu1 %v7317_v1 }
 0x491   : > { %3830 = vmatmul.f32.gmra.mxu2 %v3751_v27  ;;  %v4221_v27 = vld [vmem:[#allocation5 + $0x4c] sm:$0xff] }
 0x493   : > { %3990 = vmatmul.f32.gmra.mxu3 %v3911_v6 }
 0x494   : > { %v3357_v7 = vpop.f32.mrf.mxu2 }
 0x495   : > { %v3397_v22 = vadd.f32 %v3357_v7, %v3233_v23  ;;  %v3236_v44 = vpop.f32.mrf.mxu1 }
 0x496   : > { %v3517_v52 = vpop.f32.mrf.mxu3 }
 0x497   : > { %v7371_v9 = vadd.f32 %v3517_v52, %v3397_v22 }
 0x498   : > { %3673 = vmatmul.f32.gmra.mxu1 %v7322_v50 }
 0x499   : > { %3833 = vmatmul.f32.gmra.mxu2 %v3752_v4  ;;  %v4382_v4 = vld [vmem:[#allocation5 + $0x55] sm:$0xff] }
 0x49b   : > { %3993 = vmatmul.f32.gmra.mxu3 %v3912_v31  ;;  %v4378_v31 = vld [vmem:[#allocation5 + $0x35] sm:$0xff] }
 0x49c   : > { %v3360_v59 = vpop.f32.mrf.mxu2 }
 0x49d   : > { %v3398_v1 = vadd.f32 %v3360_v59, %v3236_v44  ;;  %v3629_v21 = vpop.f32.mrf.mxu1  ;;  %v4222_v44 = vld [vmem:[#allocation5 + $0x54] sm:$0xff] }
 0x49e   : > { %v3701_v30 = vadd.f32 %v3629_v21, %v7320_v49  ;;  %v3520_v41 = vpop.f32.mrf.mxu3  ;;  %v4217_v49 = vld [vmem:[#allocation5 + $0x2c] sm:$0xff]  ;;  %v4383_v21 = vld [vmem:[#allocation5 + $0x5d] sm:$0xff] }
 0x49f   : > { %v7374_v18 = vadd.f32 %v3520_v41, %v3398_v1  ;;  %v4223_v1 = vld [vmem:[#allocation5 + $0x5c] sm:$0xff]  ;;  %v4384_v41 = vld [vmem:[#allocation5 + $0x65] sm:$0xff] }
 0x4a0   : > { %3676 = vmatmul.f32.gmra.mxu1 %v3593_v45 }
 0x4a1   : > { %3836 = vmatmul.f32.gmra.mxu2 %v3753_v36 }
 0x4a3   : > { %3996 = vmatmul.f32.gmra.mxu3 %v3913_v5 }
 0x4a4   : > { %v3789_v50 = vpop.f32.mrf.mxu2 }
 0x4a5   : > { %v7376_v12 = vadd.f32 %v3789_v50, %v3701_v30  ;;  %v3632_v33 = vpop.f32.mrf.mxu1  ;;  %v4224_v30 = vld [vmem:[#allocation5 + $0x64] sm:$0xff] }
 0x4a6   : > { %v3702_v34 = vadd.f32 %v3632_v33, %v7326_v61 }
 0x4a8   : > { %3679 = vmatmul.f32.gmra.mxu1 %v3594_v63 }
 0x4a9   : > { %3839 = vmatmul.f32.gmra.mxu2 %v3754_v39  ;;  %v4225_v39 = vld [vmem:[#allocation5 + $0x6c] sm:$0xff] }
 0x4ab   : > { %3999 = vmatmul.f32.gmra.mxu3 %v3914_v47  ;;  %v4381_v47 = vld [vmem:[#allocation5 + $0x4d] sm:$0xff] }
 0x4ac   : > { %v3792_v37 = vpop.f32.mrf.mxu2 }
 0x4ad   : > { %v7379_v6 = vadd.f32 %v3792_v37, %v3702_v34  ;;  %v3635_v28 = vpop.f32.mrf.mxu1  ;;  %v4385_v34 = vld [vmem:[#allocation5 + $0x6d] sm:$0xff] }
 0x4ae   : > { %v3703_v42 = vadd.f32 %v3635_v28, %v7329_v54 }
 0x4b0   : > { %4268 = vmatmul.f32.vlgmr.msra.gmra.mxu1 %v4217_v49 }
 0x4b1   : > { %4428 = vmatmul.f32.vlgmr.msra.gmra.mxu2 %v4377_v26  ;;  %v4226_v26 = vld [vmem:[#allocation5 + $0x74] sm:$0xff] }
 0x4b4   : > { %v3795_v60 = vpop.f32.mrf.mxu2 }
 0x4b5   : > { %v7382_v57 = vadd.f32 %v3795_v60, %v3703_v42  ;;  %v3638_v55 = vpop.f32.mrf.mxu1  ;;  %v4386_v42 = vld [vmem:[#allocation5 + $0x75] sm:$0xff] }
 0x4b6   : > { %v3704_v61 = vadd.f32 %v3638_v55, %v7332_v58 }
 0x4b8   : > { %4271 = vmatmul.f32.gmra.mxu1 %v4218_v19 }
 0x4b9   : > { %4431 = vmatmul.f32.gmra.mxu2 %v4378_v31  ;;  %v4227_v31 = vld [vmem:[#allocation5 + $0x7c] sm:$0xff] }
 0x4bc   : > { %v3798_v8 = vpop.f32.mrf.mxu2 }
 0x4bd   : > { %v7385_v46 = vadd.f32 %v3798_v8, %v3704_v61  ;;  %v3641_v35 = vpop.f32.mrf.mxu1  ;;  %v4387_v61 = vld [vmem:[#allocation5 + $0x7d] sm:$0xff] }
 0x4be   : > { %v3705_v54 = vadd.f32 %v3641_v35, %v7335_v14 }
 0x4c0   : > { %4274 = vmatmul.f32.gmra.mxu1 %v4219_v29 }
 0x4c1   : > { %4434 = vmatmul.f32.gmra.mxu2 %v4379_v38  ;;  %v4228_v38 = vld [vmem:[#allocation5 + $0x84] sm:$0xff] }
 0x4c4   : > { %v3801_v40 = vpop.f32.mrf.mxu2 }
 0x4c5   : > { %v7388_v51 = vadd.f32 %v3801_v40, %v3705_v54  ;;  %v3644_v5 = vpop.f32.mrf.mxu1  ;;  %v4388_v54 = vld [vmem:[#allocation5 + $0x85] sm:$0xff] }
 0x4c6   : > { %v3706_v58 = vadd.f32 %v3644_v5, %v7338_v43  ;;  %v3949_v5 = vpop.f32.mrf.mxu3 }
 0x4c8   : > { %4277 = vmatmul.f32.gmra.mxu1 %v4220_v17 }
 0x4c9   : > { %4437 = vmatmul.f32.gmra.mxu2 %v4380_v20 }
 0x4cc   : > { %v3804_v11 = vpop.f32.mrf.mxu2 }
 0x4cd   : > { %v7391_v13 = vadd.f32 %v3804_v11, %v3706_v58  ;;  %v3647_v23 = vpop.f32.mrf.mxu1  ;;  %v4229_v11 = vld [vmem:[#allocation5 + $0x8c] sm:$0xff] }
 0x4ce   : > { %v3707_v14 = vadd.f32 %v3647_v23, %v7341_v62 }
 0x4d0   : > { %4280 = vmatmul.f32.gmra.mxu1 %v4221_v27  ;;  %v3952_v27 = vpop.f32.mrf.mxu3 }
 0x4d1   : > { %4440 = vmatmul.f32.gmra.mxu2 %v4381_v47 }
 0x4d4   : > { %v3807_v25 = vpop.f32.mrf.mxu2 }
 0x4d5   : > { %v7394_v7 = vadd.f32 %v3807_v25, %v3707_v14  ;;  %v3650_v22 = vpop.f32.mrf.mxu1 }
 0x4d6   : > { %v3708_v43 = vadd.f32 %v3650_v22, %v7344_v16  ;;  %v4230_v22 = vld [vmem:[#allocation5 + $0x94] sm:$0xff] }
 0x4d8   : > { %4283 = vmatmul.f32.gmra.mxu1 %v4222_v44  ;;  %v4390_v44 = vld [vmem:[#allocation5 + $0x95] sm:$0xff] }
 0x4d9   : > { %4443 = vmatmul.f32.gmra.mxu2 %v4382_v4 }
 0x4dc   : > { %v3810_v10 = vpop.f32.mrf.mxu2 }
 0x4dd   : > { %v7397_v52 = vadd.f32 %v3810_v10, %v3708_v43  ;;  %v3653_v59 = vpop.f32.mrf.mxu1  ;;  %v3955_v43 = vpop.f32.mrf.mxu3 }
 0x4de   : > { %v3709_v62 = vadd.f32 %v3653_v59, %v7347_v32 }
 0x4e0   : > { %4286 = vmatmul.f32.gmra.mxu1 %v4223_v1 }
 0x4e1   : > { %4446 = vmatmul.f32.gmra.mxu2 %v4383_v21  ;;  %v4391_v21 = vld [vmem:[#allocation5 + $0x9d] sm:$0xff] }
 0x4e4   : > { %v3813_v45 = vpop.f32.mrf.mxu2 }
 0x4e5   : > { %v7400_v36 = vadd.f32 %v3813_v45, %v3709_v62  ;;  %v3656_v24 = vpop.f32.mrf.mxu1 }
 0x4e6   : > { %v3710_v16 = vadd.f32 %v3656_v24, %v7350_v53 }
 0x4e8   : > { %4289 = vmatmul.f32.gmra.mxu1 %v4224_v30 }
 0x4e9   : > { %4449 = vmatmul.f32.gmra.mxu2 %v4384_v41  ;;  %v3958_v41 = vpop.f32.mrf.mxu3 }
 0x4ec   : > { %v3816_v50 = vpop.f32.mrf.mxu2 }
 0x4ed   : > { %v7403_v33 = vadd.f32 %v3816_v50, %v3710_v16  ;;  %v3659_v63 = vpop.f32.mrf.mxu1  ;;  %v4392_v50 = vld [vmem:[#allocation5 + $0xa5] sm:$0xff] }
 0x4ee   : > { %v3711_v32 = vadd.f32 %v3659_v63, %v7353_v56 }
 0x4f0   : > { %4292 = vmatmul.f32.gmra.mxu1 %v4225_v39 }
 0x4f1   : > { %4452 = vmatmul.f32.gmra.mxu2 %v4385_v34 }
 0x4f4   : > { %v3819_v37 = vpop.f32.mrf.mxu2 }
 0x4f5   : > { %v7406_v28 = vadd.f32 %v3819_v37, %v3711_v32  ;;  %v3662_v49 = vpop.f32.mrf.mxu1  ;;  %v4021_v32 = vadd.f32 %v3949_v5, %v7376_v12  ;;  %v4022_v12 = vadd.f32 %v3952_v27, %v7379_v6  ;;  %v4023_v6 = vadd.f32 %v3955_v43, %v7382_v57 }
 0x4f6   : > { %v3712_v53 = vadd.f32 %v3662_v49, %v7356_v48  ;;  %v4109_v48 = vpop.f32.mrf.mxu0  ;;  %v4233_v49 = vld [vmem:[#allocation5 + $0xac] sm:$0xff] }
 0x4f8   : > { %4295 = vmatmul.f32.gmra.mxu1 %v4226_v26  ;;  %v4393_v26 = vld [vmem:[#allocation5 + $0xad] sm:$0xff] }
 0x4f9   : > { %4455 = vmatmul.f32.gmra.mxu2 %v4386_v42  ;;  %v3961_v42 = vpop.f32.mrf.mxu3 }
 0x4fc   : > { %v3822_v60 = vpop.f32.mrf.mxu2 }
 0x4fd   : > { %v7409_v55 = vadd.f32 %v3822_v60, %v3712_v53  ;;  %v3665_v19 = vpop.f32.mrf.mxu1  ;;  %v4181_v53 = vadd.f32 %v4109_v48, %v4021_v32 }
 0x4fe   : > { %v3713_v8 = vadd.f32 %v3665_v19, %v7359_v3  ;;  %v4389_v3 = vld [vmem:[#allocation5 + $0x8d] sm:$0xff]  ;;  %v4112_v25 = vpop.f32.mrf.mxu0 }
 0x500   : > { %4298 = vmatmul.f32.gmra.mxu1 %v4227_v31 }
 0x501   : > { %4458 = vmatmul.f32.gmra.mxu2 %v4387_v61  ;;  %v3964_v48 = vpop.f32.mrf.mxu3 }
 0x504   : > { %v3825_v56 = vpop.f32.mrf.mxu2 }
 0x505   : > { %v7412_v35 = vadd.f32 %v3825_v56, %v3713_v8  ;;  %v3668_v29 = vpop.f32.mrf.mxu1  ;;  %v4537_v56 = vld [vmem:[%s5420_s10 + $0x25] sm:$0xff] }
 0x506   : > { %v3714_v40 = vadd.f32 %v3668_v29, %v7362_v0  ;;  %v4115_v45 = vpop.f32.mrf.mxu0  ;;  %v4234_v29 = vld [vmem:[#allocation5 + $0xb4] sm:$0xff] }
 0x508   : > { %4301 = vmatmul.f32.gmra.mxu1 %v4228_v38  ;;  %v4394_v38 = vld [vmem:[#allocation5 + $0xb5] sm:$0xff] }
 0x509   : > { %4461 = vmatmul.f32.gmra.mxu2 %v4388_v54 }
 0x50c   : > { %v3828_v17 = vpop.f32.mrf.mxu2 }
 0x50d   : > { %v7415_v20 = vadd.f32 %v3828_v17, %v3714_v40  ;;  %v3671_v58 = vpop.f32.mrf.mxu1  ;;  %v4182_v40 = vadd.f32 %v4112_v25, %v4022_v12  ;;  %v4183_v25 = vadd.f32 %v4115_v45, %v4023_v6 }
 0x50e   : > { %v3715_v23 = vadd.f32 %v3671_v58, %v7365_v2  ;;  %v4231_v2 = vld [vmem:[#allocation5 + $0x9c] sm:$0xff]  ;;  %v4118_v39 = vpop.f32.mrf.mxu0 }
 0x510   : > { %4304 = vmatmul.f32.gmra.mxu1 %v4229_v11 }
 0x511   : > { %4464 = vmatmul.f32.gmra.mxu2 %v4389_v3 }
 0x514   : > { %v3831_v47 = vpop.f32.mrf.mxu2 }
 0x515   : > { %v7418_v14 = vadd.f32 %v3831_v47, %v3715_v23  ;;  %v3674_v0 = vpop.f32.mrf.mxu1  ;;  %v4538_v47 = vld [vmem:[%s5420_s10 + $0x2d] sm:$0xff] }
 0x516   : > { %v3716_v4 = vadd.f32 %v3674_v0, %v7368_v15  ;;  %v4232_v15 = vld [vmem:[#allocation5 + $0xa4] sm:$0xff]  ;;  %v4121_v19 = vpop.f32.mrf.mxu0 }
 0x518   : > { %4307 = vmatmul.f32.gmra.mxu1 %v4230_v22 }
 0x519   : > { %4467 = vmatmul.f32.gmra.mxu2 %v4390_v44 }
 0x51c   : > { %v3834_v10 = vpop.f32.mrf.mxu2 }
 0x51d   : > { %v7421_v59 = vadd.f32 %v3834_v10, %v3716_v4  ;;  %v3677_v1 = vpop.f32.mrf.mxu1  ;;  %v3967_v10 = vpop.f32.mrf.mxu3 }
 0x51e   : > { %v3717_v62 = vadd.f32 %v3677_v1, %v7371_v9  ;;  %v4124_v23 = vpop.f32.mrf.mxu0 }
 0x520   : > { %4310 = vmatmul.f32.gmra.mxu1 %v4231_v2  ;;  %v4024_v2 = vadd.f32 %v3958_v41, %v7385_v46 }
 0x521   : > { %4470 = vmatmul.f32.gmra.mxu2 %v4391_v21  ;;  %v4539_v21 = vld [vmem:[%s5420_s10 + $0x35] sm:$0xff] }
 0x524   : > { %v3837_v24 = vpop.f32.mrf.mxu2 }
 0x525   : > { %v7424_v30 = vadd.f32 %v3837_v24, %v3717_v62  ;;  %v3680_v16 = vpop.f32.mrf.mxu1  ;;  %v3970_v46 = vpop.f32.mrf.mxu3 }
 0x526   : > { %v3718_v63 = vadd.f32 %v3680_v16, %v7374_v18  ;;  %v7433_v18 = vld [vmem:[%s7556_s4] ss:$0 sm:$0xff]  ;;  %v4127_v24 = vpop.f32.mrf.mxu0  ;;  %v4184_v16 = vadd.f32 %v4118_v39, %v4024_v2 }
 0x528   : > { %4313 = vmatmul.f32.gmra.mxu1 %v4232_v15 }
 0x529   : > { %4473 = vmatmul.f32.gmra.mxu2 %v4392_v50 }
 0x52c   : > { %v3840_v34 = vpop.f32.mrf.mxu2 }
 0x52d   : > { %v7428_v9 = vadd.f32 %v3840_v34, %v3718_v63  ;;  %v4269_v37 = vpop.f32.mrf.mxu1  ;;  %v4025_v34 = vadd.f32 %v3961_v42, %v7388_v51 }
 0x52e   : > { %v4341_v60 = vadd.f32 %v4269_v37, %v4181_v53  ;;  %v4540_v37 = vld [vmem:[%s5420_s10 + $0x3d] sm:$0xff] }
 0x530   : > { %4316 = vmatmul.f32.gmra.mxu1 %v4233_v49 }
 0x531   : > { %4476 = vmatmul.f32.gmra.mxu2 %v4393_v26  ;;  %v4185_v26 = vadd.f32 %v4121_v19, %v4025_v34 }
 0x534   : > { %v4429_v31 = vpop.f32.mrf.mxu2 }
 0x535   : > { %v4501_v61 = vadd.f32 %v4429_v31, %v4341_v60  ;;  %v4272_v8 = vpop.f32.mrf.mxu1  ;;  %v4130_v60 = vpop.f32.mrf.mxu0 }
 0x536   : > { %v4342_v17 = vadd.f32 %v4272_v8, %v4182_v40  ;;  %v4541_v8 = vld [vmem:[%s5420_s10 + $0x45] sm:$0xff] }
 0x537   : > { %4519 = vst [vmem:[#allocation4 + $0xb0] sm:$0xff] %v4501_v61  ;;  %v4577_v54 = vadd.f32 %v7433_v18, %v4501_v61  ;;  %v4026_v61 = vadd.f32 %v3964_v48, %v7391_v13 }
 0x538   : > { %4319 = vmatmul.f32.gmra.mxu1 %v4234_v29  ;;  %v3973_v29 = vpop.f32.mrf.mxu3 }
 0x539   : > { %v4595_v5 = vadd.f32 %v4577_v54, %v4537_v56  ;;  %4479 = vmatmul.f32.gmra.mxu2 %v4394_v38  ;;  %v4186_v38 = vadd.f32 %v4124_v23, %v4026_v61 }
 0x53b   : > { %v4613_v58 = vmax.f32 %v4595_v5, 0.0 }
 0x53c   : > { %v4432_v11 = vpop.f32.mrf.mxu2 }
 0x53d   : > { %4631 = vst [vmem:[%s5378_s12] sm:$0xff] %v4613_v58  ;;  %v4502_v3 = vadd.f32 %v4432_v11, %v4342_v17  ;;  %v4275_v27 = vpop.f32.mrf.mxu1  ;;  %v4133_v5 = vpop.f32.mrf.mxu0  ;;  %v4027_v58 = vadd.f32 %v3967_v10, %v7394_v7  ;;  %v4542_v11 = vld [vmem:[%s5420_s10 + $0x4d] sm:$0xff]  ;;  %v4543_v10 = vld [vmem:[%s5420_s10 + $0x55] sm:$0xff] }
 0x53e   : > { %v4343_v44 = vadd.f32 %v4275_v27, %v4183_v25 }
 0x53f   : > { %4520 = vst [vmem:[#allocation4] sm:$0xff] %v4502_v3  ;;  %v4578_v0 = vadd.f32 %v7433_v18, %v4502_v3  ;;  %v4187_v3 = vadd.f32 %v4127_v24, %v4027_v58 }
 0x541   : > { %v4596_v22 = vadd.f32 %v4578_v0, %v4538_v47  ;;  %v3976_v47 = vpop.f32.mrf.mxu3 }
 0x543   : > { %v4614_v4 = vmax.f32 %v4596_v22, 0.0  ;;  %v4028_v22 = vadd.f32 %v3970_v46, %v7397_v52 }
 0x544   : > { %v4435_v1 = vpop.f32.mrf.mxu2 }
 0x545   : > { %4632 = vst [vmem:[%s5378_s12 + $0x8] sm:$0xff] %v4614_v4  ;;  %v4503_v57 = vadd.f32 %v4435_v1, %v4343_v44  ;;  %v4278_v43 = vpop.f32.mrf.mxu1  ;;  %v4136_v7 = vpop.f32.mrf.mxu0  ;;  %v4188_v2 = vadd.f32 %v4130_v60, %v4028_v22  ;;  %v4545_v60 = vld [vmem:[%s5420_s10 + $0x65] sm:$0xff] }
 0x546   : > { %v4344_v45 = vadd.f32 %v4278_v43, %v4184_v16  ;;  %v4029_v16 = vadd.f32 %v3973_v29, %v7400_v36 }
 0x547   : > { %4521 = vst [vmem:[#allocation4 + $0x10] sm:$0xff] %v4503_v57  ;;  %v4579_v62 = vadd.f32 %v7433_v18, %v4503_v57 }
 0x548   : > { %v4189_v34 = vadd.f32 %v4133_v5, %v4029_v16 }
 0x549   : > { %v4597_v15 = vadd.f32 %v4579_v62, %v4539_v21  ;;  %v3979_v62 = vpop.f32.mrf.mxu3 }
 0x54b   : > { %v4615_v50 = vmax.f32 %v4597_v15, 0.0 }
 0x54c   : > { %v4438_v63 = vpop.f32.mrf.mxu2 }
 0x54d   : > { %4633 = vst [vmem:[%s5378_s12 + $0x10] sm:$0xff] %v4615_v50  ;;  %v4504_v32 = vadd.f32 %v4438_v63, %v4344_v45  ;;  %v4281_v41 = vpop.f32.mrf.mxu1  ;;  %v4544_v45 = vld [vmem:[%s5420_s10 + $0x5d] sm:$0xff]  ;;  %v4139_v63 = vpop.f32.mrf.mxu0 }
 0x54e   : > { %v4345_v39 = vadd.f32 %v4281_v41, %v4185_v26 }
 0x54f   : > { %4522 = vst [vmem:[#allocation4 + $0x48] sm:$0xff] %v4504_v32  ;;  %v4580_v49 = vadd.f32 %v7433_v18, %v4504_v32 }
 0x551   : > { %v4598_v53 = vadd.f32 %v4580_v49, %v4540_v37  ;;  %v4030_v49 = vadd.f32 %v3976_v47, %v7403_v33  ;;  %v3982_v36 = vpop.f32.mrf.mxu3 }
 0x553   : > { %v4616_v31 = vmax.f32 %v4598_v53, 0.0 }
 0x554   : > { %v4441_v12 = vpop.f32.mrf.mxu2 }
 0x555   : > { %4634 = vst [vmem:[%s5378_s12 + $0x18] sm:$0xff] %v4616_v31  ;;  %v4505_v51 = vadd.f32 %v4441_v12, %v4345_v39  ;;  %v4284_v42 = vpop.f32.mrf.mxu1  ;;  %v4190_v31 = vadd.f32 %v4136_v7, %v4030_v49  ;;  %v4142_v61 = vpop.f32.mrf.mxu0 }
 0x556   : > { %v4346_v40 = vadd.f32 %v4284_v42, %v4186_v38  ;;  %v4546_v38 = vld [vmem:[%s5420_s10 + $0x6d] sm:$0xff] }
 0x557   : > { %v4581_v56 = vadd.f32 %v7433_v18, %v4505_v51 }
 0x559   : > { %v4599_v54 = vadd.f32 %v4581_v56, %v4541_v8  ;;  %v4031_v56 = vadd.f32 %v3979_v62, %v7406_v28 }
 0x55b   : > { %v4617_v19 = vmax.f32 %v4599_v54, 0.0 }
 0x55c   : > { %v4444_v17 = vpop.f32.mrf.mxu2 }
 0x55d   : > { %4635 = vst [vmem:[%s5378_s12 + $0x20] sm:$0xff] %v4617_v19  ;;  %v4506_v13 = vadd.f32 %v4444_v17, %v4346_v40  ;;  %v4287_v48 = vpop.f32.mrf.mxu1  ;;  %v3985_v40 = vpop.f32.mrf.mxu3  ;;  %v4191_v19 = vadd.f32 %v4139_v63, %v4031_v56 }
 0x55e   : > { %v4347_v0 = vadd.f32 %v4287_v48, %v4187_v3  ;;  %v4547_v3 = vld [vmem:[%s5420_s10 + $0x75] sm:$0xff]  ;;  %v4033_v7 = vadd.f32 %v3985_v40, %v7412_v35 }
 0x55f   : > { %v4582_v6 = vadd.f32 %v7433_v18, %v4506_v13  ;;  %v4145_v13 = vpop.f32.mrf.mxu0 }
 0x561   : > { %v4600_v27 = vadd.f32 %v4582_v6, %v4542_v11  ;;  %v4032_v11 = vadd.f32 %v3982_v36, %v7409_v55 }
 0x563   : > { %v4618_v23 = vmax.f32 %v4600_v27, 0.0  ;;  %v4192_v47 = vadd.f32 %v4142_v61, %v4032_v11  ;;  %v4552_v11 = vld [vmem:[%s5420_s10 + $0x9d] sm:$0xff] }
 0x564   : > { %v4447_v25 = vpop.f32.mrf.mxu2 }
 0x565   : > { %4636 = vst [vmem:[%s5378_s12 + $0x28] sm:$0xff] %v4618_v23  ;;  %v4507_v44 = vadd.f32 %v4447_v25, %v4347_v0  ;;  %v4290_v4 = vpop.f32.mrf.mxu1  ;;  %v3988_v23 = vpop.f32.mrf.mxu3 }
 0x566   : > { %v4348_v43 = vadd.f32 %v4290_v4, %v4188_v2 }
 0x567   : > { %v4583_v1 = vadd.f32 %v7433_v18, %v4507_v44  ;;  %v4148_v55 = vpop.f32.mrf.mxu0 }
 0x569   : > { %v4601_v57 = vadd.f32 %v4583_v1, %v4543_v10  ;;  %v4548_v1 = vld [vmem:[%s5420_s10 + $0x7d] sm:$0xff] }
 0x56b   : > { %v4619_v21 = vmax.f32 %v4601_v57, 0.0  ;;  %v4193_v57 = vadd.f32 %v4145_v13, %v4033_v7 }
 0x56c   : > { %v4450_v24 = vpop.f32.mrf.mxu2 }
 0x56d   : > { %4637 = vst [vmem:[%s5378_s12 + $0x30] sm:$0xff] %v4619_v21  ;;  %v4508_v52 = vadd.f32 %v4450_v24, %v4348_v43  ;;  %v4293_v15 = vpop.f32.mrf.mxu1  ;;  %v3991_v24 = vpop.f32.mrf.mxu3 }
 0x56e   : > { %v4349_v46 = vadd.f32 %v4293_v15, %v4189_v34  ;;  %v4035_v49 = vadd.f32 %v3991_v24, %v7418_v14 }
 0x56f   : > { %v4584_v50 = vadd.f32 %v7433_v18, %v4508_v52  ;;  %v4034_v52 = vadd.f32 %v3988_v23, %v7415_v20  ;;  %v4151_v63 = vpop.f32.mrf.mxu0 }
 0x571   : > { %v4602_v32 = vadd.f32 %v4584_v50, %v4544_v45  ;;  %v4549_v45 = vld [vmem:[%s5420_s10 + $0x85] sm:$0xff]  ;;  %v4194_v34 = vadd.f32 %v4148_v55, %v4034_v52 }
 0x573   : > { %v4620_v41 = vmax.f32 %v4602_v32, 0.0 }
 0x574   : > { %v4453_v37 = vpop.f32.mrf.mxu2 }
 0x575   : > { %4638 = vst [vmem:[%s5378_s12 + $0x38] sm:$0xff] %v4620_v41  ;;  %v4509_v26 = vadd.f32 %v4453_v37, %v4349_v46  ;;  %v4296_v53 = vpop.f32.mrf.mxu1  ;;  %v3994_v20 = vpop.f32.mrf.mxu3 }
 0x576   : > { %v4350_v51 = vadd.f32 %v4296_v53, %v4190_v31  ;;  %v4550_v53 = vld [vmem:[%s5420_s10 + $0x8d] sm:$0xff] }
 0x577   : > { %v4585_v39 = vadd.f32 %v7433_v18, %v4509_v26 }
 0x579   : > { %v4603_v12 = vadd.f32 %v4585_v39, %v4545_v60  ;;  %v4195_v39 = vadd.f32 %v4151_v63, %v4035_v49 }
 0x57b   : > { %v4621_v42 = vmax.f32 %v4603_v12, 0.0  ;;  %v4154_v12 = vpop.f32.mrf.mxu0 }
 0x57c   : > { %v4456_v8 = vpop.f32.mrf.mxu2 }
 0x57d   : > { %4639 = vst [vmem:[%s5378_s12 + $0x40] sm:$0xff] %v4621_v42  ;;  %v4510_v29 = vadd.f32 %v4456_v8, %v4350_v51  ;;  %v4299_v33 = vpop.f32.mrf.mxu1  ;;  %v4036_v8 = vadd.f32 %v3994_v20, %v7421_v59 }
 0x57e   : > { %v4351_v17 = vadd.f32 %v4299_v33, %v4191_v19 }
 0x57f   : > { %4528 = vst [vmem:[#allocation4 + $0x90] sm:$0xff] %v4510_v29  ;;  %v4586_v54 = vadd.f32 %v7433_v18, %v4510_v29  ;;  %v4551_v29 = vld [vmem:[%s5420_s10 + $0x95] sm:$0xff] }
 0x581   : > { %v4604_v5 = vadd.f32 %v4586_v54, %v4546_v38  ;;  %v3997_v38 = vpop.f32.mrf.mxu3  ;;  %v4196_v54 = vadd.f32 %v4154_v12, %v4036_v8 }
 0x582   : > { %v4037_v13 = vadd.f32 %v3997_v38, %v7424_v30 }
 0x583   : > { %v4622_v58 = vmax.f32 %v4604_v5, 0.0 }
 0x584   : > { %v4459_v48 = vpop.f32.mrf.mxu2 }
 0x585   : > { %4640 = vst [vmem:[%s5378_s12 + $0x48] sm:$0xff] %v4622_v58  ;;  %v4511_v28 = vadd.f32 %v4459_v48, %v4351_v17  ;;  %v4302_v6 = vpop.f32.mrf.mxu1  ;;  %v4157_v17 = vpop.f32.mrf.mxu0 }
 0x586   : > { %v4352_v25 = vadd.f32 %v4302_v6, %v4192_v47  ;;  %v4197_v6 = vadd.f32 %v4157_v17, %v4037_v13 }
 0x587   : > { %4529 = vst [vmem:[#allocation4 + $0x18] sm:$0xff] %v4511_v28  ;;  %v4587_v27 = vadd.f32 %v7433_v18, %v4511_v28 }
 0x589   : > { %v4605_v0 = vadd.f32 %v4587_v27, %v4547_v3  ;;  %v4000_v27 = vpop.f32.mrf.mxu3 }
 0x58a   : > { %v4038_v30 = vadd.f32 %v4000_v27, %v7428_v9 }
 0x58b   : > { %v4623_v22 = vmax.f32 %v4605_v0, 0.0 }
 0x58c   : > { %v4462_v44 = vpop.f32.mrf.mxu2 }
 0x58d   : > { %4641 = vst [vmem:[%s5378_s12 + $0x50] sm:$0xff] %v4623_v22  ;;  %v4512_v4 = vadd.f32 %v4462_v44, %v4352_v25  ;;  %v4305_v10 = vpop.f32.mrf.mxu1  ;;  %v4160_v22 = vpop.f32.mrf.mxu0  ;;  %v4553_v44 = vld [vmem:[%s5420_s10 + $0xa5] sm:$0xff] }
 0x58e   : > { %v4353_v21 = vadd.f32 %v4305_v10, %v4193_v57  ;;  %v4198_v55 = vadd.f32 %v4160_v22, %v4038_v30 }
 0x58f   : > { %4530 = vst [vmem:[#allocation4 + $0x98] sm:$0xff] %v4512_v4  ;;  %v4588_v2 = vadd.f32 %v7433_v18, %v4512_v4 }
 0x591   : > { %v4606_v43 = vadd.f32 %v4588_v2, %v4548_v1 }
 0x593   : > { %v4624_v62 = vmax.f32 %v4606_v43, 0.0  ;;  %v4554_v43 = vld [vmem:[%s5420_s10 + $0xad] sm:$0xff] }
 0x594   : > { %v4465_v16 = vpop.f32.mrf.mxu2 }
 0x595   : > { %4642 = vst [vmem:[%s5378_s12 + $0x58] sm:$0xff] %v4624_v62  ;;  %v4513_v35 = vadd.f32 %v4465_v16, %v4353_v21  ;;  %v4308_v15 = vpop.f32.mrf.mxu1 }
 0x596   : > { %v4354_v46 = vadd.f32 %v4308_v15, %v4194_v34 }
 0x597   : > { %4531 = vst [vmem:[#allocation4 + $0x38] sm:$0xff] %v4513_v35  ;;  %v4589_v50 = vadd.f32 %v7433_v18, %v4513_v35 }
 0x599   : > { %v4607_v32 = vadd.f32 %v4589_v50, %v4549_v45 }
 0x59b   : > { %v4625_v41 = vmax.f32 %v4607_v32, 0.0 }
 0x59c   : > { %v4468_v37 = vpop.f32.mrf.mxu2 }
 0x59d   : > { %4643 = vst [vmem:[%s5378_s12 + $0x60] sm:$0xff] %v4625_v41  ;;  %v4514_v26 = vadd.f32 %v4468_v37, %v4354_v46  ;;  %v4311_v36 = vpop.f32.mrf.mxu1 }
 0x59e   : > { %v4355_v61 = vadd.f32 %v4311_v36, %v4195_v39 }
 0x59f   : > { %4532 = vst [vmem:[#allocation4 + $0x50] sm:$0xff] %v4514_v26  ;;  %v4590_v60 = vadd.f32 %v7433_v18, %v4514_v26 }
 0x5a1   : > { %v4608_v31 = vadd.f32 %v4590_v60, %v4550_v53 }
 0x5a3   : > { %v4626_v51 = vmax.f32 %v4608_v31, 0.0 }
 0x5a4   : > { %v4471_v42 = vpop.f32.mrf.mxu2 }
 0x5a5   : > { %4644 = vst [vmem:[%s5378_s12 + $0x68] sm:$0xff] %v4626_v51  ;;  %v4515_v14 = vadd.f32 %v4471_v42, %v4355_v61  ;;  %v4314_v56 = vpop.f32.mrf.mxu1 }
 0x5a6   : > { %v4356_v19 = vadd.f32 %v4314_v56, %v4196_v54 }
 0x5a7   : > { %4533 = vst [vmem:[#allocation4 + $0x70] sm:$0xff] %v4515_v14  ;;  %v4591_v33 = vadd.f32 %v7433_v18, %v4515_v14 }
 0x5a9   : > { %v4609_v40 = vadd.f32 %v4591_v33, %v4551_v29 }
 0x5ab   : > { %v4627_v5 = vmax.f32 %v4609_v40, 0.0 }
 0x5ac   : > { %v4474_v58 = vpop.f32.mrf.mxu2 }
 0x5ad   : > { %4645 = vst [vmem:[%s5378_s12 + $0x70] sm:$0xff] %v4627_v5  ;;  %v4516_v59 = vadd.f32 %v4474_v58, %v4356_v19  ;;  %v4317_v48 = vpop.f32.mrf.mxu1 }
 0x5ae   : > { %v4357_v47 = vadd.f32 %v4317_v48, %v4197_v6 }
 0x5af   : > { %4534 = vst [vmem:[#allocation4 + $0xa0] sm:$0xff] %v4516_v59  ;;  %v4592_v28 = vadd.f32 %v7433_v18, %v4516_v59 }
 0x5b1   : > { %v4610_v3 = vadd.f32 %v4592_v28, %v4552_v11 }
 0x5b3   : > { %v4628_v0 = vmax.f32 %v4610_v3, 0.0 }
 0x5b4   : > { %v4477_v23 = vpop.f32.mrf.mxu2 }
 0x5b5   : > { %4646 = vst [vmem:[%s5378_s12 + $0x78] sm:$0xff] %v4628_v0  ;;  %v4517_v25 = vadd.f32 %v4477_v23, %v4357_v47  ;;  %v4320_v4 = vpop.f32.mrf.mxu1 }
 0x5b6   : > { %v4358_v1 = vadd.f32 %v4320_v4, %v4198_v55 }
 0x5b7   : > { %4535 = vst [vmem:[#allocation4 + $0xa8] sm:$0xff] %v4517_v25  ;;  %v4593_v7 = vadd.f32 %v7433_v18, %v4517_v25 }
 0x5b9   : > { %v4611_v10 = vadd.f32 %v4593_v7, %v4553_v44 }
 0x5bb   : > { %v4629_v2 = vmax.f32 %v4611_v10, 0.0 }
 0x5bc   : > { %v4480_v57 = vpop.f32.mrf.mxu2 }
 0x5bd   : > { %4647 = vst [vmem:[%s5378_s12 + $0x80] sm:$0xff] %v4629_v2  ;;  %v4518_v9 = vadd.f32 %v4480_v57, %v4358_v1 }
 0x5bf   : > { %4536 = vst [vmem:[#allocation4 + $0x68] sm:$0xff] %v4518_v9  ;;  %v4594_v21 = vadd.f32 %v7433_v18, %v4518_v9 }
 0x5c1   : > { %v4612_v62 = vadd.f32 %v4594_v21, %v4554_v43 }
 0x5c3   : > { %v4630_v24 = vmax.f32 %v4612_v62, 0.0 }
 0x5c5   : > { %4648 = vst [vmem:[%s5378_s12 + $0x88] sm:$0xff] %v4630_v24 }
 0x5c6   : > { %5164 = shalt.err (!%p5161_p0)
}
 0x5c7   : > { %s5246_s12 = smov 128   ;;  %s5247_s22 = smov 8  }
 0x5c8   : > { %5018 = dma.vmem_to_hbm [thread:$0]  (%p5330_p3), %s4665_s27, 2304, %s4667_s6, %s4650_s9, %s5246_s12, %s5246_s12, %s5247_s22  }
 0x5c9 PF: > { %p5030_p1 = scmp.ge.s32.totalorder %s5237_s25, 2  ;;  %s4681_s14 = sand.u32 1, %s5209_s18  }
 0x5ca   : > { %s4682_s17 = scalar_lea.sflag [#allocation8], %s4681_s14 }
 0x5cb   : > { %p5025_p2 = pnand %p5030_p1, %p5339_p8 }
 0x5cd   : > { %p5026_p4 = pneg %p5025_p2 }
 0x5cf   : > { %5204 = dma.done.wait (%p5026_p4), %s4682_s17, 2304  }
 0x5d0   : > { %5206 = vsyncadd (%p5026_p4), %s4682_s17, 4294964992  ;;  %s19_s25 = sadd.s32 1, %s5237_s25   ;;  %s7644_s18 = smov %s5213_s19 }
 0x5d1   : > { %p16_p5 = scmp.ge.s32.totalorder %s19_s25, 6   ;;  %s7645_s19 = smov %s5217_s20 }
 0x5d2   : > { %s7646_s20 = smov %s5360_s16  ;;  %s7647_s21 = smov %s5229_s23 }
 0x5d3   : > { %s7648_s22 = smov %s5233_s24  ;;  %s7649_s23 = smov %s7652_s28 }
 0x5d4   : > { %s7650_s24 = smov %s7656_s29  ;;  %18 = sbr.rel (!%p16_p5) target bundleno = 8 (0x8), region = 176 }
 0x5d9   :  { %4688 = vsyncpa [#allocation7], 1 }
 0x5da   :  { %4690 = vsyncpa [#allocation7 + $0x1], 1 }
 0x5db   :  { %4691 = vsyncpa [#allocation8], 1 }
 0x5dc   :  { %4693 = vsyncpa [#allocation8 + $0x1], 1 }
 0x5dd   :  { %4694 = vsyncmov [#allocation3] }
 0x5e0   :  { %s4695_s7 = vpop.sfrf %4694 }
 0x5e1   :  { %p4962_p3 = scmp.ne.s32.totalorder %s4695_s7, 0 }
 0x5e3   :  { %4699 = shalt.err (%p4962_p3)  }
 0x5e4   :  { %4701 = vsyncmov [#allocation3 + $0x1] }
 0x5e7   :  { %s4702_s8 = vpop.sfrf %4701 }
 0x5e8   :  { %p4963_p8 = scmp.ne.s32.totalorder %s4702_s8, 0 }
 0x5ea   :  { %4706 = shalt.err (%p4963_p8)  }

</bundles_post_ra>
